<compile_context>
chip_gen: v6e
topology: v6e:2x2x1
jax: 0.10.0
libtpu: 0.0.40
codegen_flags: <defaults>
</compile_context>

<pallas_src>
import functools
import math

import numpy as np
import jax
import jax.numpy as jnp
from jax.experimental import pallas as pl
from jax.experimental.pallas import tpu as pltpu


def _pick_kc(K, V, TD, TH, TW, tile, budget_bytes=128 * 1024):
    """Primitive-chunk size: keep the per-step live weight set register-resident
    and keep template chunk boundaries lane-aligned (Kc*V multiple of 128)."""
    per_prim = (V * tile * 2                    # wgt (bf16)
                + TD * TH * tile * 2            # wz*wy intermediate (bf16)
                + (TD + TH + TW) * tile * 4)    # wx, wy, wz (f32)
    kc = max(1, budget_bytes // per_prim)
    m = 128 // math.gcd(V, 128)                 # lane alignment of template chunks
    if K >= m:
        kc = max(m, (kc // m) * m)
    return int(min(kc, K))


def _raymarch_kernel(nblocks_ref,                                   # SMEM (N*nt,)
                     primpos_ref, primrot_ref, primscale_ref,       # VMEM (1,K,3/9/3)
                     rayorig_ref, raydir_ref, tminmax_ref, tmpl_ref,  # VMEM
                     out_ref,
                     *, dt, K, Kc, S, TD, TH, TW, wdtype):
    n = pl.program_id(0)
    j = pl.program_id(1)
    nt = pl.num_programs(1)
    TR = out_ref.shape[-1]
    V = TD * TH * TW
    dt_f = jnp.float32(dt)

    orig = rayorig_ref[0]                 # (3, TR)
    dirv = raydir_ref[0]                  # (3, TR)
    tmin = tminmax_ref[0, 0:1, :]         # (1, TR)
    tmax = tminmax_ref[0, 1:2, :]         # (1, TR)

    pp = primpos_ref[0]                   # (K, 3)
    pr = primrot_ref[0]                   # (K, 9)   pr[:, 3*j + i] = R[j, i]
    ps = primscale_ref[0]                 # (K, 3)

    o = [orig[d:d + 1, :] for d in range(3)]     # (1, TR) each
    dv = [dirv[d:d + 1, :] for d in range(3)]

    # ---- hoisted per-primitive affine transform, vectorized over K ----
    #   y_i(t) = yo_i + yd_i*t,  yo_i = s_i*(R^T(orig - p))_i,  yd_i = s_i*(R^T dir)_i
    chunk_bounds = [(c0, min(c0 + Kc, K)) for c0 in range(0, K, Kc)]
    yo_ch, yd_ch = [], []
    for (c0, c1) in chunk_bounds:
        pp_c = pp[c0:c1]                          # (kc, 3)
        pr_c = pr[c0:c1]                          # (kc, 9)
        ps_c = ps[c0:c1]                          # (kc, 3)
        om = [o[d] - pp_c[:, d:d + 1] for d in range(3)]      # (kc, TR)
        yo_i, yd_i = [], []
        for i in range(3):
            r = [pr_c[:, 3 * jj + i:3 * jj + i + 1] for jj in range(3)]  # (kc,1)
            s_i = ps_c[:, i:i + 1]                                       # (kc,1)
            yo_i.append(s_i * (r[0] * om[0] + r[1] * om[1] + r[2] * om[2]))
            yd_i.append(s_i * (r[0] * dv[0] + r[1] * dv[1] + r[2] * dv[2]))
        yo_ch.append(yo_i)
        yd_ch.append(yd_i)

    iw = jax.lax.broadcasted_iota(jnp.int32, (TW, TR), 0).astype(jnp.float32)
    ih = jax.lax.broadcasted_iota(jnp.int32, (TH, TR), 0).astype(jnp.float32)
    iz = jax.lax.broadcasted_iota(jnp.int32, (TD, TR), 0).astype(jnp.float32)
    row_is_alpha = jax.lax.broadcasted_iota(jnp.int32, (4, TR), 0) == 3

    def sample(t, active):
        """Sum over all K primitives of the trilinear RGBA sample at t: (4,TR) f32."""
        samp = jnp.zeros((4, TR), jnp.float32)
        for ci, (c0, c1) in enumerate(chunk_bounds):
            kc = c1 - c0
            yo_i, yd_i = yo_ch[ci], yd_ch[ci]
            y0 = yo_i[0] + yd_i[0] * t                         # (kc, TR)
            y1 = yo_i[1] + yd_i[1] * t
            y2 = yo_i[2] + yd_i[2] * t
            inside = ((jnp.abs(y0) <= 1.0) & (jnp.abs(y1) <= 1.0)
                      & (jnp.abs(y2) <= 1.0) & active)         # (kc, TR)

            # voxel coords (align_corners=True); y0 -> W, y1 -> H, y2 -> D
            vx = (y0 + 1.0) * (0.5 * (TW - 1))
            vy = (y1 + 1.0) * (0.5 * (TH - 1))
            vz = (y2 + 1.0) * (0.5 * (TD - 1))
            # tent weights built directly in the MXU dtype (bf16 on v6e/v7x);
            # fold the inside/active mask into the smallest factor (wz)
            wx = jnp.maximum(0.0, 1.0 - jnp.abs(vx[:, None, :] - iw[None])
                             ).astype(wdtype)                  # (kc, TW, TR)
            wy = jnp.maximum(0.0, 1.0 - jnp.abs(vy[:, None, :] - ih[None])
                             ).astype(wdtype)                  # (kc, TH, TR)
            wz = (jnp.maximum(0.0, 1.0 - jnp.abs(vz[:, None, :] - iz[None]))
                  * inside[:, None, :].astype(jnp.float32)).astype(wdtype)  # (kc,TD,TR)

            wzy = wz[:, :, None, :] * wy[:, None, :, :]        # (kc, TD, TH, TR)
            wgt = (wzy[:, :, :, None, :]
                   * wx[:, None, None, :, :]).reshape(kc * V, TR)

            tmpl_c = tmpl_ref[0, :, c0 * V:c1 * V]             # (4, kc*V)
            samp = samp + jnp.dot(tmpl_c, wgt,
                                  preferred_element_type=jnp.float32)
        return samp

    def composite(acc, samp):
        # clamped additive alpha accumulation on a single (4, TR) carry
        a = acc[3:4, :]
        newa = jnp.minimum(a + samp[3:4, :] * dt_f, 1.0)
        contrib = newa - a                                     # (1, TR)
        samp_mod = jnp.where(row_is_alpha, 1.0, samp)
        return acc + samp_mod * contrib

    def block(b, acc):
        base = (b * S).astype(jnp.float32)
        for s in range(S):                                     # static S-step unroll
            t = tmin + dt_f * (base + jnp.float32(s))          # (1, TR)
            acc = composite(acc, sample(t, t < tmax))
        return acc

    nblocks = nblocks_ref[n * nt + j]                          # per-tile block count
    acc = jax.lax.fori_loop(0, nblocks, block, jnp.zeros((4, TR), jnp.float32))
    out_ref[0] = acc


def mvp_raymarch(raypos, raydir, tminmax, primpos, primrot, primscale, template,
                 dt, tile=256, steps_per_block=2, weight_dtype=jnp.bfloat16):
    # v5e note: prefer tile=128 and weight_dtype=jnp.float32 (no bf16 VALU there).
    N, H, W, _ = raypos.shape
    K = primpos.shape[1]
    C, TD, TH, TW = template.shape[2:]
    assert C == 4
    V = TD * TH * TW
    P = H * W
    S = int(steps_per_block)

    nt = -(-P // tile)           # cdiv; pad P instead of asserting divisibility
    P_pad = nt * tile
    pad = P_pad - P

    rp = jnp.transpose(raypos.reshape(N, P, 3), (0, 2, 1)).astype(jnp.float32)
    rd = jnp.transpose(raydir.reshape(N, P, 3), (0, 2, 1)).astype(jnp.float32)
    tm = jnp.transpose(tminmax.reshape(N, P, 2), (0, 2, 1)).astype(jnp.float32)
    if pad:
        # padded rays: tmin = tmax = 0 -> never active -> exact no-ops
        rp = jnp.pad(rp, ((0, 0), (0, 0), (0, pad)))
        rd = jnp.pad(rd, ((0, 0), (0, 0), (0, pad)))
        tm = jnp.pad(tm, ((0, 0), (0, 0), (0, pad)))

    # templates: (N,K,4,TD,TH,TW) -> (N, 4, K*V) in the MXU dtype
    tmpl = jnp.transpose(template.astype(jnp.float32), (0, 2, 1, 3, 4, 5))
    tmpl = tmpl.reshape(N, C, K * V).astype(weight_dtype)

    pp = primpos.reshape(N, K, 3).astype(jnp.float32)
    pr = primrot.reshape(N, K, 9).astype(jnp.float32)
    ps = primscale.reshape(N, K, 3).astype(jnp.float32)

    # per-tile adaptive step count, rounded up to a multiple of S; overshoot steps
    # are exact in-kernel no-ops (active mask). Flat 1-D SMEM (no 2-D padding).
    span = tm[:, 1, :] - tm[:, 0, :]
    span = jnp.max(span.reshape(N, nt, tile), axis=-1)
    nsteps = jnp.where(span > 0.0,
                       jnp.ceil(span / jnp.float32(dt)).astype(jnp.int32) + 1,
                       0)
    nblocks = ((nsteps + (S - 1)) // S).reshape(N * nt).astype(jnp.int32)

    Kc = _pick_kc(K, V, TD, TH, TW, tile)
    kernel = functools.partial(_raymarch_kernel, dt=float(dt), K=K, Kc=Kc, S=S,
                               TD=TD, TH=TH, TW=TW, wdtype=weight_dtype)

    out = pl.pallas_call(
        kernel,
        out_shape=jax.ShapeDtypeStruct((N, 4, P_pad), jnp.float32),
        grid=(N, nt),
        in_specs=[
            pl.BlockSpec(memory_space=pltpu.MemorySpace.SMEM),     # nblocks (N*nt,)
            pl.BlockSpec((1, K, 3), lambda n, j: (n, 0, 0)),       # primpos
            pl.BlockSpec((1, K, 9), lambda n, j: (n, 0, 0)),       # primrot
            pl.BlockSpec((1, K, 3), lambda n, j: (n, 0, 0)),       # primscale
            pl.BlockSpec((1, 3, tile), lambda n, j: (n, 0, j)),    # ray origins
            pl.BlockSpec((1, 3, tile), lambda n, j: (n, 0, j)),    # ray directions
            pl.BlockSpec((1, 2, tile), lambda n, j: (n, 0, j)),    # tminmax
            pl.BlockSpec((1, C, K * V), lambda n, j: (n, 0, 0)),   # templates
        ],
        out_specs=pl.BlockSpec((1, 4, tile), lambda n, j: (n, 0, j)),
        compiler_params=pltpu.CompilerParams(
            dimension_semantics=("parallel", "parallel")),
    )(nblocks, pp, pr, ps, rp, rd, tm, tmpl)

    return out[:, :, :P].reshape(N, 4, H, W)


class Raymarcher:
    """JAX/Pallas port of models.raymarchers.mvpraymarcher.Raymarcher (forward)."""

    def __init__(self, volradius):
        self.volradius = volradius

    def forward(self, raypos, raydir, tminmax, decout, encoding=None,
                renderoptions={}, trainiter=-1, evaliter=-1, rayterm=None, **kwargs):
        # TODO(synk): rayterm-based early termination and the optional 'warp'
        # field are not implemented (clamped alpha makes extra steps no-ops).
        dt = renderoptions['dt'] / self.volradius
        rayrgba_nchw = mvp_raymarch(
            raypos, raydir, tminmax,
            decout['primpos'], decout['primrot'], decout['primscale'],
            decout['template'], dt)
        return rayrgba_nchw, {}


# ----------------------------- pure-JAX reference -----------------------------
# Mathematically identical to the module (y = scale * R^T (pos - primpos)); the
# transform uses the same hoisted yo + yd*t form and the trilinear weights are
# committed to bf16 at the same points as the kernel (TPU-recommended MXU
# precision), with f32 accumulation.
def mvp_raymarch_ref(raypos, raydir, tminmax, primpos, primrot, primscale,
                     template, dt, nsteps, weight_dtype=jnp.bfloat16):
    N, H, W, _ = raypos.shape
    K = primpos.shape[1]
    C, TD, TH, TW = template.shape[2:]
    tmin = tminmax[..., 0]
    tmax = tminmax[..., 1]
    dt_f = jnp.float32(dt)
    iw = jnp.arange(TW, dtype=jnp.float32)
    ih = jnp.arange(TH, dtype=jnp.float32)
    iz = jnp.arange(TD, dtype=jnp.float32)
    tmpl_w = template.astype(jnp.float32).astype(weight_dtype)   # (N,K,4,TD,TH,TW)

    def transform(vec):   # vec: (N,{1|K},H,W,3) -> 3 arrays of (N,K,H,W)
        out = []
        for i in range(3):
            acc = (primrot[:, :, None, None, 0, i] * vec[..., 0]
                   + primrot[:, :, None, None, 1, i] * vec[..., 1]
                   + primrot[:, :, None, None, 2, i] * vec[..., 2])
            out.append(primscale[:, :, None, None, i] * acc)
        return out

    om = raypos[:, None] - primpos[:, :, None, None, :]           # (N,K,H,W,3)
    yo = transform(om)
    yd = transform(raydir[:, None])

    def step(s, carry):
        rgb, a = carry
        t = tmin + dt_f * s.astype(jnp.float32)                   # (N,H,W)
        active = t < tmax
        tb = t[:, None]                                           # (N,1,H,W)
        y0 = yo[0] + yd[0] * tb
        y1 = yo[1] + yd[1] * tb
        y2 = yo[2] + yd[2] * tb
        inside = ((jnp.abs(y0) <= 1.0) & (jnp.abs(y1) <= 1.0)
                  & (jnp.abs(y2) <= 1.0) & active[:, None])       # (N,K,H,W)
        vx = (y0 + 1.0) * (0.5 * (TW - 1))
        vy = (y1 + 1.0) * (0.5 * (TH - 1))
        vz = (y2 + 1.0) * (0.5 * (TD - 1))
        wx = jnp.maximum(0.0, 1.0 - jnp.abs(vx[..., None] - iw)
                         ).astype(weight_dtype)                   # (N,K,H,W,TW)
        wy = jnp.maximum(0.0, 1.0 - jnp.abs(vy[..., None] - ih)
                         ).astype(weight_dtype)                   # (N,K,H,W,TH)
        wz = (jnp.maximum(0.0, 1.0 - jnp.abs(vz[..., None] - iz))
              * inside[..., None].astype(jnp.float32)).astype(weight_dtype)  # (N,K,H,W,TD)
        wzy = wz[..., :, None, None] * wy[..., None, :, None]     # (N,K,H,W,TD,TH,1)
        wgt = wzy * wx[..., None, None, :]                        # (N,K,H,W,TD,TH,TW)
        samp = jnp.einsum('nkhwdef,nkcdef->nhwc', wgt, tmpl_w,
                          preferred_element_type=jnp.float32)     # (N,H,W,4)
        alpha = samp[..., 3] * dt_f
        newa = jnp.minimum(a + alpha, 1.0)
        contrib = newa - a
        rgb = rgb + samp[..., :3] * contrib[..., None]
        a = a + contrib
        return rgb, a

    rgb0 = jnp.zeros((N, H, W, 3), jnp.float32)
    a0 = jnp.zeros((N, H, W), jnp.float32)
    rgb, a = jax.lax.fori_loop(0, nsteps, step, (rgb0, a0))
    rayrgba = jnp.concatenate([rgb, a[..., None]], axis=-1)
    return jnp.transpose(rayrgba, (0, 3, 1, 2))


if __name__ == "__main__":
    key = jax.random.PRNGKey(0)
    N, H, W = 2, 16, 16
    K = 4
    TD = TH = TW = 4
    volradius = 1.0
    renderoptions = {"dt": 0.05}

    kpos, krot, kscale, ktmpl = jax.random.split(key, 4)

    # Rays: camera at z = -3 looking towards +z.
    xs = (jnp.arange(W, dtype=jnp.float32) + 0.5) / W * 2.0 - 1.0
    ys = (jnp.arange(H, dtype=jnp.float32) + 0.5) / H * 2.0 - 1.0
    gy, gx = jnp.meshgrid(ys, xs, indexing="ij")
    d = jnp.stack([gx * 0.4, gy * 0.4, jnp.ones_like(gx)], axis=-1)
    d = d / jnp.linalg.norm(d, axis=-1, keepdims=True)
    raydir = jnp.broadcast_to(d[None], (N, H, W, 3)).astype(jnp.float32)
    raypos = jnp.broadcast_to(jnp.array([0.0, 0.0, -3.0], jnp.float32),
                              (N, H, W, 3))
    tminmax = jnp.broadcast_to(jnp.array([2.0, 4.0], jnp.float32), (N, H, W, 2))

    # Deterministic synthetic decoder outputs.
    primpos = jax.random.uniform(kpos, (N, K, 3), minval=-0.5, maxval=0.5)
    theta = jax.random.uniform(krot, (N, K), minval=0.0, maxval=2.0 * np.pi)
    c, s = jnp.cos(theta), jnp.sin(theta)
    z = jnp.zeros_like(c)
    o = jnp.ones_like(c)
    primrot = jnp.stack([c, -s, z, s, c, z, z, z, o], axis=-1).reshape(N, K, 3, 3)
    primscale = jax.random.uniform(kscale, (N, K, 3), minval=1.5, maxval=3.0)
    template = jax.random.uniform(ktmpl, (N, K, 4, TD, TH, TW),
                                  minval=0.0, maxval=1.0)

    decout = {"primpos": primpos, "primrot": primrot,
              "primscale": primscale, "template": template}

    rm = Raymarcher(volradius)
    out, _ = rm.forward(raypos, raydir, tminmax, decout,
                        renderoptions=renderoptions)
    out = jax.block_until_ready(out)
    assert out.shape == (N, 4, H, W)

    dt = renderoptions["dt"] / volradius
    nsteps = int(np.ceil(
        float(np.max(np.asarray(tminmax[..., 1] - tminmax[..., 0]))) / dt)) + 1
    ref = jax.block_until_ready(
        mvp_raymarch_ref(raypos, raydir, tminmax, primpos, primrot, primscale,
                         template, dt, nsteps))
    np.testing.assert_allclose(np.asarray(out), np.asarray(ref),
                               rtol=3e-3, atol=3e-3)
    print("KERNEL_OK")
</pallas_src>

<mosaic_0001>
module attributes {stable_mosaic.version = 11 : i64} {
  func.func @_raymarch_kernel(%arg0: i32, %arg1: i32, %arg2: memref<2xi32, #tpu.memory_space<smem>>, %arg3: memref<1x4x3xf32, #tpu.memory_space<vmem>>, %arg4: memref<1x4x9xf32, #tpu.memory_space<vmem>>, %arg5: memref<1x4x3xf32, #tpu.memory_space<vmem>>, %arg6: memref<1x3x256xf32, #tpu.memory_space<vmem>>, %arg7: memref<1x3x256xf32, #tpu.memory_space<vmem>>, %arg8: memref<1x2x256xf32, #tpu.memory_space<vmem>>, %arg9: memref<1x4x256xbf16, #tpu.memory_space<vmem>>, %arg10: memref<1x4x256xf32, #tpu.memory_space<vmem>>) attributes {dimension_semantics = [#tpu.dimension_semantics<parallel>, #tpu.dimension_semantics<parallel>], iteration_bounds = array<i64: 2, 1>, scalar_prefetch = 0 : i64, scratch_operands = 0 : i64, tpu.core_type = #tpu.core_type<tc>, window_params = [{transform_indices = @transform_0, window_bounds = array<i64: 2>}, {transform_indices = @transform_1, window_bounds = array<i64: 1, 4, 3>}, {transform_indices = @transform_2, window_bounds = array<i64: 1, 4, 9>}, {transform_indices = @transform_3, window_bounds = array<i64: 1, 4, 3>}, {transform_indices = @transform_4, window_bounds = array<i64: 1, 3, 256>}, {transform_indices = @transform_5, window_bounds = array<i64: 1, 3, 256>}, {transform_indices = @transform_6, window_bounds = array<i64: 1, 2, 256>}, {transform_indices = @transform_7, window_bounds = array<i64: 1, 4, 256>}, {transform_indices = @transform_8, window_bounds = array<i64: 1, 4, 256>}]} {
    %c0 = arith.constant 0 : index
    %c0_0 = arith.constant 0 : index
    %c0_1 = arith.constant 0 : index
    %0 = vector.load %arg6[%c0, %c0_0, %c0_1] : memref<1x3x256xf32, #tpu.memory_space<vmem>>, vector<1x3x256xf32>
    %1 = vector.shape_cast %0 : vector<1x3x256xf32> to vector<3x256xf32>
    %c0_2 = arith.constant 0 : index
    %c0_3 = arith.constant 0 : index
    %c0_4 = arith.constant 0 : index
    %2 = vector.load %arg7[%c0_2, %c0_3, %c0_4] : memref<1x3x256xf32, #tpu.memory_space<vmem>>, vector<1x3x256xf32>
    %3 = vector.shape_cast %2 : vector<1x3x256xf32> to vector<3x256xf32>
    %c0_5 = arith.constant 0 : index
    %c0_6 = arith.constant 0 : index
    %c0_7 = arith.constant 0 : index
    %4 = vector.load %arg8[%c0_5, %c0_6, %c0_7] : memref<1x2x256xf32, #tpu.memory_space<vmem>>, vector<1x1x256xf32>
    %5 = vector.shape_cast %4 : vector<1x1x256xf32> to vector<1x256xf32>
    %c0_8 = arith.constant 0 : index
    %c1 = arith.constant 1 : index
    %c0_9 = arith.constant 0 : index
    %6 = vector.load %arg8[%c0_8, %c1, %c0_9] : memref<1x2x256xf32, #tpu.memory_space<vmem>>, vector<1x1x256xf32>
    %7 = vector.shape_cast %6 : vector<1x1x256xf32> to vector<1x256xf32>
    %c0_10 = arith.constant 0 : index
    %c0_11 = arith.constant 0 : index
    %c0_12 = arith.constant 0 : index
    %8 = vector.load %arg3[%c0_10, %c0_11, %c0_12] : memref<1x4x3xf32, #tpu.memory_space<vmem>>, vector<1x4x3xf32>
    %9 = vector.shape_cast %8 : vector<1x4x3xf32> to vector<4x3xf32>
    %c0_13 = arith.constant 0 : index
    %c0_14 = arith.constant 0 : index
    %c0_15 = arith.constant 0 : index
    %10 = vector.load %arg4[%c0_13, %c0_14, %c0_15] : memref<1x4x9xf32, #tpu.memory_space<vmem>>, vector<1x4x9xf32>
    %11 = vector.shape_cast %10 : vector<1x4x9xf32> to vector<4x9xf32>
    %c0_16 = arith.constant 0 : index
    %c0_17 = arith.constant 0 : index
    %c0_18 = arith.constant 0 : index
    %12 = vector.load %arg5[%c0_16, %c0_17, %c0_18] : memref<1x4x3xf32, #tpu.memory_space<vmem>>, vector<1x4x3xf32>
    %13 = vector.shape_cast %12 : vector<1x4x3xf32> to vector<4x3xf32>
    %14 = vector.extract_strided_slice %1 {offsets = [0, 0], sizes = [1, 256], strides = [1, 1]} : vector<3x256xf32> to vector<1x256xf32>
    %15 = vector.extract_strided_slice %1 {offsets = [1, 0], sizes = [1, 256], strides = [1, 1]} : vector<3x256xf32> to vector<1x256xf32>
    %16 = vector.extract_strided_slice %1 {offsets = [2, 0], sizes = [1, 256], strides = [1, 1]} : vector<3x256xf32> to vector<1x256xf32>
    %17 = vector.extract_strided_slice %3 {offsets = [0, 0], sizes = [1, 256], strides = [1, 1]} : vector<3x256xf32> to vector<1x256xf32>
    %18 = vector.extract_strided_slice %3 {offsets = [1, 0], sizes = [1, 256], strides = [1, 1]} : vector<3x256xf32> to vector<1x256xf32>
    %19 = vector.extract_strided_slice %3 {offsets = [2, 0], sizes = [1, 256], strides = [1, 1]} : vector<3x256xf32> to vector<1x256xf32>
    %20 = vector.extract_strided_slice %9 {offsets = [0, 0], sizes = [2, 3], strides = [1, 1]} : vector<4x3xf32> to vector<2x3xf32>
    %21 = vector.extract_strided_slice %11 {offsets = [0, 0], sizes = [2, 9], strides = [1, 1]} : vector<4x9xf32> to vector<2x9xf32>
    %22 = vector.extract_strided_slice %13 {offsets = [0, 0], sizes = [2, 3], strides = [1, 1]} : vector<4x3xf32> to vector<2x3xf32>
    %23 = vector.extract_strided_slice %20 {offsets = [0, 0], sizes = [2, 1], strides = [1, 1]} : vector<2x3xf32> to vector<2x1xf32>
    %24 = vector.broadcast %14 : vector<1x256xf32> to vector<2x256xf32>
    %25 = vector.broadcast %23 : vector<2x1xf32> to vector<2x256xf32>
    %26 = arith.subf %24, %25 : vector<2x256xf32>
    %27 = vector.extract_strided_slice %20 {offsets = [0, 1], sizes = [2, 1], strides = [1, 1]} : vector<2x3xf32> to vector<2x1xf32>
    %28 = vector.broadcast %15 : vector<1x256xf32> to vector<2x256xf32>
    %29 = vector.broadcast %27 : vector<2x1xf32> to vector<2x256xf32>
    %30 = arith.subf %28, %29 : vector<2x256xf32>
    %31 = vector.extract_strided_slice %20 {offsets = [0, 2], sizes = [2, 1], strides = [1, 1]} : vector<2x3xf32> to vector<2x1xf32>
    %32 = vector.broadcast %16 : vector<1x256xf32> to vector<2x256xf32>
    %33 = vector.broadcast %31 : vector<2x1xf32> to vector<2x256xf32>
    %34 = arith.subf %32, %33 : vector<2x256xf32>
    %35 = vector.extract_strided_slice %21 {offsets = [0, 0], sizes = [2, 1], strides = [1, 1]} : vector<2x9xf32> to vector<2x1xf32>
    %36 = vector.extract_strided_slice %21 {offsets = [0, 3], sizes = [2, 1], strides = [1, 1]} : vector<2x9xf32> to vector<2x1xf32>
    %37 = vector.extract_strided_slice %21 {offsets = [0, 6], sizes = [2, 1], strides = [1, 1]} : vector<2x9xf32> to vector<2x1xf32>
    %38 = vector.extract_strided_slice %22 {offsets = [0, 0], sizes = [2, 1], strides = [1, 1]} : vector<2x3xf32> to vector<2x1xf32>
    %39 = vector.broadcast %35 : vector<2x1xf32> to vector<2x256xf32>
    %40 = arith.mulf %39, %26 : vector<2x256xf32>
    %41 = vector.broadcast %36 : vector<2x1xf32> to vector<2x256xf32>
    %42 = arith.mulf %41, %30 : vector<2x256xf32>
    %43 = arith.addf %40, %42 : vector<2x256xf32>
    %44 = vector.broadcast %37 : vector<2x1xf32> to vector<2x256xf32>
    %45 = arith.mulf %44, %34 : vector<2x256xf32>
    %46 = arith.addf %43, %45 : vector<2x256xf32>
    %47 = vector.broadcast %38 : vector<2x1xf32> to vector<2x256xf32>
    %48 = arith.mulf %47, %46 : vector<2x256xf32>
    %49 = vector.broadcast %35 : vector<2x1xf32> to vector<2x256xf32>
    %50 = vector.broadcast %17 : vector<1x256xf32> to vector<2x256xf32>
    %51 = arith.mulf %49, %50 : vector<2x256xf32>
    %52 = vector.broadcast %36 : vector<2x1xf32> to vector<2x256xf32>
    %53 = vector.broadcast %18 : vector<1x256xf32> to vector<2x256xf32>
    %54 = arith.mulf %52, %53 : vector<2x256xf32>
    %55 = arith.addf %51, %54 : vector<2x256xf32>
    %56 = vector.broadcast %37 : vector<2x1xf32> to vector<2x256xf32>
    %57 = vector.broadcast %19 : vector<1x256xf32> to vector<2x256xf32>
    %58 = arith.mulf %56, %57 : vector<2x256xf32>
    %59 = arith.addf %55, %58 : vector<2x256xf32>
    %60 = vector.broadcast %38 : vector<2x1xf32> to vector<2x256xf32>
    %61 = arith.mulf %60, %59 : vector<2x256xf32>
    %62 = vector.extract_strided_slice %21 {offsets = [0, 1], sizes = [2, 1], strides = [1, 1]} : vector<2x9xf32> to vector<2x1xf32>
    %63 = vector.extract_strided_slice %21 {offsets = [0, 4], sizes = [2, 1], strides = [1, 1]} : vector<2x9xf32> to vector<2x1xf32>
    %64 = vector.extract_strided_slice %21 {offsets = [0, 7], sizes = [2, 1], strides = [1, 1]} : vector<2x9xf32> to vector<2x1xf32>
    %65 = vector.extract_strided_slice %22 {offsets = [0, 1], sizes = [2, 1], strides = [1, 1]} : vector<2x3xf32> to vector<2x1xf32>
    %66 = vector.broadcast %62 : vector<2x1xf32> to vector<2x256xf32>
    %67 = arith.mulf %66, %26 : vector<2x256xf32>
    %68 = vector.broadcast %63 : vector<2x1xf32> to vector<2x256xf32>
    %69 = arith.mulf %68, %30 : vector<2x256xf32>
    %70 = arith.addf %67, %69 : vector<2x256xf32>
    %71 = vector.broadcast %64 : vector<2x1xf32> to vector<2x256xf32>
    %72 = arith.mulf %71, %34 : vector<2x256xf32>
    %73 = arith.addf %70, %72 : vector<2x256xf32>
    %74 = vector.broadcast %65 : vector<2x1xf32> to vector<2x256xf32>
    %75 = arith.mulf %74, %73 : vector<2x256xf32>
    %76 = vector.broadcast %62 : vector<2x1xf32> to vector<2x256xf32>
    %77 = vector.broadcast %17 : vector<1x256xf32> to vector<2x256xf32>
    %78 = arith.mulf %76, %77 : vector<2x256xf32>
    %79 = vector.broadcast %63 : vector<2x1xf32> to vector<2x256xf32>
    %80 = vector.broadcast %18 : vector<1x256xf32> to vector<2x256xf32>
    %81 = arith.mulf %79, %80 : vector<2x256xf32>
    %82 = arith.addf %78, %81 : vector<2x256xf32>
    %83 = vector.broadcast %64 : vector<2x1xf32> to vector<2x256xf32>
    %84 = vector.broadcast %19 : vector<1x256xf32> to vector<2x256xf32>
    %85 = arith.mulf %83, %84 : vector<2x256xf32>
    %86 = arith.addf %82, %85 : vector<2x256xf32>
    %87 = vector.broadcast %65 : vector<2x1xf32> to vector<2x256xf32>
    %88 = arith.mulf %87, %86 : vector<2x256xf32>
    %89 = vector.extract_strided_slice %21 {offsets = [0, 2], sizes = [2, 1], strides = [1, 1]} : vector<2x9xf32> to vector<2x1xf32>
    %90 = vector.extract_strided_slice %21 {offsets = [0, 5], sizes = [2, 1], strides = [1, 1]} : vector<2x9xf32> to vector<2x1xf32>
    %91 = vector.extract_strided_slice %21 {offsets = [0, 8], sizes = [2, 1], strides = [1, 1]} : vector<2x9xf32> to vector<2x1xf32>
    %92 = vector.extract_strided_slice %22 {offsets = [0, 2], sizes = [2, 1], strides = [1, 1]} : vector<2x3xf32> to vector<2x1xf32>
    %93 = vector.broadcast %89 : vector<2x1xf32> to vector<2x256xf32>
    %94 = arith.mulf %93, %26 : vector<2x256xf32>
    %95 = vector.broadcast %90 : vector<2x1xf32> to vector<2x256xf32>
    %96 = arith.mulf %95, %30 : vector<2x256xf32>
    %97 = arith.addf %94, %96 : vector<2x256xf32>
    %98 = vector.broadcast %91 : vector<2x1xf32> to vector<2x256xf32>
    %99 = arith.mulf %98, %34 : vector<2x256xf32>
    %100 = arith.addf %97, %99 : vector<2x256xf32>
    %101 = vector.broadcast %92 : vector<2x1xf32> to vector<2x256xf32>
    %102 = arith.mulf %101, %100 : vector<2x256xf32>
    %103 = vector.broadcast %89 : vector<2x1xf32> to vector<2x256xf32>
    %104 = vector.broadcast %17 : vector<1x256xf32> to vector<2x256xf32>
    %105 = arith.mulf %103, %104 : vector<2x256xf32>
    %106 = vector.broadcast %90 : vector<2x1xf32> to vector<2x256xf32>
    %107 = vector.broadcast %18 : vector<1x256xf32> to vector<2x256xf32>
    %108 = arith.mulf %106, %107 : vector<2x256xf32>
    %109 = arith.addf %105, %108 : vector<2x256xf32>
    %110 = vector.broadcast %91 : vector<2x1xf32> to vector<2x256xf32>
    %111 = vector.broadcast %19 : vector<1x256xf32> to vector<2x256xf32>
    %112 = arith.mulf %110, %111 : vector<2x256xf32>
    %113 = arith.addf %109, %112 : vector<2x256xf32>
    %114 = vector.broadcast %92 : vector<2x1xf32> to vector<2x256xf32>
    %115 = arith.mulf %114, %113 : vector<2x256xf32>
    %116 = vector.extract_strided_slice %9 {offsets = [2, 0], sizes = [2, 3], strides = [1, 1]} : vector<4x3xf32> to vector<2x3xf32>
    %117 = vector.extract_strided_slice %11 {offsets = [2, 0], sizes = [2, 9], strides = [1, 1]} : vector<4x9xf32> to vector<2x9xf32>
    %118 = vector.extract_strided_slice %13 {offsets = [2, 0], sizes = [2, 3], strides = [1, 1]} : vector<4x3xf32> to vector<2x3xf32>
    %119 = vector.extract_strided_slice %116 {offsets = [0, 0], sizes = [2, 1], strides = [1, 1]} : vector<2x3xf32> to vector<2x1xf32>
    %120 = vector.broadcast %14 : vector<1x256xf32> to vector<2x256xf32>
    %121 = vector.broadcast %119 : vector<2x1xf32> to vector<2x256xf32>
    %122 = arith.subf %120, %121 : vector<2x256xf32>
    %123 = vector.extract_strided_slice %116 {offsets = [0, 1], sizes = [2, 1], strides = [1, 1]} : vector<2x3xf32> to vector<2x1xf32>
    %124 = vector.broadcast %15 : vector<1x256xf32> to vector<2x256xf32>
    %125 = vector.broadcast %123 : vector<2x1xf32> to vector<2x256xf32>
    %126 = arith.subf %124, %125 : vector<2x256xf32>
    %127 = vector.extract_strided_slice %116 {offsets = [0, 2], sizes = [2, 1], strides = [1, 1]} : vector<2x3xf32> to vector<2x1xf32>
    %128 = vector.broadcast %16 : vector<1x256xf32> to vector<2x256xf32>
    %129 = vector.broadcast %127 : vector<2x1xf32> to vector<2x256xf32>
    %130 = arith.subf %128, %129 : vector<2x256xf32>
    %131 = vector.extract_strided_slice %117 {offsets = [0, 0], sizes = [2, 1], strides = [1, 1]} : vector<2x9xf32> to vector<2x1xf32>
    %132 = vector.extract_strided_slice %117 {offsets = [0, 3], sizes = [2, 1], strides = [1, 1]} : vector<2x9xf32> to vector<2x1xf32>
    %133 = vector.extract_strided_slice %117 {offsets = [0, 6], sizes = [2, 1], strides = [1, 1]} : vector<2x9xf32> to vector<2x1xf32>
    %134 = vector.extract_strided_slice %118 {offsets = [0, 0], sizes = [2, 1], strides = [1, 1]} : vector<2x3xf32> to vector<2x1xf32>
    %135 = vector.broadcast %131 : vector<2x1xf32> to vector<2x256xf32>
    %136 = arith.mulf %135, %122 : vector<2x256xf32>
    %137 = vector.broadcast %132 : vector<2x1xf32> to vector<2x256xf32>
    %138 = arith.mulf %137, %126 : vector<2x256xf32>
    %139 = arith.addf %136, %138 : vector<2x256xf32>
    %140 = vector.broadcast %133 : vector<2x1xf32> to vector<2x256xf32>
    %141 = arith.mulf %140, %130 : vector<2x256xf32>
    %142 = arith.addf %139, %141 : vector<2x256xf32>
    %143 = vector.broadcast %134 : vector<2x1xf32> to vector<2x256xf32>
    %144 = arith.mulf %143, %142 : vector<2x256xf32>
    %145 = vector.broadcast %131 : vector<2x1xf32> to vector<2x256xf32>
    %146 = vector.broadcast %17 : vector<1x256xf32> to vector<2x256xf32>
    %147 = arith.mulf %145, %146 : vector<2x256xf32>
    %148 = vector.broadcast %132 : vector<2x1xf32> to vector<2x256xf32>
    %149 = vector.broadcast %18 : vector<1x256xf32> to vector<2x256xf32>
    %150 = arith.mulf %148, %149 : vector<2x256xf32>
    %151 = arith.addf %147, %150 : vector<2x256xf32>
    %152 = vector.broadcast %133 : vector<2x1xf32> to vector<2x256xf32>
    %153 = vector.broadcast %19 : vector<1x256xf32> to vector<2x256xf32>
    %154 = arith.mulf %152, %153 : vector<2x256xf32>
    %155 = arith.addf %151, %154 : vector<2x256xf32>
    %156 = vector.broadcast %134 : vector<2x1xf32> to vector<2x256xf32>
    %157 = arith.mulf %156, %155 : vector<2x256xf32>
    %158 = vector.extract_strided_slice %117 {offsets = [0, 1], sizes = [2, 1], strides = [1, 1]} : vector<2x9xf32> to vector<2x1xf32>
    %159 = vector.extract_strided_slice %117 {offsets = [0, 4], sizes = [2, 1], strides = [1, 1]} : vector<2x9xf32> to vector<2x1xf32>
    %160 = vector.extract_strided_slice %117 {offsets = [0, 7], sizes = [2, 1], strides = [1, 1]} : vector<2x9xf32> to vector<2x1xf32>
    %161 = vector.extract_strided_slice %118 {offsets = [0, 1], sizes = [2, 1], strides = [1, 1]} : vector<2x3xf32> to vector<2x1xf32>
    %162 = vector.broadcast %158 : vector<2x1xf32> to vector<2x256xf32>
    %163 = arith.mulf %162, %122 : vector<2x256xf32>
    %164 = vector.broadcast %159 : vector<2x1xf32> to vector<2x256xf32>
    %165 = arith.mulf %164, %126 : vector<2x256xf32>
    %166 = arith.addf %163, %165 : vector<2x256xf32>
    %167 = vector.broadcast %160 : vector<2x1xf32> to vector<2x256xf32>
    %168 = arith.mulf %167, %130 : vector<2x256xf32>
    %169 = arith.addf %166, %168 : vector<2x256xf32>
    %170 = vector.broadcast %161 : vector<2x1xf32> to vector<2x256xf32>
    %171 = arith.mulf %170, %169 : vector<2x256xf32>
    %172 = vector.broadcast %158 : vector<2x1xf32> to vector<2x256xf32>
    %173 = vector.broadcast %17 : vector<1x256xf32> to vector<2x256xf32>
    %174 = arith.mulf %172, %173 : vector<2x256xf32>
    %175 = vector.broadcast %159 : vector<2x1xf32> to vector<2x256xf32>
    %176 = vector.broadcast %18 : vector<1x256xf32> to vector<2x256xf32>
    %177 = arith.mulf %175, %176 : vector<2x256xf32>
    %178 = arith.addf %174, %177 : vector<2x256xf32>
    %179 = vector.broadcast %160 : vector<2x1xf32> to vector<2x256xf32>
    %180 = vector.broadcast %19 : vector<1x256xf32> to vector<2x256xf32>
    %181 = arith.mulf %179, %180 : vector<2x256xf32>
    %182 = arith.addf %178, %181 : vector<2x256xf32>
    %183 = vector.broadcast %161 : vector<2x1xf32> to vector<2x256xf32>
    %184 = arith.mulf %183, %182 : vector<2x256xf32>
    %185 = vector.extract_strided_slice %117 {offsets = [0, 2], sizes = [2, 1], strides = [1, 1]} : vector<2x9xf32> to vector<2x1xf32>
    %186 = vector.extract_strided_slice %117 {offsets = [0, 5], sizes = [2, 1], strides = [1, 1]} : vector<2x9xf32> to vector<2x1xf32>
    %187 = vector.extract_strided_slice %117 {offsets = [0, 8], sizes = [2, 1], strides = [1, 1]} : vector<2x9xf32> to vector<2x1xf32>
    %188 = vector.extract_strided_slice %118 {offsets = [0, 2], sizes = [2, 1], strides = [1, 1]} : vector<2x3xf32> to vector<2x1xf32>
    %189 = vector.broadcast %185 : vector<2x1xf32> to vector<2x256xf32>
    %190 = arith.mulf %189, %122 : vector<2x256xf32>
    %191 = vector.broadcast %186 : vector<2x1xf32> to vector<2x256xf32>
    %192 = arith.mulf %191, %126 : vector<2x256xf32>
    %193 = arith.addf %190, %192 : vector<2x256xf32>
    %194 = vector.broadcast %187 : vector<2x1xf32> to vector<2x256xf32>
    %195 = arith.mulf %194, %130 : vector<2x256xf32>
    %196 = arith.addf %193, %195 : vector<2x256xf32>
    %197 = vector.broadcast %188 : vector<2x1xf32> to vector<2x256xf32>
    %198 = arith.mulf %197, %196 : vector<2x256xf32>
    %199 = vector.broadcast %185 : vector<2x1xf32> to vector<2x256xf32>
    %200 = vector.broadcast %17 : vector<1x256xf32> to vector<2x256xf32>
    %201 = arith.mulf %199, %200 : vector<2x256xf32>
    %202 = vector.broadcast %186 : vector<2x1xf32> to vector<2x256xf32>
    %203 = vector.broadcast %18 : vector<1x256xf32> to vector<2x256xf32>
    %204 = arith.mulf %202, %203 : vector<2x256xf32>
    %205 = arith.addf %201, %204 : vector<2x256xf32>
    %206 = vector.broadcast %187 : vector<2x1xf32> to vector<2x256xf32>
    %207 = vector.broadcast %19 : vector<1x256xf32> to vector<2x256xf32>
    %208 = arith.mulf %206, %207 : vector<2x256xf32>
    %209 = arith.addf %205, %208 : vector<2x256xf32>
    %210 = vector.broadcast %188 : vector<2x1xf32> to vector<2x256xf32>
    %211 = arith.mulf %210, %209 : vector<2x256xf32>
    %212 = tpu.iota {dimensions = array<i32: 0>} : vector<4x256xi32>
    %213 = arith.sitofp %212 : vector<4x256xi32> to vector<4x256xf32>
    %214 = tpu.iota {dimensions = array<i32: 0>} : vector<4x256xi32>
    %215 = arith.sitofp %214 : vector<4x256xi32> to vector<4x256xf32>
    %216 = tpu.iota {dimensions = array<i32: 0>} : vector<4x256xi32>
    %217 = arith.sitofp %216 : vector<4x256xi32> to vector<4x256xf32>
    %218 = tpu.iota {dimensions = array<i32: 0>} : vector<4x256xi32>
    %c3_i32 = arith.constant 3 : i32
    %219 = vector.broadcast %c3_i32 : i32 to vector<4x256xi32>
    %220 = arith.cmpi eq, %218, %219 : vector<4x256xi32>
    %c1_i32 = arith.constant 1 : i32
    %221 = arith.muli %arg0, %c1_i32 : i32
    %222 = arith.addi %221, %arg1 : i32
    %223 = arith.index_cast %222 : i32 to index
    %224 = memref.load %arg2[%223] : memref<2xi32, #tpu.memory_space<smem>>
    %cst = arith.constant 0.000000e+00 : f32
    %225 = vector.broadcast %cst : f32 to vector<4x256xf32>
    %cst_19 = arith.constant 5.000000e-02 : f32
    %c0_i32 = arith.constant 0 : i32
    %226 = arith.subi %224, %c0_i32 : i32
    %227 = arith.addi %c0_i32, %226 : i32
    %c1_i32_20 = arith.constant 1 : i32
    %228 = scf.for %arg11 = %c0_i32 to %227 step %c1_i32_20 iter_args(%arg12 = %225) -> (vector<4x256xf32>)  : i32 {
      %c2_i32 = arith.constant 2 : i32
      %232 = arith.muli %arg11, %c2_i32 : i32
      %233 = arith.sitofp %232 : i32 to f32
      %cst_24 = arith.constant 0.000000e+00 : f32
      %234 = arith.addf %233, %cst_24 : f32
      %235 = arith.mulf %cst_19, %234 : f32
      %236 = vector.broadcast %235 : f32 to vector<1x256xf32>
      %237 = arith.addf %5, %236 : vector<1x256xf32>
      %238 = arith.cmpf olt, %237, %7 : vector<1x256xf32>
      %cst_25 = arith.constant 0.000000e+00 : f32
      %239 = vector.broadcast %cst_25 : f32 to vector<4x256xf32>
      %240 = vector.broadcast %237 : vector<1x256xf32> to vector<2x256xf32>
      %241 = arith.mulf %61, %240 : vector<2x256xf32>
      %242 = arith.addf %48, %241 : vector<2x256xf32>
      %243 = vector.broadcast %237 : vector<1x256xf32> to vector<2x256xf32>
      %244 = arith.mulf %88, %243 : vector<2x256xf32>
      %245 = arith.addf %75, %244 : vector<2x256xf32>
      %246 = vector.broadcast %237 : vector<1x256xf32> to vector<2x256xf32>
      %247 = arith.mulf %115, %246 : vector<2x256xf32>
      %248 = arith.addf %102, %247 : vector<2x256xf32>
      %249 = math.absf %242 : vector<2x256xf32>
      %cst_26 = arith.constant 1.000000e+00 : f32
      %250 = vector.broadcast %cst_26 : f32 to vector<2x256xf32>
      %251 = arith.cmpf ole, %249, %250 : vector<2x256xf32>
      %252 = math.absf %245 : vector<2x256xf32>
      %cst_27 = arith.constant 1.000000e+00 : f32
      %253 = vector.broadcast %cst_27 : f32 to vector<2x256xf32>
      %254 = arith.cmpf ole, %252, %253 : vector<2x256xf32>
      %255 = arith.andi %251, %254 : vector<2x256xi1>
      %256 = math.absf %248 : vector<2x256xf32>
      %cst_28 = arith.constant 1.000000e+00 : f32
      %257 = vector.broadcast %cst_28 : f32 to vector<2x256xf32>
      %258 = arith.cmpf ole, %256, %257 : vector<2x256xf32>
      %259 = arith.andi %255, %258 : vector<2x256xi1>
      %260 = vector.broadcast %238 : vector<1x256xi1> to vector<2x256xi1>
      %261 = arith.andi %259, %260 : vector<2x256xi1>
      %cst_29 = arith.constant 1.000000e+00 : f32
      %262 = vector.broadcast %cst_29 : f32 to vector<2x256xf32>
      %263 = arith.addf %242, %262 : vector<2x256xf32>
      %cst_30 = arith.constant 1.500000e+00 : f32
      %264 = vector.broadcast %cst_30 : f32 to vector<2x256xf32>
      %265 = arith.mulf %263, %264 : vector<2x256xf32>
      %cst_31 = arith.constant 1.000000e+00 : f32
      %266 = vector.broadcast %cst_31 : f32 to vector<2x256xf32>
      %267 = arith.addf %245, %266 : vector<2x256xf32>
      %cst_32 = arith.constant 1.500000e+00 : f32
      %268 = vector.broadcast %cst_32 : f32 to vector<2x256xf32>
      %269 = arith.mulf %267, %268 : vector<2x256xf32>
      %cst_33 = arith.constant 1.000000e+00 : f32
      %270 = vector.broadcast %cst_33 : f32 to vector<2x256xf32>
      %271 = arith.addf %248, %270 : vector<2x256xf32>
      %cst_34 = arith.constant 1.500000e+00 : f32
      %272 = vector.broadcast %cst_34 : f32 to vector<2x256xf32>
      %273 = arith.mulf %271, %272 : vector<2x256xf32>
      %274 = vector.shape_cast %265 : vector<2x256xf32> to vector<2x1x256xf32>
      %275 = vector.shape_cast %213 : vector<4x256xf32> to vector<1x4x256xf32>
      %276 = vector.broadcast %274 : vector<2x1x256xf32> to vector<2x4x256xf32>
      %277 = vector.broadcast %275 : vector<1x4x256xf32> to vector<2x4x256xf32>
      %278 = arith.subf %276, %277 : vector<2x4x256xf32>
      %279 = math.absf %278 : vector<2x4x256xf32>
      %cst_35 = arith.constant 1.000000e+00 : f32
      %280 = vector.broadcast %cst_35 : f32 to vector<2x4x256xf32>
      %281 = arith.subf %280, %279 : vector<2x4x256xf32>
      %cst_36 = arith.constant 0.000000e+00 : f32
      %282 = vector.broadcast %cst_36 : f32 to vector<2x4x256xf32>
      %283 = arith.maximumf %282, %281 : vector<2x4x256xf32>
      %284 = arith.truncf %283 : vector<2x4x256xf32> to vector<2x4x256xbf16>
      %285 = vector.shape_cast %269 : vector<2x256xf32> to vector<2x1x256xf32>
      %286 = vector.shape_cast %215 : vector<4x256xf32> to vector<1x4x256xf32>
      %287 = vector.broadcast %285 : vector<2x1x256xf32> to vector<2x4x256xf32>
      %288 = vector.broadcast %286 : vector<1x4x256xf32> to vector<2x4x256xf32>
      %289 = arith.subf %287, %288 : vector<2x4x256xf32>
      %290 = math.absf %289 : vector<2x4x256xf32>
      %cst_37 = arith.constant 1.000000e+00 : f32
      %291 = vector.broadcast %cst_37 : f32 to vector<2x4x256xf32>
      %292 = arith.subf %291, %290 : vector<2x4x256xf32>
      %cst_38 = arith.constant 0.000000e+00 : f32
      %293 = vector.broadcast %cst_38 : f32 to vector<2x4x256xf32>
      %294 = arith.maximumf %293, %292 : vector<2x4x256xf32>
      %295 = arith.truncf %294 : vector<2x4x256xf32> to vector<2x4x256xbf16>
      %296 = vector.shape_cast %273 : vector<2x256xf32> to vector<2x1x256xf32>
      %297 = vector.shape_cast %217 : vector<4x256xf32> to vector<1x4x256xf32>
      %298 = vector.broadcast %296 : vector<2x1x256xf32> to vector<2x4x256xf32>
      %299 = vector.broadcast %297 : vector<1x4x256xf32> to vector<2x4x256xf32>
      %300 = arith.subf %298, %299 : vector<2x4x256xf32>
      %301 = math.absf %300 : vector<2x4x256xf32>
      %cst_39 = arith.constant 1.000000e+00 : f32
      %302 = vector.broadcast %cst_39 : f32 to vector<2x4x256xf32>
      %303 = arith.subf %302, %301 : vector<2x4x256xf32>
      %cst_40 = arith.constant 0.000000e+00 : f32
      %304 = vector.broadcast %cst_40 : f32 to vector<2x4x256xf32>
      %305 = arith.maximumf %304, %303 : vector<2x4x256xf32>
      %306 = vector.shape_cast %261 : vector<2x256xi1> to vector<2x1x256xi1>
      %307 = arith.extui %306 : vector<2x1x256xi1> to vector<2x1x256xi32>
      %308 = arith.sitofp %307 : vector<2x1x256xi32> to vector<2x1x256xf32>
      %309 = vector.broadcast %308 : vector<2x1x256xf32> to vector<2x4x256xf32>
      %310 = arith.mulf %305, %309 : vector<2x4x256xf32>
      %311 = arith.truncf %310 : vector<2x4x256xf32> to vector<2x4x256xbf16>
      %312 = vector.shape_cast %311 : vector<2x4x256xbf16> to vector<2x4x1x256xbf16>
      %313 = vector.shape_cast %295 : vector<2x4x256xbf16> to vector<2x1x4x256xbf16>
      %314 = vector.broadcast %312 : vector<2x4x1x256xbf16> to vector<2x4x4x256xbf16>
      %315 = vector.broadcast %313 : vector<2x1x4x256xbf16> to vector<2x4x4x256xbf16>
      %316 = arith.mulf %314, %315 : vector<2x4x4x256xbf16>
      %317 = vector.shape_cast %316 : vector<2x4x4x256xbf16> to vector<2x4x4x1x256xbf16>
      %318 = vector.shape_cast %284 : vector<2x4x256xbf16> to vector<2x1x1x4x256xbf16>
      %319 = vector.broadcast %317 : vector<2x4x4x1x256xbf16> to vector<2x4x4x4x256xbf16>
      %320 = vector.broadcast %318 : vector<2x1x1x4x256xbf16> to vector<2x4x4x4x256xbf16>
      %321 = arith.mulf %319, %320 : vector<2x4x4x4x256xbf16>
      %322 = vector.shape_cast %321 : vector<2x4x4x4x256xbf16> to vector<128x256xbf16>
      %c0_41 = arith.constant 0 : index
      %c0_42 = arith.constant 0 : index
      %c0_43 = arith.constant 0 : index
      %323 = vector.load %arg9[%c0_41, %c0_42, %c0_43] : memref<1x4x256xbf16, #tpu.memory_space<vmem>>, vector<1x4x128xbf16>
      %324 = vector.shape_cast %323 : vector<1x4x128xbf16> to vector<4x128xbf16>
      %cst_44 = arith.constant dense<0.000000e+00> : vector<4x256xf32>
      %325 = tpu.matmul %324, %322, %cst_44 {dimension_numbers = #tpu.dot_dimension_numbers<[1], [0], [0], [1], [0, 0, 1, 1], [], []>} : vector<4x128xbf16>, vector<128x256xbf16>, vector<4x256xf32> -> vector<4x256xf32>
      %326 = arith.addf %239, %325 : vector<4x256xf32>
      %327 = vector.broadcast %237 : vector<1x256xf32> to vector<2x256xf32>
      %328 = arith.mulf %157, %327 : vector<2x256xf32>
      %329 = arith.addf %144, %328 : vector<2x256xf32>
      %330 = vector.broadcast %237 : vector<1x256xf32> to vector<2x256xf32>
      %331 = arith.mulf %184, %330 : vector<2x256xf32>
      %332 = arith.addf %171, %331 : vector<2x256xf32>
      %333 = vector.broadcast %237 : vector<1x256xf32> to vector<2x256xf32>
      %334 = arith.mulf %211, %333 : vector<2x256xf32>
      %335 = arith.addf %198, %334 : vector<2x256xf32>
      %336 = math.absf %329 : vector<2x256xf32>
      %cst_45 = arith.constant 1.000000e+00 : f32
      %337 = vector.broadcast %cst_45 : f32 to vector<2x256xf32>
      %338 = arith.cmpf ole, %336, %337 : vector<2x256xf32>
      %339 = math.absf %332 : vector<2x256xf32>
      %cst_46 = arith.constant 1.000000e+00 : f32
      %340 = vector.broadcast %cst_46 : f32 to vector<2x256xf32>
      %341 = arith.cmpf ole, %339, %340 : vector<2x256xf32>
      %342 = arith.andi %338, %341 : vector<2x256xi1>
      %343 = math.absf %335 : vector<2x256xf32>
      %cst_47 = arith.constant 1.000000e+00 : f32
      %344 = vector.broadcast %cst_47 : f32 to vector<2x256xf32>
      %345 = arith.cmpf ole, %343, %344 : vector<2x256xf32>
      %346 = arith.andi %342, %345 : vector<2x256xi1>
      %347 = vector.broadcast %238 : vector<1x256xi1> to vector<2x256xi1>
      %348 = arith.andi %346, %347 : vector<2x256xi1>
      %cst_48 = arith.constant 1.000000e+00 : f32
      %349 = vector.broadcast %cst_48 : f32 to vector<2x256xf32>
      %350 = arith.addf %329, %349 : vector<2x256xf32>
      %cst_49 = arith.constant 1.500000e+00 : f32
      %351 = vector.broadcast %cst_49 : f32 to vector<2x256xf32>
      %352 = arith.mulf %350, %351 : vector<2x256xf32>
      %cst_50 = arith.constant 1.000000e+00 : f32
      %353 = vector.broadcast %cst_50 : f32 to vector<2x256xf32>
      %354 = arith.addf %332, %353 : vector<2x256xf32>
      %cst_51 = arith.constant 1.500000e+00 : f32
      %355 = vector.broadcast %cst_51 : f32 to vector<2x256xf32>
      %356 = arith.mulf %354, %355 : vector<2x256xf32>
      %cst_52 = arith.constant 1.000000e+00 : f32
      %357 = vector.broadcast %cst_52 : f32 to vector<2x256xf32>
      %358 = arith.addf %335, %357 : vector<2x256xf32>
      %cst_53 = arith.constant 1.500000e+00 : f32
      %359 = vector.broadcast %cst_53 : f32 to vector<2x256xf32>
      %360 = arith.mulf %358, %359 : vector<2x256xf32>
      %361 = vector.shape_cast %352 : vector<2x256xf32> to vector<2x1x256xf32>
      %362 = vector.shape_cast %213 : vector<4x256xf32> to vector<1x4x256xf32>
      %363 = vector.broadcast %361 : vector<2x1x256xf32> to vector<2x4x256xf32>
      %364 = vector.broadcast %362 : vector<1x4x256xf32> to vector<2x4x256xf32>
      %365 = arith.subf %363, %364 : vector<2x4x256xf32>
      %366 = math.absf %365 : vector<2x4x256xf32>
      %cst_54 = arith.constant 1.000000e+00 : f32
      %367 = vector.broadcast %cst_54 : f32 to vector<2x4x256xf32>
      %368 = arith.subf %367, %366 : vector<2x4x256xf32>
      %cst_55 = arith.constant 0.000000e+00 : f32
      %369 = vector.broadcast %cst_55 : f32 to vector<2x4x256xf32>
      %370 = arith.maximumf %369, %368 : vector<2x4x256xf32>
      %371 = arith.truncf %370 : vector<2x4x256xf32> to vector<2x4x256xbf16>
      %372 = vector.shape_cast %356 : vector<2x256xf32> to vector<2x1x256xf32>
      %373 = vector.shape_cast %215 : vector<4x256xf32> to vector<1x4x256xf32>
      %374 = vector.broadcast %372 : vector<2x1x256xf32> to vector<2x4x256xf32>
      %375 = vector.broadcast %373 : vector<1x4x256xf32> to vector<2x4x256xf32>
      %376 = arith.subf %374, %375 : vector<2x4x256xf32>
      %377 = math.absf %376 : vector<2x4x256xf32>
      %cst_56 = arith.constant 1.000000e+00 : f32
      %378 = vector.broadcast %cst_56 : f32 to vector<2x4x256xf32>
      %379 = arith.subf %378, %377 : vector<2x4x256xf32>
      %cst_57 = arith.constant 0.000000e+00 : f32
      %380 = vector.broadcast %cst_57 : f32 to vector<2x4x256xf32>
      %381 = arith.maximumf %380, %379 : vector<2x4x256xf32>
      %382 = arith.truncf %381 : vector<2x4x256xf32> to vector<2x4x256xbf16>
      %383 = vector.shape_cast %360 : vector<2x256xf32> to vector<2x1x256xf32>
      %384 = vector.shape_cast %217 : vector<4x256xf32> to vector<1x4x256xf32>
      %385 = vector.broadcast %383 : vector<2x1x256xf32> to vector<2x4x256xf32>
      %386 = vector.broadcast %384 : vector<1x4x256xf32> to vector<2x4x256xf32>
      %387 = arith.subf %385, %386 : vector<2x4x256xf32>
      %388 = math.absf %387 : vector<2x4x256xf32>
      %cst_58 = arith.constant 1.000000e+00 : f32
      %389 = vector.broadcast %cst_58 : f32 to vector<2x4x256xf32>
      %390 = arith.subf %389, %388 : vector<2x4x256xf32>
      %cst_59 = arith.constant 0.000000e+00 : f32
      %391 = vector.broadcast %cst_59 : f32 to vector<2x4x256xf32>
      %392 = arith.maximumf %391, %390 : vector<2x4x256xf32>
      %393 = vector.shape_cast %348 : vector<2x256xi1> to vector<2x1x256xi1>
      %394 = arith.extui %393 : vector<2x1x256xi1> to vector<2x1x256xi32>
      %395 = arith.sitofp %394 : vector<2x1x256xi32> to vector<2x1x256xf32>
      %396 = vector.broadcast %395 : vector<2x1x256xf32> to vector<2x4x256xf32>
      %397 = arith.mulf %392, %396 : vector<2x4x256xf32>
      %398 = arith.truncf %397 : vector<2x4x256xf32> to vector<2x4x256xbf16>
      %399 = vector.shape_cast %398 : vector<2x4x256xbf16> to vector<2x4x1x256xbf16>
      %400 = vector.shape_cast %382 : vector<2x4x256xbf16> to vector<2x1x4x256xbf16>
      %401 = vector.broadcast %399 : vector<2x4x1x256xbf16> to vector<2x4x4x256xbf16>
      %402 = vector.broadcast %400 : vector<2x1x4x256xbf16> to vector<2x4x4x256xbf16>
      %403 = arith.mulf %401, %402 : vector<2x4x4x256xbf16>
      %404 = vector.shape_cast %403 : vector<2x4x4x256xbf16> to vector<2x4x4x1x256xbf16>
      %405 = vector.shape_cast %371 : vector<2x4x256xbf16> to vector<2x1x1x4x256xbf16>
      %406 = vector.broadcast %404 : vector<2x4x4x1x256xbf16> to vector<2x4x4x4x256xbf16>
      %407 = vector.broadcast %405 : vector<2x1x1x4x256xbf16> to vector<2x4x4x4x256xbf16>
      %408 = arith.mulf %406, %407 : vector<2x4x4x4x256xbf16>
      %409 = vector.shape_cast %408 : vector<2x4x4x4x256xbf16> to vector<128x256xbf16>
      %c0_60 = arith.constant 0 : index
      %c0_61 = arith.constant 0 : index
      %c128 = arith.constant 128 : index
      %410 = vector.load %arg9[%c0_60, %c0_61, %c128] : memref<1x4x256xbf16, #tpu.memory_space<vmem>>, vector<1x4x128xbf16>
      %411 = vector.shape_cast %410 : vector<1x4x128xbf16> to vector<4x128xbf16>
      %cst_62 = arith.constant dense<0.000000e+00> : vector<4x256xf32>
      %412 = tpu.matmul %411, %409, %cst_62 {dimension_numbers = #tpu.dot_dimension_numbers<[1], [0], [0], [1], [0, 0, 1, 1], [], []>} : vector<4x128xbf16>, vector<128x256xbf16>, vector<4x256xf32> -> vector<4x256xf32>
      %413 = arith.addf %326, %412 : vector<4x256xf32>
      %414 = vector.extract_strided_slice %arg12 {offsets = [3, 0], sizes = [1, 256], strides = [1, 1]} : vector<4x256xf32> to vector<1x256xf32>
      %415 = vector.extract_strided_slice %413 {offsets = [3, 0], sizes = [1, 256], strides = [1, 1]} : vector<4x256xf32> to vector<1x256xf32>
      %416 = vector.broadcast %cst_19 : f32 to vector<1x256xf32>
      %417 = arith.mulf %415, %416 : vector<1x256xf32>
      %418 = arith.addf %414, %417 : vector<1x256xf32>
      %cst_63 = arith.constant 1.000000e+00 : f32
      %419 = vector.broadcast %cst_63 : f32 to vector<1x256xf32>
      %420 = arith.minimumf %418, %419 : vector<1x256xf32>
      %421 = arith.subf %420, %414 : vector<1x256xf32>
      %cst_64 = arith.constant 1.000000e+00 : f32
      %422 = vector.broadcast %cst_64 : f32 to vector<4x256xf32>
      %423 = arith.select %220, %422, %413 : vector<4x256xi1>, vector<4x256xf32>
      %424 = vector.broadcast %421 : vector<1x256xf32> to vector<4x256xf32>
      %425 = arith.mulf %423, %424 : vector<4x256xf32>
      %426 = arith.addf %arg12, %425 : vector<4x256xf32>
      %cst_65 = arith.constant 1.000000e+00 : f32
      %427 = arith.addf %233, %cst_65 : f32
      %428 = arith.mulf %cst_19, %427 : f32
      %429 = vector.broadcast %428 : f32 to vector<1x256xf32>
      %430 = arith.addf %5, %429 : vector<1x256xf32>
      %431 = arith.cmpf olt, %430, %7 : vector<1x256xf32>
      %cst_66 = arith.constant 0.000000e+00 : f32
      %432 = vector.broadcast %cst_66 : f32 to vector<4x256xf32>
      %433 = vector.broadcast %430 : vector<1x256xf32> to vector<2x256xf32>
      %434 = arith.mulf %61, %433 : vector<2x256xf32>
      %435 = arith.addf %48, %434 : vector<2x256xf32>
      %436 = vector.broadcast %430 : vector<1x256xf32> to vector<2x256xf32>
      %437 = arith.mulf %88, %436 : vector<2x256xf32>
      %438 = arith.addf %75, %437 : vector<2x256xf32>
      %439 = vector.broadcast %430 : vector<1x256xf32> to vector<2x256xf32>
      %440 = arith.mulf %115, %439 : vector<2x256xf32>
      %441 = arith.addf %102, %440 : vector<2x256xf32>
      %442 = math.absf %435 : vector<2x256xf32>
      %cst_67 = arith.constant 1.000000e+00 : f32
      %443 = vector.broadcast %cst_67 : f32 to vector<2x256xf32>
      %444 = arith.cmpf ole, %442, %443 : vector<2x256xf32>
      %445 = math.absf %438 : vector<2x256xf32>
      %cst_68 = arith.constant 1.000000e+00 : f32
      %446 = vector.broadcast %cst_68 : f32 to vector<2x256xf32>
      %447 = arith.cmpf ole, %445, %446 : vector<2x256xf32>
      %448 = arith.andi %444, %447 : vector<2x256xi1>
      %449 = math.absf %441 : vector<2x256xf32>
      %cst_69 = arith.constant 1.000000e+00 : f32
      %450 = vector.broadcast %cst_69 : f32 to vector<2x256xf32>
      %451 = arith.cmpf ole, %449, %450 : vector<2x256xf32>
      %452 = arith.andi %448, %451 : vector<2x256xi1>
      %453 = vector.broadcast %431 : vector<1x256xi1> to vector<2x256xi1>
      %454 = arith.andi %452, %453 : vector<2x256xi1>
      %cst_70 = arith.constant 1.000000e+00 : f32
      %455 = vector.broadcast %cst_70 : f32 to vector<2x256xf32>
      %456 = arith.addf %435, %455 : vector<2x256xf32>
      %cst_71 = arith.constant 1.500000e+00 : f32
      %457 = vector.broadcast %cst_71 : f32 to vector<2x256xf32>
      %458 = arith.mulf %456, %457 : vector<2x256xf32>
      %cst_72 = arith.constant 1.000000e+00 : f32
      %459 = vector.broadcast %cst_72 : f32 to vector<2x256xf32>
      %460 = arith.addf %438, %459 : vector<2x256xf32>
      %cst_73 = arith.constant 1.500000e+00 : f32
      %461 = vector.broadcast %cst_73 : f32 to vector<2x256xf32>
      %462 = arith.mulf %460, %461 : vector<2x256xf32>
      %cst_74 = arith.constant 1.000000e+00 : f32
      %463 = vector.broadcast %cst_74 : f32 to vector<2x256xf32>
      %464 = arith.addf %441, %463 : vector<2x256xf32>
      %cst_75 = arith.constant 1.500000e+00 : f32
      %465 = vector.broadcast %cst_75 : f32 to vector<2x256xf32>
      %466 = arith.mulf %464, %465 : vector<2x256xf32>
      %467 = vector.shape_cast %458 : vector<2x256xf32> to vector<2x1x256xf32>
      %468 = vector.shape_cast %213 : vector<4x256xf32> to vector<1x4x256xf32>
      %469 = vector.broadcast %467 : vector<2x1x256xf32> to vector<2x4x256xf32>
      %470 = vector.broadcast %468 : vector<1x4x256xf32> to vector<2x4x256xf32>
      %471 = arith.subf %469, %470 : vector<2x4x256xf32>
      %472 = math.absf %471 : vector<2x4x256xf32>
      %cst_76 = arith.constant 1.000000e+00 : f32
      %473 = vector.broadcast %cst_76 : f32 to vector<2x4x256xf32>
      %474 = arith.subf %473, %472 : vector<2x4x256xf32>
      %cst_77 = arith.constant 0.000000e+00 : f32
      %475 = vector.broadcast %cst_77 : f32 to vector<2x4x256xf32>
      %476 = arith.maximumf %475, %474 : vector<2x4x256xf32>
      %477 = arith.truncf %476 : vector<2x4x256xf32> to vector<2x4x256xbf16>
      %478 = vector.shape_cast %462 : vector<2x256xf32> to vector<2x1x256xf32>
      %479 = vector.shape_cast %215 : vector<4x256xf32> to vector<1x4x256xf32>
      %480 = vector.broadcast %478 : vector<2x1x256xf32> to vector<2x4x256xf32>
      %481 = vector.broadcast %479 : vector<1x4x256xf32> to vector<2x4x256xf32>
      %482 = arith.subf %480, %481 : vector<2x4x256xf32>
      %483 = math.absf %482 : vector<2x4x256xf32>
      %cst_78 = arith.constant 1.000000e+00 : f32
      %484 = vector.broadcast %cst_78 : f32 to vector<2x4x256xf32>
      %485 = arith.subf %484, %483 : vector<2x4x256xf32>
      %cst_79 = arith.constant 0.000000e+00 : f32
      %486 = vector.broadcast %cst_79 : f32 to vector<2x4x256xf32>
      %487 = arith.maximumf %486, %485 : vector<2x4x256xf32>
      %488 = arith.truncf %487 : vector<2x4x256xf32> to vector<2x4x256xbf16>
      %489 = vector.shape_cast %466 : vector<2x256xf32> to vector<2x1x256xf32>
      %490 = vector.shape_cast %217 : vector<4x256xf32> to vector<1x4x256xf32>
      %491 = vector.broadcast %489 : vector<2x1x256xf32> to vector<2x4x256xf32>
      %492 = vector.broadcast %490 : vector<1x4x256xf32> to vector<2x4x256xf32>
      %493 = arith.subf %491, %492 : vector<2x4x256xf32>
      %494 = math.absf %493 : vector<2x4x256xf32>
      %cst_80 = arith.constant 1.000000e+00 : f32
      %495 = vector.broadcast %cst_80 : f32 to vector<2x4x256xf32>
      %496 = arith.subf %495, %494 : vector<2x4x256xf32>
      %cst_81 = arith.constant 0.000000e+00 : f32
      %497 = vector.broadcast %cst_81 : f32 to vector<2x4x256xf32>
      %498 = arith.maximumf %497, %496 : vector<2x4x256xf32>
      %499 = vector.shape_cast %454 : vector<2x256xi1> to vector<2x1x256xi1>
      %500 = arith.extui %499 : vector<2x1x256xi1> to vector<2x1x256xi32>
      %501 = arith.sitofp %500 : vector<2x1x256xi32> to vector<2x1x256xf32>
      %502 = vector.broadcast %501 : vector<2x1x256xf32> to vector<2x4x256xf32>
      %503 = arith.mulf %498, %502 : vector<2x4x256xf32>
      %504 = arith.truncf %503 : vector<2x4x256xf32> to vector<2x4x256xbf16>
      %505 = vector.shape_cast %504 : vector<2x4x256xbf16> to vector<2x4x1x256xbf16>
      %506 = vector.shape_cast %488 : vector<2x4x256xbf16> to vector<2x1x4x256xbf16>
      %507 = vector.broadcast %505 : vector<2x4x1x256xbf16> to vector<2x4x4x256xbf16>
      %508 = vector.broadcast %506 : vector<2x1x4x256xbf16> to vector<2x4x4x256xbf16>
      %509 = arith.mulf %507, %508 : vector<2x4x4x256xbf16>
      %510 = vector.shape_cast %509 : vector<2x4x4x256xbf16> to vector<2x4x4x1x256xbf16>
      %511 = vector.shape_cast %477 : vector<2x4x256xbf16> to vector<2x1x1x4x256xbf16>
      %512 = vector.broadcast %510 : vector<2x4x4x1x256xbf16> to vector<2x4x4x4x256xbf16>
      %513 = vector.broadcast %511 : vector<2x1x1x4x256xbf16> to vector<2x4x4x4x256xbf16>
      %514 = arith.mulf %512, %513 : vector<2x4x4x4x256xbf16>
      %515 = vector.shape_cast %514 : vector<2x4x4x4x256xbf16> to vector<128x256xbf16>
      %c0_82 = arith.constant 0 : index
      %c0_83 = arith.constant 0 : index
      %c0_84 = arith.constant 0 : index
      %516 = vector.load %arg9[%c0_82, %c0_83, %c0_84] : memref<1x4x256xbf16, #tpu.memory_space<vmem>>, vector<1x4x128xbf16>
      %517 = vector.shape_cast %516 : vector<1x4x128xbf16> to vector<4x128xbf16>
      %cst_85 = arith.constant dense<0.000000e+00> : vector<4x256xf32>
      %518 = tpu.matmul %517, %515, %cst_85 {dimension_numbers = #tpu.dot_dimension_numbers<[1], [0], [0], [1], [0, 0, 1, 1], [], []>} : vector<4x128xbf16>, vector<128x256xbf16>, vector<4x256xf32> -> vector<4x256xf32>
      %519 = arith.addf %432, %518 : vector<4x256xf32>
      %520 = vector.broadcast %430 : vector<1x256xf32> to vector<2x256xf32>
      %521 = arith.mulf %157, %520 : vector<2x256xf32>
      %522 = arith.addf %144, %521 : vector<2x256xf32>
      %523 = vector.broadcast %430 : vector<1x256xf32> to vector<2x256xf32>
      %524 = arith.mulf %184, %523 : vector<2x256xf32>
      %525 = arith.addf %171, %524 : vector<2x256xf32>
      %526 = vector.broadcast %430 : vector<1x256xf32> to vector<2x256xf32>
      %527 = arith.mulf %211, %526 : vector<2x256xf32>
      %528 = arith.addf %198, %527 : vector<2x256xf32>
      %529 = math.absf %522 : vector<2x256xf32>
      %cst_86 = arith.constant 1.000000e+00 : f32
      %530 = vector.broadcast %cst_86 : f32 to vector<2x256xf32>
      %531 = arith.cmpf ole, %529, %530 : vector<2x256xf32>
      %532 = math.absf %525 : vector<2x256xf32>
      %cst_87 = arith.constant 1.000000e+00 : f32
      %533 = vector.broadcast %cst_87 : f32 to vector<2x256xf32>
      %534 = arith.cmpf ole, %532, %533 : vector<2x256xf32>
      %535 = arith.andi %531, %534 : vector<2x256xi1>
      %536 = math.absf %528 : vector<2x256xf32>
      %cst_88 = arith.constant 1.000000e+00 : f32
      %537 = vector.broadcast %cst_88 : f32 to vector<2x256xf32>
      %538 = arith.cmpf ole, %536, %537 : vector<2x256xf32>
      %539 = arith.andi %535, %538 : vector<2x256xi1>
      %540 = vector.broadcast %431 : vector<1x256xi1> to vector<2x256xi1>
      %541 = arith.andi %539, %540 : vector<2x256xi1>
      %cst_89 = arith.constant 1.000000e+00 : f32
      %542 = vector.broadcast %cst_89 : f32 to vector<2x256xf32>
      %543 = arith.addf %522, %542 : vector<2x256xf32>
      %cst_90 = arith.constant 1.500000e+00 : f32
      %544 = vector.broadcast %cst_90 : f32 to vector<2x256xf32>
      %545 = arith.mulf %543, %544 : vector<2x256xf32>
      %cst_91 = arith.constant 1.000000e+00 : f32
      %546 = vector.broadcast %cst_91 : f32 to vector<2x256xf32>
      %547 = arith.addf %525, %546 : vector<2x256xf32>
      %cst_92 = arith.constant 1.500000e+00 : f32
      %548 = vector.broadcast %cst_92 : f32 to vector<2x256xf32>
      %549 = arith.mulf %547, %548 : vector<2x256xf32>
      %cst_93 = arith.constant 1.000000e+00 : f32
      %550 = vector.broadcast %cst_93 : f32 to vector<2x256xf32>
      %551 = arith.addf %528, %550 : vector<2x256xf32>
      %cst_94 = arith.constant 1.500000e+00 : f32
      %552 = vector.broadcast %cst_94 : f32 to vector<2x256xf32>
      %553 = arith.mulf %551, %552 : vector<2x256xf32>
      %554 = vector.shape_cast %545 : vector<2x256xf32> to vector<2x1x256xf32>
      %555 = vector.shape_cast %213 : vector<4x256xf32> to vector<1x4x256xf32>
      %556 = vector.broadcast %554 : vector<2x1x256xf32> to vector<2x4x256xf32>
      %557 = vector.broadcast %555 : vector<1x4x256xf32> to vector<2x4x256xf32>
      %558 = arith.subf %556, %557 : vector<2x4x256xf32>
      %559 = math.absf %558 : vector<2x4x256xf32>
      %cst_95 = arith.constant 1.000000e+00 : f32
      %560 = vector.broadcast %cst_95 : f32 to vector<2x4x256xf32>
      %561 = arith.subf %560, %559 : vector<2x4x256xf32>
      %cst_96 = arith.constant 0.000000e+00 : f32
      %562 = vector.broadcast %cst_96 : f32 to vector<2x4x256xf32>
      %563 = arith.maximumf %562, %561 : vector<2x4x256xf32>
      %564 = arith.truncf %563 : vector<2x4x256xf32> to vector<2x4x256xbf16>
      %565 = vector.shape_cast %549 : vector<2x256xf32> to vector<2x1x256xf32>
      %566 = vector.shape_cast %215 : vector<4x256xf32> to vector<1x4x256xf32>
      %567 = vector.broadcast %565 : vector<2x1x256xf32> to vector<2x4x256xf32>
      %568 = vector.broadcast %566 : vector<1x4x256xf32> to vector<2x4x256xf32>
      %569 = arith.subf %567, %568 : vector<2x4x256xf32>
      %570 = math.absf %569 : vector<2x4x256xf32>
      %cst_97 = arith.constant 1.000000e+00 : f32
      %571 = vector.broadcast %cst_97 : f32 to vector<2x4x256xf32>
      %572 = arith.subf %571, %570 : vector<2x4x256xf32>
      %cst_98 = arith.constant 0.000000e+00 : f32
      %573 = vector.broadcast %cst_98 : f32 to vector<2x4x256xf32>
      %574 = arith.maximumf %573, %572 : vector<2x4x256xf32>
      %575 = arith.truncf %574 : vector<2x4x256xf32> to vector<2x4x256xbf16>
      %576 = vector.shape_cast %553 : vector<2x256xf32> to vector<2x1x256xf32>
      %577 = vector.shape_cast %217 : vector<4x256xf32> to vector<1x4x256xf32>
      %578 = vector.broadcast %576 : vector<2x1x256xf32> to vector<2x4x256xf32>
      %579 = vector.broadcast %577 : vector<1x4x256xf32> to vector<2x4x256xf32>
      %580 = arith.subf %578, %579 : vector<2x4x256xf32>
      %581 = math.absf %580 : vector<2x4x256xf32>
      %cst_99 = arith.constant 1.000000e+00 : f32
      %582 = vector.broadcast %cst_99 : f32 to vector<2x4x256xf32>
      %583 = arith.subf %582, %581 : vector<2x4x256xf32>
      %cst_100 = arith.constant 0.000000e+00 : f32
      %584 = vector.broadcast %cst_100 : f32 to vector<2x4x256xf32>
      %585 = arith.maximumf %584, %583 : vector<2x4x256xf32>
      %586 = vector.shape_cast %541 : vector<2x256xi1> to vector<2x1x256xi1>
      %587 = arith.extui %586 : vector<2x1x256xi1> to vector<2x1x256xi32>
      %588 = arith.sitofp %587 : vector<2x1x256xi32> to vector<2x1x256xf32>
      %589 = vector.broadcast %588 : vector<2x1x256xf32> to vector<2x4x256xf32>
      %590 = arith.mulf %585, %589 : vector<2x4x256xf32>
      %591 = arith.truncf %590 : vector<2x4x256xf32> to vector<2x4x256xbf16>
      %592 = vector.shape_cast %591 : vector<2x4x256xbf16> to vector<2x4x1x256xbf16>
      %593 = vector.shape_cast %575 : vector<2x4x256xbf16> to vector<2x1x4x256xbf16>
      %594 = vector.broadcast %592 : vector<2x4x1x256xbf16> to vector<2x4x4x256xbf16>
      %595 = vector.broadcast %593 : vector<2x1x4x256xbf16> to vector<2x4x4x256xbf16>
      %596 = arith.mulf %594, %595 : vector<2x4x4x256xbf16>
      %597 = vector.shape_cast %596 : vector<2x4x4x256xbf16> to vector<2x4x4x1x256xbf16>
      %598 = vector.shape_cast %564 : vector<2x4x256xbf16> to vector<2x1x1x4x256xbf16>
      %599 = vector.broadcast %597 : vector<2x4x4x1x256xbf16> to vector<2x4x4x4x256xbf16>
      %600 = vector.broadcast %598 : vector<2x1x1x4x256xbf16> to vector<2x4x4x4x256xbf16>
      %601 = arith.mulf %599, %600 : vector<2x4x4x4x256xbf16>
      %602 = vector.shape_cast %601 : vector<2x4x4x4x256xbf16> to vector<128x256xbf16>
      %c0_101 = arith.constant 0 : index
      %c0_102 = arith.constant 0 : index
      %c128_103 = arith.constant 128 : index
      %603 = vector.load %arg9[%c0_101, %c0_102, %c128_103] : memref<1x4x256xbf16, #tpu.memory_space<vmem>>, vector<1x4x128xbf16>
      %604 = vector.shape_cast %603 : vector<1x4x128xbf16> to vector<4x128xbf16>
      %cst_104 = arith.constant dense<0.000000e+00> : vector<4x256xf32>
      %605 = tpu.matmul %604, %602, %cst_104 {dimension_numbers = #tpu.dot_dimension_numbers<[1], [0], [0], [1], [0, 0, 1, 1], [], []>} : vector<4x128xbf16>, vector<128x256xbf16>, vector<4x256xf32> -> vector<4x256xf32>
      %606 = arith.addf %519, %605 : vector<4x256xf32>
      %607 = vector.extract_strided_slice %426 {offsets = [3, 0], sizes = [1, 256], strides = [1, 1]} : vector<4x256xf32> to vector<1x256xf32>
      %608 = vector.extract_strided_slice %606 {offsets = [3, 0], sizes = [1, 256], strides = [1, 1]} : vector<4x256xf32> to vector<1x256xf32>
      %609 = vector.broadcast %cst_19 : f32 to vector<1x256xf32>
      %610 = arith.mulf %608, %609 : vector<1x256xf32>
      %611 = arith.addf %607, %610 : vector<1x256xf32>
      %cst_105 = arith.constant 1.000000e+00 : f32
      %612 = vector.broadcast %cst_105 : f32 to vector<1x256xf32>
      %613 = arith.minimumf %611, %612 : vector<1x256xf32>
      %614 = arith.subf %613, %607 : vector<1x256xf32>
      %cst_106 = arith.constant 1.000000e+00 : f32
      %615 = vector.broadcast %cst_106 : f32 to vector<4x256xf32>
      %616 = arith.select %220, %615, %606 : vector<4x256xi1>, vector<4x256xf32>
      %617 = vector.broadcast %614 : vector<1x256xf32> to vector<4x256xf32>
      %618 = arith.mulf %616, %617 : vector<4x256xf32>
      %619 = arith.addf %426, %618 : vector<4x256xf32>
      scf.yield %619 : vector<4x256xf32>
    }
    %c0_21 = arith.constant 0 : index
    %c0_22 = arith.constant 0 : index
    %c0_23 = arith.constant 0 : index
    %229 = vector.load %arg10[%c0_21, %c0_22, %c0_23] : memref<1x4x256xf32, #tpu.memory_space<vmem>>, vector<1x4x256xf32>
    %230 = vector.shape_cast %229 : vector<1x4x256xf32> to vector<4x256xf32>
    %231 = vector.shape_cast %228 : vector<4x256xf32> to vector<1x4x256xf32>
    tpu.vector_store %arg10[%c0_21, %c0_22, %c0_23], %231 {strides = array<i32>} : memref<1x4x256xf32, #tpu.memory_space<vmem>>, vector<1x4x256xf32>,
    return
  }
  func.func @transform_0(%arg0: i32, %arg1: i32) -> i32 {
    %c0_i32 = arith.constant 0 : i32
    %c0_i32_0 = arith.constant 0 : i32
    return %c0_i32 : i32
  }
  func.func @transform_1(%arg0: i32, %arg1: i32) -> (i32, i32, i32) {
    %c0_i32 = arith.constant 0 : i32
    %c0_i32_0 = arith.constant 0 : i32
    %c0_i32_1 = arith.constant 0 : i32
    return %arg0, %c0_i32, %c0_i32_0 : i32, i32, i32
  }
  func.func @transform_2(%arg0: i32, %arg1: i32) -> (i32, i32, i32) {
    %c0_i32 = arith.constant 0 : i32
    %c0_i32_0 = arith.constant 0 : i32
    %c0_i32_1 = arith.constant 0 : i32
    return %arg0, %c0_i32, %c0_i32_0 : i32, i32, i32
  }
  func.func @transform_3(%arg0: i32, %arg1: i32) -> (i32, i32, i32) {
    %c0_i32 = arith.constant 0 : i32
    %c0_i32_0 = arith.constant 0 : i32
    %c0_i32_1 = arith.constant 0 : i32
    return %arg0, %c0_i32, %c0_i32_0 : i32, i32, i32
  }
  func.func @transform_4(%arg0: i32, %arg1: i32) -> (i32, i32, i32) {
    %c0_i32 = arith.constant 0 : i32
    %c0_i32_0 = arith.constant 0 : i32
    return %arg0, %c0_i32, %arg1 : i32, i32, i32
  }
  func.func @transform_5(%arg0: i32, %arg1: i32) -> (i32, i32, i32) {
    %c0_i32 = arith.constant 0 : i32
    %c0_i32_0 = arith.constant 0 : i32
    return %arg0, %c0_i32, %arg1 : i32, i32, i32
  }
  func.func @transform_6(%arg0: i32, %arg1: i32) -> (i32, i32, i32) {
    %c0_i32 = arith.constant 0 : i32
    %c0_i32_0 = arith.constant 0 : i32
    return %arg0, %c0_i32, %arg1 : i32, i32, i32
  }
  func.func @transform_7(%arg0: i32, %arg1: i32) -> (i32, i32, i32) {
    %c0_i32 = arith.constant 0 : i32
    %c0_i32_0 = arith.constant 0 : i32
    %c0_i32_1 = arith.constant 0 : i32
    return %arg0, %c0_i32, %c0_i32_0 : i32, i32, i32
  }
  func.func @transform_8(%arg0: i32, %arg1: i32) -> (i32, i32, i32) {
    %c0_i32 = arith.constant 0 : i32
    %c0_i32_0 = arith.constant 0 : i32
    return %arg0, %c0_i32, %arg1 : i32, i32, i32
  }
}

</mosaic_0001>

<bundles_post_ra>
// kernel: tpu_custom_call.1
= control target key start
LH: loop header
LB: loop body
LE: loop exit
PB: predicated region body
PF: predicated region fallthrough
CT: control target
= control target key end

     0   :  { %s12126_s0 = inlined_call_operand.vmem [shape: s32[2], index: 0, kind: input, shape index: {}]   ;;  %s12127_s1 = inlined_call_operand.vmem [shape: f32[2,4,3], index: 1, kind: input, shape index: {}]   ;;  %s12128_s2 = inlined_call_operand.vmem [shape: f32[2,4,9], index: 2, kind: input, shape index: {}]   ;;  %s12129_s3 = inlined_call_operand.vmem [shape: f32[2,4,3], index: 3, kind: input, shape index: {}]   ;;  %s12130_s4 = inlined_call_operand.vmem [shape: f32[2,3,256], index: 4, kind: input, shape index: {}]   ;;  %s12131_s5 = inlined_call_operand.vmem [shape: f32[2,3,256], index: 5, kind: input, shape index: {}]   ;;  %s12132_s6 = inlined_call_operand.vmem [shape: f32[2,2,256], index: 6, kind: input, shape index: {}]   ;;  %s12133_s7 = inlined_call_operand.vmem [shape: bf16[2,4,256], index: 7, kind: input, shape index: {}]   ;;  %s12134_s8 = inlined_call_operand.hbm [shape: f32[2,4,256], index: 8, kind: output, shape index: {}]  }
   0x1   :  { %12151 = sst [smem:[#allocation19_spill]] %s12126_s0 }
   0x2   :  { %13 = vsyncpa [#allocation4], 0 }
   0x3   :  { %14 = vsyncpa [#allocation3], 0 }
   0x4   :  { %16 = vsyncpa [#allocation3 + $0x1], 0  ;;  %s9686_s27 = smov 0   ;;  %s9688_s28 = smov 0  }
   0x5   :  { %s9690_s29 = smov 0   ;;  %s9692_s30 = smov 0  }
   0x6   :  { %s9694_s9 = smov 0   ;;  %s9696_s10 = smov 0  }
   0x7 LB: > { %s9225_s11 = sadd.s32 4294967295, %s9604_s10   ;;  %s9226_s12 = sadd.s32 4294967294, %s9604_s10   ;;  %s9604_s10 = sphi %s9696_s10, %s22_s10   ;;  %s9600_s9 = sphi %s9694_s9, %s12238_s9   ;;  %s9596_s30 = sphi %s9692_s30, %s12237_s30   ;;  %s9592_s29 = sphi %s9690_s29, %s12236_s29   ;;  %s9588_s28 = sphi %s9688_s28, %s12235_s28   ;;  %s9584_s27 = sphi %s9686_s27, %s12234_s27  }
   0x8   : > { %s34_s13 = sadd.s32 1, %s9600_s9  ;;  %s252_s14 = sadd.s32 1, %s9592_s29 }
   0x9   : > { %p36_p0 = scmp.ge.s32.totalorder %s34_s13, 2  ;;  %p262_p1 = scmp.ne.s32.totalorder %s9592_s29, %s9588_s28 }
   0xa   : > { %p263_p2 = scmp.eq.s32.totalorder %s9225_s11, 1  ;;  %p268_p3 = scmp.ne.s32.totalorder %s9588_s28, %s9584_s27 }
   0xb   : > { %s12240_s13 = smov (%p36_p0, %s34_s13), 0  ;;  %p269_p5 = scmp.eq.s32.totalorder %s9226_s12, 1 }
   0xc   : > { %12152 = sst [smem:[#allocation8_spill]] %s12240_s13  ;;  %p9726_p4 = por %p263_p2, %p262_p1 }
   0xd   : > { %s247_s16 = ssub.s32 %s9600_s9, %s12240_s13  ;;  %p9227_p6 = scmp.ge.s32.totalorder %s9604_s10, 1 }
   0xe   : > { %p250_p7 = scmp.eq.s32.totalorder %s247_s16, 0  ;;  %p9733_p8 = por %p269_p5, %p268_p3 }
   0xf   : > { %p276_p9 = scmp.lt.s32.totalorder %s9604_s10, 3  ;;  %p9745_p11 = scmp.eq.s32.totalorder %s9225_s11, 0 }
  0x10   : > { %s9739_s18 = scalar_select %p250_p7, %s9592_s29, %s252_s14  }
  0x11   : > { %p9741_p10 = pnand %p9227_p6, %p276_p9  ;;  %s12157_s0 = sld [smem:[#allocation19_spill]] }
  0x13   : > { %p9359_p12 = pneg %p9741_p10 }
  0x15   : > { %p9360_p13 = pnand %p9745_p11, %p9359_p12 }
  0x17   : > { %s289_s23 = sshll.u32 %s12157_s0, 4  ;;  %p9491_p1 = pneg %p9360_p13  ;;  %s290_s23 = int_to_ptr.vmem [resolvable:$true] %s289_s23 }
  0x18   : > { %s9489_s24 = scalar_lea.vmem %s290_s23, 16  ;;  %p9497_p5 = scmp.lt.s32.totalorder %s290_s23, %s290_s23 }
  0x19   : > { %p9490_p0 = scmp.ne.s32.totalorder %s290_s23, %s9489_s24  ;;  %p9498_p6 = scmp.lt.s32.totalorder %s9489_s24, %s9489_s24 }
  0x1b   : > { %p9492_p2 = pnand %p9491_p1, %p9490_p0  ;;  %p9499_p7 = por %p9498_p6, %p9497_p5 }
  0x1d   : > { %p9493_p3 = pneg %p9492_p2 }
  0x1f   : > { %p9500_p9 = pnand %p9499_p7, %p9493_p3 }
  0x21   : > { %9503 = shalt.err (!%p9500_p9)
}
  0x22   : > { %s9626_s25 = smov [#allocation2]   ;;  %370 = sbr.rel (%p9741_p10) target bundleno = 1157 (0x485), region = 52 }
  0x23   : > { %9362 = dma.vmem_to_smem (!%p9360_p13), %s290_s23, 16, %s9626_s25, [#allocation4]  }
  0x27   : > { %9575 = dma.done.wait (%p9745_p11), [#allocation4], 16  }
  0x28   : > { %9577 = vsyncadd (%p9745_p11), [#allocation4], 4294967280 }
  0x29   : > { %376 = sfence }
  0x2a   : > { %p444_p12 = scmp.lt.s32.totalorder %s9596_s30, 1  ;;  %v9627_v0 = vmov 2   ;;  %v9628_v1 = vmov 0   ;;  %v502_v2 = vlaneseq  ;;  %v9629_v9 = vmov 1   ;;  %s9807_s19 = sld [smem:[#allocation2 + %s9596_s30]] }
  0x2b   : > { %9474 = vset.pattern.permute.xlu1 %v9627_v0  ;;  %9472 = vset.pattern.permute.xlu0 %v9628_v1  ;;  %v9630_v10 = vmov 3   ;;  %v9631_v11 = vmov 4   ;;  %v9632_v12 = vmov 7   ;;  %v9633_v13 = vmov 5  }
  0x2c   : > { %s9764_s26 = scalar_select %p444_p12, %s9596_s30, 1  ;;  %v9769_v3 = vshrl.u32 %v502_v2, 7  ;;  %v9634_v15 = vmov 6   ;;  %v9635_v16 = vmov 8  }
  0x2e   : > { %s9767_s11 = sshll.u32 %s9764_s26, 2  ;;  %12158 = vst [vmem:[#allocation9_spill] sm:$0xff] %v9769_v3  ;;  %v9780_v5 = vcvt.s32.f32 %v9769_v3  ;;  %vm755_vm0 = vcmp.eq.s32.totalorder %v9769_v3, 3  ;;  %s9348_s20 = sshll.u32 %s9764_s26, 3  ;;  %v9814_v19 = vsub.s32 0, %v9769_v3  ;;  %v508_v20 = vsub.s32 4, %v9769_v3 }
  0x2f   : > { %s447_s16 = scalar_lea.vmem %s12127_s1, %s9767_s11  ;;  %s451_s21 = scalar_lea.vmem %s12128_s2, %s9767_s11  ;;  %v9821_v21 = vsub.s32 1, %v9769_v3  ;;  %v533_v22 = vsub.s32 5, %v9769_v3  ;;  %v553_v24 = vsub.s32 2, %v9769_v3  ;;  %v557_v25 = vsub.s32 6, %v9769_v3 }
  0x30   : > { %v498_v4 = vld [vmem:[%s447_s16] sm:$0xf]  ;;  %12159 = vst [vmem:[#allocation10_spill] sm:$0xff] %v9780_v5  ;;  %s484_s24 = scalar_lea.vmem %s12132_s6, %s9767_s11  ;;  %s9790_s13 = scalar_lea.vmem %s12133_s7, %s9767_s11 }
  0x31   : > { %570 = vperm.xlu1 %9474, %v498_v4   ;;  %522 = vperm.xlu0 %9472, %v498_v4   ;;  %v9793_v6 = vld [vmem:[%s484_s24] ss:$2 sm:$0x3]  ;;  %v9795_v7 = vld [vmem:[%s484_s24 + $0x1] ss:$2 sm:$0x3]  ;;  %s455_s14 = scalar_lea.vmem %s12129_s3, %s9767_s11  ;;  %s464_s23 = scalar_lea.vmem %s12130_s4, %s9348_s20 }
  0x32   : > { %12160 = vst [vmem:[#allocation11_spill] sm:$0xff] %v9793_v6  ;;  %v499_v8 = vld [vmem:[%s451_s21] sm:$0xf]  ;;  %s441_s11 = sand.u32 1, %s9588_s28   ;;  %s474_s0 = scalar_lea.vmem %s12131_s5, %s9348_s20 }
  0x33   : > { %v500_v14 = vld [vmem:[%s455_s14] sm:$0xf]  ;;  %s9804_s16 = sshll.u32 %s441_s11, 3  ;;  %p9245_p10 = scmp.le.s32.totalorder %s9807_s19, 0 }
  0x34   : > { %v493_v23 = vld [vmem:[%s464_s23] sm:$0x77]  ;;  %s443_s26 = scalar_lea.vmem [#allocation5], %s9804_s16  ;;  %s9888_s12 = smov (!%p9245_p10), 0  }
  0x35   : > { %9475 = vset.pattern.permute.xlu1 %v9628_v1  ;;  %9473 = vset.pattern.permute.xlu0 %v9629_v9  ;;  %v494_v26 = vld [vmem:[%s474_s0] sm:$0x77]  ;;  %v505_v27 = vrot.slane %v493_v23, %v9814_v19  ;;  %v509_v28 = vrot.slane %v493_v23, %v508_v20  ;;  %v530_v31 = vrot.slane %v493_v23, %v9821_v21 }
  0x36   : > { %577 = vperm.xlu1 %9475, %v499_v8   ;;  %546 = vperm.xlu0 %9473, %v498_v4   ;;  %v534_v32 = vrot.slane %v493_v23, %v533_v22  ;;  %v554_v33 = vrot.slane %v493_v23, %v553_v24  ;;  %v558_v34 = vrot.slane %v493_v23, %v557_v25 }
  0x37   : > { %v613_v35 = vrot.slane %v494_v26, %v508_v20  ;;  %v609_v36 = vrot.slane %v494_v26, %v9814_v19  ;;  %v515_v37 = vrot.slane %v505_v27, %v9814_v19  ;;  %v519_v38 = vrot.slane %v509_v28, %v9814_v19 }
  0x38   : > { %v633_v39 = vrot.slane %v494_v26, %v533_v22  ;;  %v629_v40 = vrot.slane %v494_v26, %v9821_v21  ;;  %v655_v42 = vrot.slane %v494_v26, %v557_v25  ;;  %v540_v43 = vrot.slane %v530_v31, %v9821_v21 }
  0x39   : > { %v544_v44 = vrot.slane %v534_v32, %v9821_v21  ;;  %v651_v46 = vrot.slane %v494_v26, %v553_v24  ;;  %v564_v47 = vrot.slane %v554_v33, %v553_v24  ;;  %v568_v48 = vrot.slane %v558_v34, %v553_v24 }
  0x3a   : > { %9476 = vset.pattern.permute.xlu1 %v9630_v10  ;;  %673 = vperm.xlu0 %9473, %v499_v8   ;;  %v619_v49 = vrot.slane %v609_v36, %v9814_v19  ;;  %v623_v50 = vrot.slane %v613_v35, %v9814_v19  ;;  %v639_v53 = vrot.slane %v629_v40, %v9821_v21 }
  0x3b   : > { %583 = vperm.xlu1 %9476, %v499_v8   ;;  %v643_v54 = vrot.slane %v633_v39, %v9821_v21  ;;  %v9840_v58 = vrot.slane %v651_v46, %v553_v24  ;;  %v9842_v59 = vrot.slane %v655_v42, %v553_v24 }
  0x3e   : > { %9478 = vset.pattern.permute.xlu0 %v9627_v0 }
  0x3f   : > { %9477 = vset.pattern.permute.xlu1 %v9631_v11  ;;  %713 = vperm.xlu0 %9478, %v499_v8  }
  0x40   : > { %679 = vperm.xlu1 %9477, %v499_v8  }
  0x43   : > { %9481 = vset.pattern.permute.xlu0 %v9632_v12 }
  0x44   : > { %9479 = vset.pattern.permute.xlu1 %v9633_v13  ;;  %687 = vperm.xlu0 %9481, %v499_v8  }
  0x45   : > { %719 = vperm.xlu1 %9479, %v499_v8  }
  0x48   : > { %9484 = vset.pattern.permute.xlu0 %v9629_v9 }
  0x49   : > { %9480 = vset.pattern.permute.xlu1 %v9634_v15  ;;  %695 = vperm.xlu0 %9484, %v500_v14  }
  0x4a   : > { %591 = vperm.xlu1 %9480, %v499_v8  }
  0x4d   : > { %9486 = vset.pattern.permute.xlu0 %v9627_v0 }
  0x4e   : > { %9482 = vset.pattern.permute.xlu1 %v9635_v16 }
  0x4f   : > { %727 = vperm.xlu1 %9482, %v499_v8  }
  0x53   : > { %9483 = vset.pattern.permute.xlu1 %v9628_v1 }
  0x54   : > { %600 = vperm.xlu1 %9483, %v500_v14  }
  0x58   : > { %9485 = vset.pattern.permute.xlu1 %v9627_v0 }
  0x59   : > { %735 = vperm.xlu1 %9485, %v500_v14  }
  0xac   : > { %v571_v17 = vpop.permute.xlu1 %570  ;;  %v523_v18 = vpop.permute.xlu0 %522 }
  0xad   : > { %v525_v51 = vsub.f32 %v515_v37, %v523_v18  ;;  %v526_v52 = vsub.f32 %v519_v38, %v523_v18  ;;  %v573_v9 = vsub.f32 %v564_v47, %v571_v17  ;;  %v574_v10 = vsub.f32 %v568_v48, %v571_v17 }
  0xb1   : > { %v9827_v29 = vpop.permute.xlu1 %577  ;;  %v547_v30 = vpop.permute.xlu0 %546 }
  0xb2   : > { %v549_v55 = vsub.f32 %v540_v43, %v547_v30  ;;  %v550_v56 = vsub.f32 %v544_v44, %v547_v30  ;;  %v580_v38 = vmul.f32 %v9827_v29, %v525_v51  ;;  %v581_v39 = vmul.f32 %v9827_v29, %v526_v52 }
  0xb3   : > { %v624_v40 = vmul.f32 %v619_v49, %v9827_v29 }
  0xb5   : > { %v674_v41 = vpop.permute.xlu0 %673 }
  0xb6   : > { %v584_v45 = vpop.permute.xlu1 %583  ;;  %v676_v60 = vmul.f32 %v674_v41, %v525_v51  ;;  %v677_v61 = vmul.f32 %v674_v41, %v526_v52  ;;  %v700_v62 = vmul.f32 %v674_v41, %v619_v49  ;;  %v701_v63 = vmul.f32 %v674_v41, %v623_v50 }
  0xb7   : > { %v586_v34 = vmul.f32 %v584_v45, %v549_v55  ;;  %v587_v35 = vmul.f32 %v584_v45, %v550_v56  ;;  %v644_v36 = vmul.f32 %v639_v53, %v584_v45  ;;  %v645_v37 = vmul.f32 %v643_v54, %v584_v45 }
  0xb8   : > { %v625_v41 = vmul.f32 %v623_v50, %v9827_v29 }
  0xb9   : > { %v588_v48 = vadd.f32 %v586_v34, %v580_v38 }
  0xba   : > { %v714_v57 = vpop.permute.xlu0 %713 }
  0xbb   : > { %v680_v0 = vpop.permute.xlu1 %679  ;;  %v716_v45 = vmul.f32 %v714_v57, %v525_v51 }
  0xbc   : > { %v682_v1 = vmul.f32 %v680_v0, %v549_v55  ;;  %v683_v2 = vmul.f32 %v680_v0, %v550_v56  ;;  %v702_v4 = vmul.f32 %v680_v0, %v639_v53  ;;  %v703_v8 = vmul.f32 %v680_v0, %v643_v54 }
  0xbd   : > { %v740_v0 = vmul.f32 %v714_v57, %v619_v49 }
  0xbe   : > { %v684_v12 = vadd.f32 %v682_v1, %v676_v60  ;;  %v685_v13 = vadd.f32 %v683_v2, %v677_v61  ;;  %v704_v14 = vadd.f32 %v702_v4, %v700_v62  ;;  %v705_v15 = vadd.f32 %v703_v8, %v701_v63 }
  0xbf   : > { %v688_v11 = vpop.permute.xlu0 %687  ;;  %v589_v60 = vadd.f32 %v587_v35, %v581_v39  ;;  %v646_v61 = vadd.f32 %v644_v36, %v624_v40  ;;  %v647_v62 = vadd.f32 %v645_v37, %v625_v41  ;;  %v717_v63 = vmul.f32 %v714_v57, %v526_v52 }
  0xc0   : > { %v690_v16 = vmul.f32 %v688_v11, %v573_v9  ;;  %v691_v18 = vmul.f32 %v688_v11, %v574_v10  ;;  %v706_v20 = vmul.f32 %v688_v11, %v9840_v58  ;;  %v707_v22 = vmul.f32 %v688_v11, %v9842_v59  ;;  %v720_v23 = vpop.permute.xlu1 %719 }
  0xc1   : > { %v741_v1 = vmul.f32 %v714_v57, %v623_v50  ;;  %v722_v2 = vmul.f32 %v720_v23, %v549_v55  ;;  %v723_v4 = vmul.f32 %v720_v23, %v550_v56  ;;  %v742_v8 = vmul.f32 %v720_v23, %v639_v53 }
  0xc2   : > { %v692_v24 = vadd.f32 %v690_v16, %v684_v12  ;;  %v693_v25 = vadd.f32 %v691_v18, %v685_v13  ;;  %v708_v26 = vadd.f32 %v706_v20, %v704_v14  ;;  %v709_v27 = vadd.f32 %v707_v22, %v705_v15 }
  0xc3   : > { %v743_v11 = vmul.f32 %v720_v23, %v643_v54  ;;  %v724_v52 = vadd.f32 %v722_v2, %v716_v45  ;;  %v725_v53 = vadd.f32 %v723_v4, %v717_v63  ;;  %v744_v54 = vadd.f32 %v742_v8, %v740_v0 }
  0xc4   : > { %v696_v28 = vpop.permute.xlu0 %695 }
  0xc5   : > { %v9846_v30 = vmul.f32 %v696_v28, %v692_v24  ;;  %v9848_v17 = vmul.f32 %v696_v28, %v693_v25  ;;  %v9850_v31 = vmul.f32 %v708_v26, %v696_v28  ;;  %v9852_v32 = vmul.f32 %v709_v27, %v696_v28  ;;  %v592_v33 = vpop.permute.xlu1 %591 }
  0xc6   : > { %v594_v42 = vmul.f32 %v592_v33, %v573_v9  ;;  %v595_v43 = vmul.f32 %v592_v33, %v574_v10  ;;  %v666_v44 = vmul.f32 %v9840_v58, %v592_v33  ;;  %v667_v46 = vmul.f32 %v9842_v59, %v592_v33 }
  0xc7   : > { %v745_v55 = vadd.f32 %v743_v11, %v741_v1  ;;  %v9880_v27 = vmov 0.0   ;;  %v9882_v28 = vmov 0.0  }
  0xc8   : > { %v668_v29 = vadd.f32 %v666_v44, %v646_v61  ;;  %v669_v12 = vadd.f32 %v667_v46, %v647_v62  ;;  %v596_v13 = vadd.f32 %v594_v42, %v588_v48  ;;  %v597_v14 = vadd.f32 %v595_v43, %v589_v60 }
  0xca   : > { %v728_v47 = vpop.permute.xlu1 %727 }
  0xcb   : > { %v730_v15 = vmul.f32 %v728_v47, %v573_v9  ;;  %v731_v16 = vmul.f32 %v728_v47, %v574_v10  ;;  %v746_v18 = vmul.f32 %v728_v47, %v9840_v58  ;;  %v747_v20 = vmul.f32 %v728_v47, %v9842_v59 }
  0xcd   : > { %v732_v56 = vadd.f32 %v730_v15, %v724_v52  ;;  %v733_v57 = vadd.f32 %v731_v16, %v725_v53  ;;  %v748_v9 = vadd.f32 %v746_v18, %v744_v54  ;;  %v749_v58 = vadd.f32 %v747_v20, %v745_v55 }
  0xcf   : > { %v601_v22 = vpop.permute.xlu1 %600 }
  0xd0   : > { %v9862_v24 = vmul.f32 %v601_v22, %v596_v13  ;;  %v9864_v51 = vmul.f32 %v601_v22, %v597_v14  ;;  %v9866_v49 = vmul.f32 %v668_v29, %v601_v22  ;;  %v9868_v50 = vmul.f32 %v669_v12, %v601_v22 }
  0xd2   : > { %12161 = vst [vmem:[#allocation12_spill] sm:$0xff] %v9866_v49  ;;  %12162 = vst [vmem:[#allocation13_spill] sm:$0xff] %v9868_v50 }
  0xd4   : > { %v736_v10 = vpop.permute.xlu1 %735  ;;  %9144 = sbr.rel (%p9245_p10) target bundleno = 1134 (0x46e), region = 112 }
  0xd5   : > { %v9870_v59 = vmul.f32 %v736_v10, %v732_v56  ;;  %v9872_v23 = vmul.f32 %v736_v10, %v733_v57  ;;  %v9874_v25 = vmul.f32 %v748_v9, %v736_v10  ;;  %v9876_v26 = vmul.f32 %v749_v58, %v736_v10 }
  0xd7   : > { %12163 = vst [vmem:[#allocation14_spill] sm:$0xff] %v9870_v59  ;;  %12164 = vst [vmem:[#allocation15_spill] sm:$0xff] %v9872_v23 }
  0xd8   : > { %12165 = vst [vmem:[#allocation16_spill] sm:$0xff] %v9876_v26 }
  0xd9   : > { %v9884_v33 = vmov 0.0   ;;  %v9886_v34 = vmov 0.0  }
  0xda LB: >> { %v12166_v5 = vld [vmem:[#allocation10_spill] sm:$0xff]  ;;  %v12167_v50 = vld [vmem:[#allocation13_spill] sm:$0xff]  ;;  %v12168_v49 = vld [vmem:[#allocation12_spill] sm:$0xff]  ;;  %12171 = vst [vmem:[#allocation17_spill] sm:$0xff] %v9608_v33  ;;  %v12136_v35 = vmov 0   ;;  %s9246_s14 = sshll.u32 %s9616_s12, 1  ;;  %v9612_v34 = vphi %v9886_v34, %v12230_v34   ;;  %v9608_v33 = vphi %v9884_v33, %v12229_v33   ;;  %s9616_s12 = sphi %s9888_s12, %s761_s12  }
  0xdb   : >> { %v12169_v6 = vld [vmem:[#allocation11_spill] sm:$0xff]  ;;  %v12170_v3 = vld [vmem:[#allocation9_spill] sm:$0xff]  ;;  %12172 = vst [vmem:[#allocation18_spill] sm:$0xff] %v9612_v34  ;;  %4864 = vmatprep.mubr.bf16.mxu1 %v12136_v35  ;;  %4663 = vmatprep.mubr.bf16.mxu0 %v12136_v35  ;;  %s9902_s20 = scvt.s32.f32 %s9246_s14  ;;  %v9637_v41 = vmov 1966171168   ;;  %s761_s12 = sadd.s32 1, %s9616_s12  }
  0xdc   : >> { %v841_v42 = vunpack.c.l.s4 %v9637_v41  ;;  %p760_p11 = scmp.ge.s32.totalorder %s761_s12, %s9807_s19 }
  0xdd   : >> { %s769_s21 = smul.f32 0.05, %s9902_s20  ;;  %s4895_s22 = sadd.f32 1.0, %s9902_s20 }
  0xde   : >> { %v12174_v59 = vld [vmem:[#allocation14_spill] sm:$0xff]  ;;  %v12175_v23 = vld [vmem:[#allocation15_spill] sm:$0xff]  ;;  %v842_v12 = vunpack.c.0.s8 %v841_v42 }
  0xdf   : >> { %v770_v36 = vstv %s769_s21  ;;  %v12173_v26 = vld [vmem:[#allocation16_spill] sm:$0xff]  ;;  %s10479_s23 = smul.f32 0.05, %s4895_s22 }
  0xe0   : >> { %v771_v37 = vadd.f32 %v770_v36, %v12169_v6 }
  0xe2   : >> { %vm772_vm1 = vcmp.lt.f32.partialorder %v771_v37, %v9795_v7  ;;  %v777_v38 = vrot.slane %v771_v37, %v9814_v19  ;;  %v781_v39 = vrot.slane %v771_v37, %v9821_v21 }
  0xe3   : >> { %v812_v40 = vsel %vm772_vm1, 1, %v12136_v35 }
  0xe4   : >> { %v784_v43 = vmul.f32 %v777_v38, %v12168_v49  ;;  %v785_v44 = vmul.f32 %v781_v39, %v12167_v50  ;;  %v788_v46 = vmul.f32 %v777_v38, %v9850_v31  ;;  %v789_v47 = vmul.f32 %v781_v39, %v9852_v32 }
  0xe5   : >> { %v792_v48 = vmul.f32 %v777_v38, %v9874_v25  ;;  %v793_v60 = vmul.f32 %v781_v39, %v12173_v26  ;;  %v816_v61 = vrot.slane %v812_v40, %v9814_v19  ;;  %v820_v16 = vrot.slane %v812_v40, %v9821_v21 }
  0xe6   : >> { %v786_v62 = vadd.f32 %v784_v43, %v9862_v24  ;;  %v787_v45 = vadd.f32 %v785_v44, %v9864_v51  ;;  %v790_v63 = vadd.f32 %v788_v46, %v9846_v30  ;;  %v791_v0 = vadd.f32 %v789_v47, %v9848_v17 }
  0xe7   : >> { %v794_v1 = vadd.f32 %v792_v48, %v12174_v59  ;;  %v795_v2 = vadd.f32 %v793_v60, %v12175_v23  ;;  %vm9923_vm2 = vcmp.eq.s32.totalorder %v816_v61, 1  ;;  %vm9946_vm12 = vcmp.eq.s32.totalorder %v820_v16, 1 }
  0xe8   : >> { %v796_v8 = vand.u32 2147483647, %v786_v62  ;;  %v797_v11 = vand.u32 2147483647, %v787_v45  ;;  %v800_v29 = vand.u32 2147483647, %v790_v63  ;;  %v9953_v39 = vsub.s32 %v842_v12, %v12170_v3 }
  0xe9   : >> { %v801_v13 = vand.u32 2147483647, %v791_v0  ;;  %v806_v14 = vand.u32 2147483647, %v794_v1  ;;  %v807_v15 = vand.u32 2147483647, %v795_v2 }
  0xea   : >> { %vm9928_vm3 = vcmp.le.f32.partialorder %v796_v8, 1.0  ;;  %vm9932_vm4 = vcmp.le.f32.partialorder %v797_v11, 1.0  ;;  %vm802_vm5 = vcmp.le.f32.partialorder %v800_v29, 1.0  ;;  %v825_v22 = vadd.f32 1.0, %v786_v62 }
  0xeb   : >> { %vm9936_vm6 = vcmp.le.f32.partialorder %v801_v13, 1.0  ;;  %vm804_vm7 = vmand %vm9928_vm3, %vm802_vm5  ;;  %vm808_vm8 = vcmp.le.f32.partialorder %v806_v14, 1.0  ;;  %vm809_vm9 = vcmp.le.f32.partialorder %v807_v15, 1.0  ;;  %v826_v53 = vadd.f32 1.0, %v787_v45 }
  0xec   : >> { %vm805_vm10 = vmand %vm9932_vm4, %vm9936_vm6  ;;  %v827_v54 = vmul.f32 1.5, %v825_v22  ;;  %v829_v55 = vadd.f32 1.0, %v790_v63  ;;  %v830_v56 = vadd.f32 1.0, %v791_v0  ;;  %v833_v57 = vadd.f32 1.0, %v794_v1 }
  0xed   : >> { %vm810_vm11 = vmand %vm804_vm7, %vm808_vm8  ;;  %v828_v58 = vmul.f32 1.5, %v826_v53  ;;  %v834_v10 = vadd.f32 1.0, %v795_v2  ;;  %v9638_v48 = vmov 1983009808  }
  0xee   : >> { %vm811_vm13 = vmand %vm805_vm10, %vm809_vm9  ;;  %v831_v27 = vmul.f32 1.5, %v829_v55  ;;  %v832_v28 = vmul.f32 1.5, %v830_v56  ;;  %v835_v36 = vmul.f32 1.5, %v833_v57  ;;  %v2445_v60 = vunpack.c.l.s4 %v9638_v48 }
  0xef   : >> { %vm823_vm14 = vmand %vm810_vm11, %vm9923_vm2  ;;  %v836_v37 = vmul.f32 1.5, %v834_v10  ;;  %v839_v38 = vcombine.low %v827_v54, %v828_v58 }
  0xf0   : >> { %vm824_vm15 = vmand %vm811_vm13, %vm9946_vm12  ;;  %v904_v40 = vcombine.low %v831_v27, %v832_v28  ;;  %v1028_v41 = vsel %vm823_vm14, 1, %v12136_v35  ;;  %v2446_v12 = vunpack.c.0.s8 %v2445_v60 }
  0xf1   : >> { %v846_v42 = vrot.slane %v839_v38, %v9953_v39  ;;  %v969_v43 = vcombine.low %v835_v36, %v836_v37  ;;  %v1029_v44 = vsel %vm824_vm15, 1, %v12136_v35 }
  0xf2   : >> { %v9961_v46 = vrot.slane %v904_v40, %v9953_v39  ;;  %v1030_v47 = vcombine.low %v1028_v41, %v1029_v44 }
  0xf3   : >> { %v847_v61 = vcombine.high %v846_v42, %v846_v42  ;;  %v854_v62 = vrot.slane %v846_v42, %v9953_v39  ;;  %v9965_v45 = vrot.slane %v969_v43, %v9953_v39 }
  0xf4   : >> { %v912_v63 = vcombine.high %v9961_v46, %v9961_v46  ;;  %v9970_v0 = vrot.slane %v1030_v47, %v9953_v39 }
  0xf5   : >> { %v861_v1 = vrot.slane %v847_v61, %v9953_v39  ;;  %v865_v2 = vrot.slane %v854_v62, %v9814_v19  ;;  %v869_v4 = vrot.slane %v854_v62, %v9821_v21  ;;  %v977_v8 = vcombine.high %v9965_v45, %v9965_v45 }
  0xf6   : >> { %v926_v11 = vrot.slane %v912_v63, %v9953_v39  ;;  %v1038_v29 = vcombine.high %v9970_v0, %v9970_v0 }
  0xf7   : >> { %v873_v13 = vrot.slane %v861_v1, %v9814_v19  ;;  %v877_v14 = vrot.slane %v861_v1, %v9821_v21  ;;  %v882_v15 = vsub.f32 %v865_v2, %v12166_v5  ;;  %v883_v16 = vsub.f32 %v869_v4, %v12166_v5 }
  0xf8   : >> { %v938_v18 = vrot.slane %v926_v11, %v9814_v19  ;;  %v942_v20 = vrot.slane %v926_v11, %v9821_v21  ;;  %v991_v22 = vrot.slane %v977_v8, %v9953_v39  ;;  %v9988_v52 = vrot.slane %v1038_v29, %v9953_v39 }
  0xf9   : >> { %v884_v53 = vsub.f32 %v873_v13, %v12166_v5  ;;  %v885_v54 = vsub.f32 %v877_v14, %v12166_v5  ;;  %v886_v55 = vand.u32 2147483647, %v882_v15  ;;  %v887_v56 = vand.u32 2147483647, %v883_v16 }
  0xfa   : >> { %v949_v57 = vsub.f32 %v938_v18, %v12166_v5  ;;  %v950_v9 = vsub.f32 %v942_v20, %v12166_v5  ;;  %v1003_v58 = vrot.slane %v991_v22, %v9814_v19  ;;  %v1007_v10 = vrot.slane %v991_v22, %v9821_v21 }
  0xfb   : >> { %v888_v27 = vand.u32 2147483647, %v884_v53  ;;  %v889_v28 = vand.u32 2147483647, %v885_v54  ;;  %v890_v36 = vsub.f32 1.0, %v886_v55  ;;  %v891_v37 = vsub.f32 1.0, %v887_v56 }
  0xfc   : >> { %v953_v38 = vand.u32 2147483647, %v949_v57  ;;  %v954_v40 = vand.u32 2147483647, %v950_v9  ;;  %v1014_v41 = vsub.f32 %v1003_v58, %v12166_v5  ;;  %v1015_v42 = vsub.f32 %v1007_v10, %v12166_v5 }
  0xfd   : >> { %v892_v43 = vsub.f32 1.0, %v888_v27  ;;  %v893_v44 = vsub.f32 1.0, %v889_v28  ;;  %v894_v47 = vmax.f32 %v890_v36, 0.0  ;;  %v895_v48 = vmax.f32 %v891_v37, 0.0 }
  0xfe   : >> { %v957_v60 = vsub.f32 1.0, %v953_v38  ;;  %v958_v61 = vsub.f32 1.0, %v954_v40  ;;  %v1018_v63 = vand.u32 2147483647, %v1014_v41  ;;  %v1019_v2 = vand.u32 2147483647, %v1015_v42 }
  0xff   : >> { %v896_v4 = vmax.f32 %v892_v43, 0.0  ;;  %v9999_v8 = vsub.s32 %v2446_v12, %v12170_v3  ;;  %v2700_v29 = vcombine.high %v854_v62, %v854_v62  ;;  %v897_v13 = vmax.f32 %v893_v44, 0.0 }
 0x100   : >> { %v10001_v14 = vpack.c.bf16 %v894_v47, %v894_v47  ;;  %v1022_v15 = vsub.f32 1.0, %v1018_v63  ;;  %v1023_v16 = vsub.f32 1.0, %v1019_v2  ;;  %v10003_v18 = vpack.c.bf16 %v895_v48, %v895_v48 }
 0x101   : >> { %v961_v20 = vmax.f32 %v957_v60, 0.0  ;;  %vm1054_vm1 = vcmp.ne.s32.totalorder %v9988_v52, 0  ;;  %v2701_v53 = vcombine.high %v861_v1, %v861_v1  ;;  %v10006_v54 = vpack.c.bf16 %v896_v4, %v896_v4 }
 0x102   : >> { %v962_v55 = vmax.f32 %v958_v61, 0.0  ;;  %v1026_v56 = vmax.f32 %v1022_v15, 0.0  ;;  %v1027_v57 = vmax.f32 %v1023_v16, 0.0  ;;  %v12138_v9 = vmov 0.0  }
 0x103   : >> { %v9248_v12 = vsel %vm1054_vm1, 1.0, %v12138_v9  ;;  %v2705_v62 = vrot.slane %v2700_v29, %v9814_v19  ;;  %v2709_v58 = vrot.slane %v2700_v29, %v9821_v21  ;;  %v2713_v10 = vrot.slane %v2701_v53, %v9814_v19 }
 0x104   : >> { %v1072_v27 = vrot.slane %v9248_v12, %v9814_v19  ;;  %v1076_v28 = vrot.slane %v9248_v12, %v9821_v21  ;;  %v2717_v1 = vrot.slane %v2701_v53, %v9821_v21  ;;  %v2743_v36 = vcombine.high %v926_v11, %v926_v11 }
 0x105   : >> { %v2722_v37 = vsub.f32 %v2705_v62, %v12166_v5  ;;  %v2723_v38 = vsub.f32 %v2709_v58, %v12166_v5  ;;  %v2724_v40 = vsub.f32 %v2713_v10, %v12166_v5  ;;  %v2785_v41 = vcombine.high %v991_v22, %v991_v22 }
 0x106   : >> { %v1083_v42 = vmul.f32 %v1072_v27, %v1026_v56  ;;  %v1084_v43 = vmul.f32 %v1076_v28, %v1027_v57  ;;  %v2725_v44 = vsub.f32 %v2717_v1, %v12166_v5  ;;  %v2755_v47 = vrot.slane %v2743_v36, %v9814_v19 }
 0x107   : >> { %v10020_v48 = vpack.c.bf16 %v897_v13, %v897_v13  ;;  %v2726_v60 = vand.u32 2147483647, %v2722_v37  ;;  %v2728_v61 = vand.u32 2147483647, %v2724_v40  ;;  %v2759_v63 = vrot.slane %v2743_v36, %v9821_v21 }
 0x108   : >> { %v9250_v11 = vpack.c.bf16 %v1084_v43, %v1083_v42  ;;  %v2729_v2 = vand.u32 2147483647, %v2725_v44  ;;  %v2766_v4 = vsub.f32 %v2755_v47, %v12166_v5  ;;  %v2797_v29 = vrot.slane %v2785_v41, %v9814_v19 }
 0x109   : >> { %v2727_v15 = vand.u32 2147483647, %v2723_v38  ;;  %v10025_v22 = vsub.f32 1.0, %v2726_v60  ;;  %v2732_v16 = vsub.f32 1.0, %v2728_v61  ;;  %v2767_v53 = vsub.f32 %v2759_v63, %v12166_v5 }
 0x10a   : >> { %v1123_v56 = vrot.slane %v9250_v11, %v9953_v39  ;;  %v2733_v13 = vsub.f32 1.0, %v2729_v2  ;;  %v2770_v57 = vand.u32 2147483647, %v2766_v4  ;;  %v2801_v12 = vrot.slane %v2785_v41, %v9821_v21 }
 0x10b   : >> { %v10030_v62 = vpack.c.bf16 %v961_v20, %v961_v20  ;;  %v10032_v58 = vpack.c.bf16 %v962_v55, %v962_v55  ;;  %v2736_v10 = vmax.f32 %v2732_v16, 0.0  ;;  %v2771_v27 = vand.u32 2147483647, %v2767_v53 }
 0x10c   : >> { %v1124_v28 = vcombine.high %v1123_v56, %v1123_v56  ;;  %v2737_v1 = vmax.f32 %v2733_v13, 0.0  ;;  %v2774_v36 = vsub.f32 1.0, %v2770_v57  ;;  %v2808_v37 = vsub.f32 %v2797_v29, %v12166_v5 }
 0x10d   : >> { %v10035_v38 = vsub.f32 1.0, %v2727_v15  ;;  %v10038_v42 = vpack.c.bf16 %v2736_v10, %v2736_v10  ;;  %v2775_v43 = vsub.f32 1.0, %v2771_v27  ;;  %v2809_v44 = vsub.f32 %v2801_v12, %v12166_v5 }
 0x10e   : >> { %v1138_v41 = vrot.slane %v1124_v28, %v9953_v39  ;;  %v10041_v20 = vpack.c.bf16 %v2737_v1, %v2737_v1  ;;  %v2778_v55 = vmax.f32 %v2774_v36, 0.0  ;;  %v2812_v60 = vand.u32 2147483647, %v2808_v37 }
 0x10f   : >> { %v2779_v47 = vmax.f32 %v2775_v43, 0.0  ;;  %v2823_v61 = vcombine.high %v9988_v52, %v9988_v52  ;;  %v1131_v63 = vrot.slane %v1123_v56, %v9953_v39  ;;  %v2813_v4 = vand.u32 2147483647, %v2809_v44 }
 0x110   : >> { %v1146_v11 = vunpack.i.h.s16 %v1138_v41  ;;  %v10047_v2 = vpack.c.bf16 %v2778_v55, %v2778_v55  ;;  %v9254_v29 = vpack.i.b16 %v1138_v41, %v1138_v41  ;;  %v2816_v16 = vsub.f32 1.0, %v2812_v60 }
 0x111   : >> { %v10049_v15 = vpack.c.bf16 %v2779_v47, %v2779_v47  ;;  %vm2825_vm2 = vcmp.ne.s32.totalorder %v2823_v61, 0  ;;  %v1144_v53 = vunpack.i.h.s16 %v1131_v63  ;;  %v2817_v57 = vsub.f32 1.0, %v2813_v4 }
 0x112   : >> { %v1154_v13 = vpack.i.b16 %v1146_v11, %v1146_v11  ;;  %v9272_v12 = vsel %vm2825_vm2, 1.0, %v12138_v9  ;;  %v1206_v10 = vrot.slane %v9254_v29, %v9814_v19  ;;  %v2820_v27 = vmax.f32 %v2816_v16, 0.0 }
 0x113   : >> { %v2843_v52 = vrot.slane %v9272_v12, %v9814_v19  ;;  %v2847_v56 = vrot.slane %v9272_v12, %v9821_v21  ;;  %v1210_v28 = vrot.slane %v9254_v29, %v9821_v21  ;;  %v2821_v37 = vmax.f32 %v2817_v57, 0.0 }
 0x114   : >> { %v1214_v1 = vrot.slane %v1154_v13, %v9814_v19  ;;  %v1218_v36 = vrot.slane %v1154_v13, %v9821_v21  ;;  %v1304_v43 = vpack.i.b16 %v1206_v10, %v1206_v10  ;;  %v1152_v44 = vpack.i.b16 %v1144_v53, %v1144_v53 }
 0x115   : >> { %v2854_v41 = vmul.f32 %v2843_v52, %v2820_v27  ;;  %v1311_v55 = vpack.i.b16 %v1210_v28, %v1210_v28  ;;  %v9253_v47 = vpack.i.b16 %v1131_v63, %v1131_v63  ;;  %v2855_v11 = vmul.f32 %v2847_v56, %v2821_v37 }
 0x116   : >> { %v1318_v60 = vpack.i.b16 %v1214_v1, %v1214_v1  ;;  %v1325_v61 = vpack.i.b16 %v1218_v36, %v1218_v36  ;;  %v1309_v4 = vrot.slane %v1304_v43, %v9814_v19  ;;  %v1198_v12 = vrot.slane %v1152_v44, %v9814_v19 }
 0x117   : >> { %v1316_v16 = vrot.slane %v1311_v55, %v9814_v19  ;;  %v1202_v29 = vrot.slane %v1152_v44, %v9821_v21  ;;  %v1190_v35 = vrot.slane %v9253_v47, %v9814_v19  ;;  %v9274_v10 = vpack.c.bf16 %v2855_v11, %v2854_v41 }
 0x118   : >> { %v1323_v13 = vrot.slane %v1318_v60, %v9814_v19  ;;  %v1330_v57 = vrot.slane %v1325_v61, %v9814_v19  ;;  %v1343_v63 = vmul.bf16 %v1309_v4, %v10030_v62  ;;  %v1290_v27 = vpack.i.b16 %v1198_v12, %v1198_v12 }
 0x119   : >> { %v1344_v53 = vmul.bf16 %v1316_v16, %v10032_v58  ;;  %v1297_v52 = vpack.i.b16 %v1202_v29, %v1202_v29  ;;  %v1194_v56 = vrot.slane %v9253_v47, %v9821_v21  ;;  %v2894_v36 = vrot.slane %v9274_v10, %v9953_v39 }
 0x11a   : >> { %v1345_v28 = vmul.bf16 %v1323_v13, %v10030_v62  ;;  %v1346_v1 = vmul.bf16 %v1330_v57, %v10032_v58  ;;  %v1276_v37 = vpack.i.b16 %v1190_v35, %v1190_v35  ;;  %v1295_v55 = vrot.slane %v1290_v27, %v9814_v19 }
 0x11b   : >> { %v1501_v43 = vcombine.low %v1343_v63, %v1344_v53  ;;  %v1302_v41 = vrot.slane %v1297_v52, %v9814_v19  ;;  %v1283_v44 = vpack.i.b16 %v1194_v56, %v1194_v56  ;;  %v2895_v61 = vcombine.high %v2894_v36, %v2894_v36 }
 0x11c   : >> { %v1524_v60 = vcombine.low %v1345_v28, %v1346_v1  ;;  %v10074_v11 = vrot.slane %v2894_v36, %v9953_v39  ;;  %v10077_v47 = vrot.slane %v1276_v37, %v9814_v19  ;;  %v1341_v16 = vmul.bf16 %v1295_v55, %v10030_v62 }
 0x11d   : >> { %v1508_v4 = vrot.slane %v1501_v43, %v9953_v39  ;;  %v1342_v35 = vmul.bf16 %v1302_v41, %v10032_v58  ;;  %v10083_v12 = vrot.slane %v1283_v44, %v9814_v19  ;;  %v2909_v13 = vrot.slane %v2895_v61, %v9953_v39 }
 0x11e   : >> { %v1531_v29 = vrot.slane %v1524_v60, %v9953_v39 }
 0x11f   : >> { %v1509_v63 = vcombine.high %v1508_v4, %v1508_v4  ;;  %v1516_v53 = vrot.slane %v1508_v4, %v9953_v39  ;;  %v1478_v27 = vcombine.low %v1341_v16, %v1342_v35  ;;  %v2917_v1 = vunpack.i.h.s16 %v2909_v13 }
 0x120   : >> { %v1532_v56 = vcombine.high %v1531_v29, %v1531_v29  ;;  %v1539_v28 = vrot.slane %v1531_v29, %v9953_v39  ;;  %v10094_v36 = vpack.i.b16 %v2909_v13, %v2909_v13 }
 0x121   : >> { %v1523_v37 = vrot.slane %v1509_v63, %v9953_v39  ;;  %v1572_v43 = vunpack.i.h.s16 %v1516_v53  ;;  %v9267_v55 = vpack.i.b16 %v1516_v53, %v1516_v53  ;;  %v10098_v41 = vrot.slane %v1478_v27, %v9953_v39 }
 0x122   : >> { %v1546_v44 = vrot.slane %v1532_v56, %v9953_v39  ;;  %v1576_v60 = vunpack.i.h.s16 %v1539_v28  ;;  %v9269_v61 = vpack.i.b16 %v1539_v28, %v1539_v28  ;;  %v2925_v4 = vpack.i.b16 %v2917_v1, %v2917_v1 }
 0x123   : >> { %v1574_v16 = vunpack.i.h.s16 %v1523_v37  ;;  %v1604_v35 = vpack.i.b16 %v1572_v43, %v1572_v43  ;;  %v9268_v9 = vpack.i.b16 %v1523_v37, %v1523_v37  ;;  %v10102_v29 = vrot.slane %v9267_v55, %v9814_v19 }
 0x124   : >> { %v1578_v13 = vunpack.i.h.s16 %v1546_v44  ;;  %v1608_v40 = vpack.i.b16 %v1576_v60, %v1576_v60  ;;  %v9270_v10 = vpack.i.b16 %v1546_v44, %v1546_v44  ;;  %v1838_v63 = vrot.slane %v9269_v61, %v9814_v19 }
 0x125   : >> { %v1842_v53 = vrot.slane %v9269_v61, %v9821_v21  ;;  %v2985_v27 = vrot.slane %v2925_v4, %v9814_v19  ;;  %v2989_v56 = vrot.slane %v2925_v4, %v9821_v21  ;;  %v1606_v52 = vpack.i.b16 %v1574_v16, %v1574_v16 }
 0x126   : >> { %v1610_v28 = vpack.i.b16 %v1578_v13, %v1578_v13  ;;  %v1846_v1 = vrot.slane %v1608_v40, %v9814_v19  ;;  %v1850_v37 = vrot.slane %v1608_v40, %v9821_v21  ;;  %v1854_v43 = vrot.slane %v9270_v10, %v9814_v19 }
 0x127   : >> { %v1858_v57 = vrot.slane %v9270_v10, %v9821_v21  ;;  %v2260_v60 = vpack.i.b16 %v1838_v63, %v1838_v63  ;;  %v2267_v44 = vpack.i.b16 %v1842_v53, %v1842_v53  ;;  %v3089_v3 = vpack.i.b16 %v2985_v27, %v2985_v27 }
 0x128   : >> { %v1862_v33 = vrot.slane %v1610_v28, %v9814_v19  ;;  %v1866_v61 = vrot.slane %v1610_v28, %v9821_v21  ;;  %v2274_v34 = vpack.i.b16 %v1846_v1, %v1846_v1  ;;  %v2281_v23 = vpack.i.b16 %v1850_v37, %v1850_v37 }
 0x129   : >> { %v2265_v4 = vrot.slane %v2260_v60, %v9814_v19  ;;  %v2272_v16 = vrot.slane %v2267_v44, %v9814_v19  ;;  %v2288_v13 = vpack.i.b16 %v1854_v43, %v1854_v43  ;;  %v2295_v59 = vpack.i.b16 %v1858_v57, %v1858_v57 }
 0x12a   : >> { %v2279_v40 = vrot.slane %v2274_v34, %v9814_v19  ;;  %v2286_v26 = vrot.slane %v2281_v23, %v9814_v19  ;;  %v2302_v10 = vpack.i.b16 %v1862_v33, %v1862_v33  ;;  %v2309_v63 = vpack.i.b16 %v1866_v61, %v1866_v61 }
 0x12b   : >> { %v2293_v53 = vrot.slane %v2288_v13, %v9814_v19  ;;  %v2300_v27 = vrot.slane %v2295_v59, %v9814_v19  ;;  %v2371_v28 = vmul.bf16 %v2265_v4, %v10006_v54  ;;  %v2372_v1 = vmul.bf16 %v2272_v16, %v10020_v48 }
 0x12c   : >> { %v2307_v37 = vrot.slane %v2302_v10, %v9814_v19  ;;  %v2314_v60 = vrot.slane %v2309_v63, %v9814_v19  ;;  %v2373_v57 = vmul.bf16 %v2279_v40, %v10006_v54  ;;  %v2374_v34 = vmul.bf16 %v2286_v26, %v10020_v48 }
 0x12d   : >> { %v2375_v23 = vmul.bf16 %v2293_v53, %v10006_v54  ;;  %v2376_v33 = vmul.bf16 %v2300_v27, %v10020_v48  ;;  %v2667_v43 = vcombine.low %v2371_v28, %v2372_v1  ;;  %v3094_v44 = vrot.slane %v3089_v3, %v9814_v19 }
 0x12e   : >> { %v2377_v59 = vmul.bf16 %v2307_v37, %v10006_v54  ;;  %v2378_v61 = vmul.bf16 %v2314_v60, %v10020_v48  ;;  %v2675_v4 = vcombine.low %v2373_v57, %v2374_v34  ;;  %v3096_v16 = vpack.i.b16 %v2989_v56, %v2989_v56 }
 0x12f   : >> { %v2674_v13 = vrot.slane %v2667_v43, %v9999_v8  ;;  %v2683_v10 = vcombine.low %v2375_v23, %v2376_v33  ;;  %v3116_v40 = vmul.bf16 %v3094_v44, %v10047_v2  ;;  %v1810_v26 = vrot.slane %v9267_v55, %v9821_v21 }
 0x130   : >> { %v2682_v63 = vrot.slane %v2675_v4, %v9999_v8  ;;  %v2691_v53 = vcombine.low %v2377_v59, %v2378_v61  ;;  %v3101_v27 = vrot.slane %v3096_v16, %v9814_v19  ;;  %v1814_v3 = vrot.slane %v1604_v35, %v9814_v19 }
 0x131   : >> { %v2690_v28 = vrot.slane %v2683_v10, %v9999_v8  ;;  %v1818_v1 = vrot.slane %v1604_v35, %v9821_v21  ;;  %v1822_v56 = vrot.slane %v9268_v9, %v9814_v19  ;;  %v1826_v37 = vrot.slane %v9268_v9, %v9821_v21 }
 0x132   : >> { %v2698_v60 = vrot.slane %v2691_v53, %v9999_v8  ;;  %v4798_v57 = vcombine.low %v2674_v13, %v2682_v63  ;;  %v3117_v55 = vmul.bf16 %v3101_v27, %v10049_v15  ;;  %v1830_v34 = vrot.slane %v1606_v52, %v9814_v19 }
 0x133   : >> { %v1834_v23 = vrot.slane %v1606_v52, %v9821_v21  ;;  %v2204_v33 = vpack.i.b16 %v10102_v29, %v10102_v29  ;;  %v2211_v43 = vpack.i.b16 %v1810_v26, %v1810_v26  ;;  %v2218_v44 = vpack.i.b16 %v1814_v3, %v1814_v3 }
 0x134   : >> { %v4799_v59 = vcombine.low %v2690_v28, %v2698_v60  ;;  %v4806_v35 = vrot.slane %v4798_v57, %v9999_v8  ;;  %v3295_v61 = vcombine.low %v3116_v40, %v3117_v55  ;;  %v2225_v4 = vpack.i.b16 %v1818_v1, %v1818_v1 }
 0x135   : >> { %v2209_v9 = vrot.slane %v2204_v33, %v9814_v19  ;;  %v2216_v16 = vrot.slane %v2211_v43, %v9814_v19  ;;  %v2223_v13 = vrot.slane %v2218_v44, %v9814_v19  ;;  %v2232_v10 = vpack.i.b16 %v1822_v56, %v1822_v56 }
 0x136   : >> { %v4813_v63 = vrot.slane %v4799_v59, %v9999_v8  ;;  %v3302_v52 = vrot.slane %v3295_v61, %v9953_v39  ;;  %v2230_v29 = vrot.slane %v2225_v4, %v9814_v19  ;;  %v2239_v26 = vpack.i.b16 %v1826_v37, %v1826_v37 }
 0x137   : >> { %v10155_v53 = vrot.slane %v2232_v10, %v9814_v19  ;;  %v2246_v27 = vpack.i.b16 %v1830_v34, %v1830_v34  ;;  %v2253_v40 = vpack.i.b16 %v1834_v23, %v1834_v23  ;;  %v2363_v3 = vmul.bf16 %v2209_v9, %v10006_v54 }
 0x138   : >> { %v4815_v28 = vcombine.high %v4806_v35, %v4813_v63  ;;  %v4814_v1 = vcombine.low %v4806_v35, %v4813_v63  ;;  %v3303_v60 = vcombine.high %v3302_v52, %v3302_v52  ;;  %v3310_v57 = vrot.slane %v3302_v52, %v9953_v39 }
 0x139   : >> { %v2244_v56 = vrot.slane %v2239_v26, %v9814_v19  ;;  %v2251_v55 = vrot.slane %v2246_v27, %v9814_v19  ;;  %v2258_v33 = vrot.slane %v2253_v40, %v9814_v19  ;;  %v2364_v37 = vmul.bf16 %v2216_v16, %v10020_v48 }
 0x13a   : >> { %4832 = vmatprep.subr.bf16.mxu1 %v4815_v28  ;;  %v3317_v43 = vrot.slane %v3303_v60, %v9953_v39  ;;  %v3347_v34 = vunpack.i.h.s16 %v3310_v57  ;;  %v9293_v23 = vpack.i.b16 %v3310_v57, %v3310_v57  ;;  %v2365_v44 = vmul.bf16 %v2223_v13, %v10006_v54 }
 0x13b   : >> { %4833 = vmatpush1.bf16.msra.mxu1 %v4814_v1  ;;  %v2366_v59 = vmul.bf16 %v2230_v29, %v10020_v48  ;;  %v2367_v35 = vmul.bf16 %v10155_v53, %v10006_v54  ;;  %v2368_v61 = vmul.bf16 %v2244_v56, %v10020_v48  ;;  %v2369_v4 = vmul.bf16 %v2251_v55, %v10006_v54 }
 0x13c   : >> { %v3349_v9 = vunpack.i.h.s16 %v3317_v43  ;;  %v3379_v10 = vpack.i.b16 %v3347_v34, %v3347_v34  ;;  %v9294_v16 = vpack.i.b16 %v3317_v43, %v3317_v43  ;;  %v3609_v63 = vrot.slane %v9293_v23, %v9814_v19 }
 0x13d   : >> { %v3613_v52 = vrot.slane %v9293_v23, %v9821_v21  ;;  %v2370_v26 = vmul.bf16 %v2258_v33, %v10020_v48  ;;  %v2635_v13 = vcombine.low %v2363_v3, %v2364_v37  ;;  %v2643_v27 = vcombine.low %v2365_v44, %v2366_v59 }
 0x13e   : >> { %v3381_v40 = vpack.i.b16 %v3349_v9, %v3349_v9  ;;  %v3617_v29 = vrot.slane %v3379_v10, %v9814_v19  ;;  %v3621_v53 = vrot.slane %v3379_v10, %v9821_v21  ;;  %v3625_v28 = vrot.slane %v9294_v16, %v9814_v19 }
 0x13f   : >> { %v3629_v1 = vrot.slane %v9294_v16, %v9821_v21  ;;  %v4031_v60 = vpack.i.b16 %v3609_v63, %v3609_v63  ;;  %v4038_v57 = vpack.i.b16 %v3613_v52, %v3613_v52  ;;  %v2642_v56 = vrot.slane %v2635_v13, %v9999_v8 }
 0x140   : >> { %v3633_v55 = vrot.slane %v3381_v40, %v9814_v19  ;;  %v3637_v43 = vrot.slane %v3381_v40, %v9821_v21  ;;  %v4045_v33 = vpack.i.b16 %v3617_v29, %v3617_v29  ;;  %v4052_v3 = vpack.i.b16 %v3621_v53, %v3621_v53 }
 0x141   : >> { %v4036_v37 = vrot.slane %v4031_v60, %v9814_v19  ;;  %v4043_v34 = vrot.slane %v4038_v57, %v9814_v19  ;;  %v4059_v23 = vpack.i.b16 %v3625_v28, %v3625_v28  ;;  %v4066_v44 = vpack.i.b16 %v3629_v1, %v3629_v1 }
 0x142   : >> { %v4050_v59 = vrot.slane %v4045_v33, %v9814_v19  ;;  %v4057_v9 = vrot.slane %v4052_v3, %v9814_v19  ;;  %v4073_v10 = vpack.i.b16 %v3633_v55, %v3633_v55  ;;  %v4080_v16 = vpack.i.b16 %v3637_v43, %v3637_v43 }
 0x143   : >> { %v4064_v63 = vrot.slane %v4059_v23, %v9814_v19  ;;  %v4071_v52 = vrot.slane %v4066_v44, %v9814_v19  ;;  %v4142_v13 = vmul.bf16 %v4036_v37, %v10038_v42  ;;  %v4143_v40 = vmul.bf16 %v4043_v34, %v10041_v20 }
 0x144   : >> { %v4078_v29 = vrot.slane %v4073_v10, %v9814_v19  ;;  %v4085_v53 = vrot.slane %v4080_v16, %v9814_v19  ;;  %v4144_v28 = vmul.bf16 %v4050_v59, %v10038_v42  ;;  %v4145_v1 = vmul.bf16 %v4057_v9, %v10041_v20 }
 0x145   : >> { %v4146_v60 = vmul.bf16 %v4064_v63, %v10038_v42  ;;  %v4147_v57 = vmul.bf16 %v4071_v52, %v10041_v20  ;;  %v4438_v55 = vcombine.low %v4142_v13, %v4143_v40  ;;  %v2650_v43 = vrot.slane %v2643_v27, %v9999_v8 }
 0x146   : >> { %v4148_v33 = vmul.bf16 %v4078_v29, %v10038_v42  ;;  %v4149_v3 = vmul.bf16 %v4085_v53, %v10041_v20  ;;  %v4446_v37 = vcombine.low %v4144_v28, %v4145_v1  ;;  %v2651_v34 = vcombine.low %v2367_v35, %v2368_v61 }
 0x147   : >> { %v4445_v23 = vrot.slane %v4438_v55, %v9999_v8  ;;  %v4454_v44 = vcombine.low %v4146_v60, %v4147_v57  ;;  %v2659_v10 = vcombine.low %v2369_v4, %v2370_v26  ;;  %v4780_v59 = vcombine.low %v2642_v56, %v2650_v43 }
 0x148   : >> { %v4453_v9 = vrot.slane %v4446_v37, %v9999_v8  ;;  %v4462_v16 = vcombine.low %v4148_v33, %v4149_v3  ;;  %v2658_v63 = vrot.slane %v2651_v34, %v9999_v8  ;;  %v2977_v52 = vrot.slane %v10094_v36, %v9814_v19 }
 0x149   : >> { %v4461_v27 = vrot.slane %v4454_v44, %v9999_v8  ;;  %v2666_v13 = vrot.slane %v2659_v10, %v9999_v8  ;;  %v4788_v40 = vrot.slane %v4780_v59, %v9999_v8  ;;  %v2981_v35 = vrot.slane %v10094_v36, %v9821_v21 }
 0x14a   : >> { %v4469_v61 = vrot.slane %v4462_v16, %v9999_v8  ;;  %v4597_v4 = vcombine.low %v4445_v23, %v4453_v9  ;;  %v3075_v26 = vpack.i.b16 %v2977_v52, %v2977_v52  ;;  %v1486_v56 = vcombine.high %v10098_v41, %v10098_v41 }
 0x14b   : >> { %v4781_v29 = vcombine.low %v2658_v63, %v2666_v13  ;;  %v3082_v53 = vpack.i.b16 %v2981_v35, %v2981_v35  ;;  %v1493_v28 = vrot.slane %v10098_v41, %v9953_v39  ;;  %v12186_v1 = vunpack.i.h.s16 %v10074_v11 }
 0x14c   : >> { %v4598_v57 = vcombine.low %v4461_v27, %v4469_v61  ;;  %v4605_v36 = vrot.slane %v4597_v4, %v9999_v8  ;;  %v3080_v55 = vrot.slane %v3075_v26, %v9814_v19  ;;  %v1500_v43 = vrot.slane %v1486_v56, %v9953_v39 }
 0x14d   : >> { %v10215_v60 = vpack.i.b16 %v12186_v1, %v12186_v1  ;;  %v4795_v33 = vrot.slane %v4781_v29, %v9999_v8  ;;  %v3087_v3 = vrot.slane %v3082_v53, %v9814_v19  ;;  %v1568_v37 = vunpack.i.h.s16 %v1493_v28 }
 0x14e   : >> { %v9265_v34 = vpack.i.b16 %v1493_v28, %v1493_v28  ;;  %v4612_v41 = vrot.slane %v4598_v57, %v9999_v8  ;;  %v3114_v23 = vmul.bf16 %v3080_v55, %v10047_v2  ;;  %v1570_v44 = vunpack.i.h.s16 %v1500_v43 }
 0x14f   : >> { %v9266_v10 = vpack.i.b16 %v1500_v43, %v1500_v43  ;;  %v4797_v59 = vcombine.high %v4788_v40, %v4795_v33  ;;  %v4796_v9 = vcombine.low %v4788_v40, %v4795_v33  ;;  %v3115_v16 = vmul.bf16 %v3087_v3, %v10049_v15 }
 0x150   : >> { %v1600_v63 = vpack.i.b16 %v1568_v37, %v1568_v37  ;;  %v4614_v52 = vcombine.high %v4605_v36, %v4612_v41  ;;  %v4613_v27 = vcombine.low %v4605_v36, %v4612_v41  ;;  %v1602_v13 = vpack.i.b16 %v1570_v44, %v1570_v44 }
 0x151   : >> { %v1774_v35 = vrot.slane %v9265_v34, %v9814_v19  ;;  %4834 = vmatprep.subr.bf16.mxu1 %v4797_v59  ;;  %v3272_v61 = vcombine.low %v3114_v23, %v3115_v16  ;;  %v1778_v4 = vrot.slane %v9265_v34, %v9821_v21  ;;  %v1790_v40 = vrot.slane %v9266_v10, %v9814_v19 }
 0x152   : >> { %v1782_v26 = vrot.slane %v1600_v63, %v9814_v19  ;;  %v1786_v56 = vrot.slane %v1600_v63, %v9821_v21  ;;  %4631 = vmatprep.subr.bf16.mxu0 %v4614_v52  ;;  %4835 = vmatpush1.bf16.msra.mxu1 %v4796_v9  ;;  %v1794_v53 = vrot.slane %v9266_v10, %v9821_v21 }
 0x153   : >> { %v1798_v28 = vrot.slane %v1602_v13, %v9814_v19  ;;  %4632 = vmatpush1.bf16.msra.mxu0 %v4613_v27  ;;  %v3279_v1 = vrot.slane %v3272_v61, %v9953_v39  ;;  %v1802_v57 = vrot.slane %v1602_v13, %v9821_v21  ;;  %v2148_v36 = vpack.i.b16 %v1774_v35, %v1774_v35 }
 0x154   : >> { %v2155_v55 = vpack.i.b16 %v1778_v4, %v1778_v4  ;;  %v2162_v43 = vpack.i.b16 %v1782_v26, %v1782_v26  ;;  %v2169_v33 = vpack.i.b16 %v1786_v56, %v1786_v56  ;;  %v2176_v3 = vpack.i.b16 %v1790_v40, %v1790_v40 }
 0x155   : >> { %v2183_v37 = vpack.i.b16 %v1794_v53, %v1794_v53  ;;  %v3280_v34 = vcombine.high %v3279_v1, %v3279_v1  ;;  %v3287_v41 = vrot.slane %v3279_v1, %v9953_v39  ;;  %v2153_v23 = vrot.slane %v2148_v36, %v9814_v19 }
 0x156   : >> { %v2160_v44 = vrot.slane %v2155_v55, %v9814_v19  ;;  %v10239_v10 = vrot.slane %v2162_v43, %v9814_v19  ;;  %v2174_v59 = vrot.slane %v2169_v33, %v9814_v19  ;;  %v2181_v9 = vrot.slane %v2176_v3, %v9814_v19 }
 0x157   : >> { %v2188_v16 = vrot.slane %v2183_v37, %v9814_v19  ;;  %v3294_v63 = vrot.slane %v3280_v34, %v9953_v39  ;;  %v3343_v52 = vunpack.i.h.s16 %v3287_v41  ;;  %v9291_v27 = vpack.i.b16 %v3287_v41, %v3287_v41 }
 0x158   : >> { %v2190_v13 = vpack.i.b16 %v1798_v28, %v1798_v28  ;;  %v2197_v35 = vpack.i.b16 %v1802_v57, %v1802_v57  ;;  %v2355_v61 = vmul.bf16 %v2153_v23, %v10006_v54  ;;  %v2356_v4 = vmul.bf16 %v2160_v44, %v10020_v48 }
 0x159   : >> { %v2357_v26 = vmul.bf16 %v10239_v10, %v10006_v54  ;;  %v3345_v56 = vunpack.i.h.s16 %v3294_v63  ;;  %v3375_v40 = vpack.i.b16 %v3343_v52, %v3343_v52  ;;  %v9292_v53 = vpack.i.b16 %v3294_v63, %v3294_v63 }
 0x15a   : >> { %v3577_v1 = vrot.slane %v9291_v27, %v9814_v19  ;;  %v3581_v36 = vrot.slane %v9291_v27, %v9821_v21  ;;  %v2195_v55 = vrot.slane %v2190_v13, %v9814_v19  ;;  %v2202_v43 = vrot.slane %v2197_v35, %v9814_v19 }
 0x15b   : >> { %v2358_v28 = vmul.bf16 %v2174_v59, %v10020_v48  ;;  %v3377_v57 = vpack.i.b16 %v3345_v56, %v3345_v56  ;;  %v3585_v33 = vrot.slane %v3375_v40, %v9814_v19  ;;  %v3589_v3 = vrot.slane %v3375_v40, %v9821_v21 }
 0x15c   : >> { %v3593_v37 = vrot.slane %v9292_v53, %v9814_v19  ;;  %v3597_v34 = vrot.slane %v9292_v53, %v9821_v21  ;;  %v3975_v41 = vpack.i.b16 %v3577_v1, %v3577_v1  ;;  %v3982_v23 = vpack.i.b16 %v3581_v36, %v3581_v36 }
 0x15d   : >> { %v2359_v44 = vmul.bf16 %v2181_v9, %v10006_v54  ;;  %v3601_v10 = vrot.slane %v3377_v57, %v9814_v19  ;;  %v3605_v63 = vrot.slane %v3377_v57, %v9821_v21  ;;  %v3989_v52 = vpack.i.b16 %v3585_v33, %v3585_v33 }
 0x15e   : >> { %v3996_v27 = vpack.i.b16 %v3589_v3, %v3589_v3  ;;  %v3980_v59 = vrot.slane %v3975_v41, %v9814_v19  ;;  %v3987_v13 = vrot.slane %v3982_v23, %v9814_v19  ;;  %v4003_v35 = vpack.i.b16 %v3593_v37, %v3593_v37 }
 0x15f   : >> { %v4010_v56 = vpack.i.b16 %v3597_v34, %v3597_v34  ;;  %v3994_v40 = vrot.slane %v3989_v52, %v9814_v19  ;;  %v4017_v1 = vpack.i.b16 %v3601_v10, %v3601_v10  ;;  %v4024_v36 = vpack.i.b16 %v3605_v63, %v3605_v63 }
 0x160   : >> { %v4001_v53 = vrot.slane %v3996_v27, %v9814_v19  ;;  %v4008_v9 = vrot.slane %v4003_v35, %v9814_v19  ;;  %v4134_v57 = vmul.bf16 %v3980_v59, %v10038_v42  ;;  %v4135_v33 = vmul.bf16 %v3987_v13, %v10041_v20 }
 0x161   : >> { %v4015_v29 = vrot.slane %v4010_v56, %v9814_v19  ;;  %v4022_v3 = vrot.slane %v4017_v1, %v9814_v19  ;;  %v4029_v41 = vrot.slane %v4024_v36, %v9814_v19  ;;  %v4136_v37 = vmul.bf16 %v3994_v40, %v10038_v42 }
 0x162   : >> { %v4137_v34 = vmul.bf16 %v4001_v53, %v10041_v20  ;;  %v4138_v23 = vmul.bf16 %v4008_v9, %v10038_v42  ;;  %v4406_v63 = vcombine.low %v4134_v57, %v4135_v33  ;;  %v2360_v52 = vmul.bf16 %v2188_v16, %v10020_v48 }
 0x163   : >> { %v4139_v10 = vmul.bf16 %v4015_v29, %v10041_v20  ;;  %v4140_v27 = vmul.bf16 %v4022_v3, %v10038_v42  ;;  %v4141_v59 = vmul.bf16 %v4029_v41, %v10041_v20  ;;  %v2361_v35 = vmul.bf16 %v2195_v55, %v10006_v54 }
 0x164   : >> { %v4414_v13 = vcombine.low %v4136_v37, %v4137_v34  ;;  %v4413_v56 = vrot.slane %v4406_v63, %v9999_v8  ;;  %v2362_v40 = vmul.bf16 %v2202_v43, %v10020_v48  ;;  %v2603_v53 = vcombine.low %v2355_v61, %v2356_v4 }
 0x165   : >> { %v4422_v1 = vcombine.low %v4138_v23, %v4139_v10  ;;  %v4430_v9 = vcombine.low %v4140_v27, %v4141_v59  ;;  %v2611_v29 = vcombine.low %v2357_v26, %v2358_v28  ;;  %v2619_v57 = vcombine.low %v2359_v44, %v2360_v52 }
 0x166   : >> { %v4421_v36 = vrot.slane %v4414_v13, %v9999_v8  ;;  %v2610_v33 = vrot.slane %v2603_v53, %v9999_v8  ;;  %v2627_v3 = vcombine.low %v2361_v35, %v2362_v40  ;;  %v2969_v41 = vrot.slane %v10215_v60, %v9814_v19 }
 0x167   : >> { %v4429_v16 = vrot.slane %v4422_v1, %v9999_v8  ;;  %v4437_v55 = vrot.slane %v4430_v9, %v9999_v8  ;;  %v2618_v34 = vrot.slane %v2611_v29, %v9999_v8  ;;  %v2626_v61 = vrot.slane %v2619_v57, %v9999_v8 }
 0x168   : >> { %v4579_v37 = vcombine.low %v4413_v56, %v4421_v36  ;;  %v2634_v4 = vrot.slane %v2627_v3, %v9999_v8  ;;  %v2973_v26 = vrot.slane %v10215_v60, %v9821_v21  ;;  %v3061_v43 = vpack.i.b16 %v2969_v41, %v2969_v41 }
 0x169   : >> { %v12187_v28 = vmul.bf16 %v10083_v12, %v10032_v58  ;;  %v12188_v44 = vmul.bf16 %v10077_v47, %v10030_v62  ;;  %v4580_v10 = vcombine.low %v4429_v16, %v4437_v55  ;;  %v4762_v52 = vcombine.low %v2610_v33, %v2618_v34 }
 0x16a   : >> { %v4587_v63 = vrot.slane %v4579_v37, %v9999_v8  ;;  %v9277_v27 = vpack.i.b16 %v10074_v11, %v10074_v11  ;;  %v4763_v59 = vcombine.low %v2626_v61, %v2634_v4  ;;  %v3066_v13 = vrot.slane %v3061_v43, %v9814_v19 }
 0x16b   : >> { %v1455_v23 = vcombine.low %v12188_v44, %v12187_v28  ;;  %v3068_v35 = vpack.i.b16 %v2973_v26, %v2973_v26  ;;  %v4594_v56 = vrot.slane %v4580_v10, %v9999_v8  ;;  %v4770_v58 = vrot.slane %v4762_v52, %v9999_v8 }
 0x16c   : >> { %v2961_v62 = vrot.slane %v9277_v27, %v9814_v19  ;;  %v2965_v47 = vrot.slane %v9277_v27, %v9821_v21  ;;  %v4777_v12 = vrot.slane %v4763_v59, %v9999_v8  ;;  %v3112_v11 = vmul.bf16 %v3066_v13, %v10047_v2 }
 0x16d   : >> { %v1462_v60 = vrot.slane %v1455_v23, %v9953_v39  ;;  %v3073_v1 = vrot.slane %v3068_v35, %v9814_v19  ;;  %v4596_v53 = vcombine.high %v4587_v63, %v4594_v56  ;;  %v4595_v36 = vcombine.low %v4587_v63, %v4594_v56 }
 0x16e   : >> { %v3047_v29 = vpack.i.b16 %v2961_v62, %v2961_v62  ;;  %v4779_v57 = vcombine.high %v4770_v58, %v4777_v12  ;;  %v4778_v16 = vcombine.low %v4770_v58, %v4777_v12  ;;  %v3054_v34 = vpack.i.b16 %v2965_v47, %v2965_v47 }
 0x16f   : >> { %v1463_v40 = vcombine.high %v1462_v60, %v1462_v60  ;;  %v1470_v9 = vrot.slane %v1462_v60, %v9953_v39  ;;  %v3113_v33 = vmul.bf16 %v3073_v1, %v10049_v15  ;;  %4633 = vmatprep.subr.bf16.mxu0 %v4596_v53  ;;  %v10318_v43 = vrot.slane %v9961_v46, %v9953_v39 }
 0x170   : >> { %v10314_v37 = vrot.slane %v3047_v29, %v9814_v19  ;;  %4634 = vmatpush1.bf16.msra.mxu0 %v4595_v36  ;;  %4836 = vmatprep.subr.bf16.mxu1 %v4779_v57  ;;  %v10323_v10 = vrot.slane %v3054_v34, %v9814_v19 }
 0x171   : >> { %v1477_v3 = vrot.slane %v1463_v40, %v9953_v39  ;;  %v1564_v41 = vunpack.i.h.s16 %v1470_v9  ;;  %v9263_v55 = vpack.i.b16 %v1470_v9, %v1470_v9  ;;  %v3249_v61 = vcombine.low %v3112_v11, %v3113_v33  ;;  %4837 = vmatpush1.bf16.msra.mxu1 %v4778_v16 }
 0x173   : >> { %v1566_v4 = vunpack.i.h.s16 %v1477_v3  ;;  %v9264_v26 = vpack.i.b16 %v1477_v3, %v1477_v3  ;;  %v1596_v28 = vpack.i.b16 %v1564_v41, %v1564_v41  ;;  %v1742_v44 = vrot.slane %v9263_v55, %v9814_v19 }
 0x174   : >> { %v1746_v23 = vrot.slane %v9263_v55, %v9821_v21  ;;  %v3256_v63 = vrot.slane %v3249_v61, %v9953_v39 }
 0x175   : >> { %v1598_v52 = vpack.i.b16 %v1566_v4, %v1566_v4  ;;  %v1758_v27 = vrot.slane %v9264_v26, %v9814_v19  ;;  %v1762_v59 = vrot.slane %v9264_v26, %v9821_v21  ;;  %v1750_v13 = vrot.slane %v1596_v28, %v9814_v19 }
 0x176   : >> { %v1754_v46 = vrot.slane %v1596_v28, %v9821_v21  ;;  %v2092_v35 = vpack.i.b16 %v1742_v44, %v1742_v44  ;;  %v2099_v60 = vpack.i.b16 %v1746_v23, %v1746_v23  ;;  %v3257_v56 = vcombine.high %v3256_v63, %v3256_v63 }
 0x177   : >> { %v3264_v58 = vrot.slane %v3256_v63, %v9953_v39  ;;  %v1766_v62 = vrot.slane %v1598_v52, %v9814_v19  ;;  %v1770_v47 = vrot.slane %v1598_v52, %v9821_v21  ;;  %v2106_v11 = vpack.i.b16 %v1750_v13, %v1750_v13 }
 0x178   : >> { %v10334_v12 = vrot.slane %v2092_v35, %v9814_v19  ;;  %v10337_v1 = vrot.slane %v2099_v60, %v9814_v19  ;;  %v2113_v40 = vpack.i.b16 %v1754_v46, %v1754_v46  ;;  %v3271_v53 = vrot.slane %v3257_v56, %v9953_v39 }
 0x179   : >> { %v3339_v36 = vunpack.i.h.s16 %v3264_v58  ;;  %v9289_v9 = vpack.i.b16 %v3264_v58, %v3264_v58  ;;  %v2120_v29 = vpack.i.b16 %v1758_v27, %v1758_v27  ;;  %v10341_v57 = vrot.slane %v2106_v11, %v9814_v19 }
 0x17a   : >> { %v10344_v16 = vrot.slane %v2113_v40, %v9814_v19  ;;  %v2127_v33 = vpack.i.b16 %v1762_v59, %v1762_v59  ;;  %v2134_v3 = vpack.i.b16 %v1766_v62, %v1766_v62  ;;  %v3341_v41 = vunpack.i.h.s16 %v3271_v53 }
 0x17b   : >> { %v3371_v55 = vpack.i.b16 %v3339_v36, %v3339_v36  ;;  %v9290_v34 = vpack.i.b16 %v3271_v53, %v3271_v53  ;;  %v3545_v61 = vrot.slane %v9289_v9, %v9814_v19  ;;  %v3549_v4 = vrot.slane %v9289_v9, %v9821_v21 }
 0x17c   : >> { %v2125_v26 = vrot.slane %v2120_v29, %v9814_v19  ;;  %v2132_v28 = vrot.slane %v2127_v33, %v9814_v19  ;;  %v2139_v44 = vrot.slane %v2134_v3, %v9814_v19  ;;  %v3373_v23 = vpack.i.b16 %v3341_v41, %v3341_v41 }
 0x17d   : >> { %v3553_v63 = vrot.slane %v3371_v55, %v9814_v19  ;;  %v3557_v52 = vrot.slane %v3371_v55, %v9821_v21  ;;  %v3561_v27 = vrot.slane %v9290_v34, %v9814_v19  ;;  %v3565_v59 = vrot.slane %v9290_v34, %v9821_v21 }
 0x17e   : >> { %v3919_v13 = vpack.i.b16 %v3545_v61, %v3545_v61  ;;  %v3926_v46 = vpack.i.b16 %v3549_v4, %v3549_v4  ;;  %v2141_v35 = vpack.i.b16 %v1770_v47, %v1770_v47  ;;  %v3569_v60 = vrot.slane %v3373_v23, %v9814_v19 }
 0x17f   : >> { %v3573_v56 = vrot.slane %v3373_v23, %v9821_v21  ;;  %v3933_v58 = vpack.i.b16 %v3553_v63, %v3553_v63  ;;  %v3940_v62 = vpack.i.b16 %v3557_v52, %v3557_v52  ;;  %v3947_v53 = vpack.i.b16 %v3561_v27, %v3561_v27 }
 0x180   : >> { %v3924_v11 = vrot.slane %v3919_v13, %v9814_v19  ;;  %v3931_v40 = vrot.slane %v3926_v46, %v9814_v19  ;;  %v3954_v36 = vpack.i.b16 %v3565_v59, %v3565_v59  ;;  %v3961_v33 = vpack.i.b16 %v3569_v60, %v3569_v60 }
 0x181   : >> { %v3938_v9 = vrot.slane %v3933_v58, %v9814_v19  ;;  %v3945_v29 = vrot.slane %v3940_v62, %v9814_v19  ;;  %v3968_v3 = vpack.i.b16 %v3573_v56, %v3573_v56  ;;  %v3952_v47 = vrot.slane %v3947_v53, %v9814_v19 }
 0x182   : >> { %v3959_v41 = vrot.slane %v3954_v36, %v9814_v19  ;;  %v4126_v55 = vmul.bf16 %v3924_v11, %v10038_v42  ;;  %v4127_v34 = vmul.bf16 %v3931_v40, %v10041_v20  ;;  %v3966_v61 = vrot.slane %v3961_v33, %v9814_v19 }
 0x183   : >> { %v3973_v4 = vrot.slane %v3968_v3, %v9814_v19  ;;  %v4128_v23 = vmul.bf16 %v3938_v9, %v10038_v42  ;;  %v4129_v63 = vmul.bf16 %v3945_v29, %v10041_v20  ;;  %v4130_v52 = vmul.bf16 %v3952_v47, %v10038_v42 }
 0x184   : >> { %v4131_v27 = vmul.bf16 %v3959_v41, %v10041_v20  ;;  %v4374_v59 = vcombine.low %v4126_v55, %v4127_v34  ;;  %v2146_v13 = vrot.slane %v2141_v35, %v9814_v19  ;;  %v4132_v46 = vmul.bf16 %v3966_v61, %v10038_v42 }
 0x185   : >> { %v4133_v60 = vmul.bf16 %v3973_v4, %v10041_v20  ;;  %v4382_v56 = vcombine.low %v4128_v23, %v4129_v63  ;;  %v2347_v58 = vmul.bf16 %v10334_v12, %v10006_v54  ;;  %v2348_v40 = vmul.bf16 %v10337_v1, %v10020_v48 }
 0x186   : >> { %v4381_v62 = vrot.slane %v4374_v59, %v9999_v8  ;;  %v4390_v11 = vcombine.low %v4130_v52, %v4131_v27  ;;  %v2349_v53 = vmul.bf16 %v10341_v57, %v10006_v54  ;;  %v2350_v9 = vmul.bf16 %v10344_v16, %v10020_v48 }
 0x187   : >> { %v4389_v36 = vrot.slane %v4382_v56, %v9999_v8  ;;  %v4398_v35 = vcombine.low %v4132_v46, %v4133_v60  ;;  %v2351_v29 = vmul.bf16 %v2125_v26, %v10006_v54  ;;  %v2352_v12 = vmul.bf16 %v2132_v28, %v10020_v48 }
 0x188   : >> { %v4397_v33 = vrot.slane %v4390_v11, %v9999_v8  ;;  %v2353_v3 = vmul.bf16 %v2139_v44, %v10006_v54  ;;  %v2354_v47 = vmul.bf16 %v2146_v13, %v10020_v48  ;;  %v2571_v57 = vcombine.low %v2347_v58, %v2348_v40 }
 0x189   : >> { %v4405_v1 = vrot.slane %v4398_v35, %v9999_v8  ;;  %v4561_v41 = vcombine.low %v4381_v62, %v4389_v36  ;;  %v2579_v55 = vcombine.low %v2349_v53, %v2350_v9  ;;  %v2587_v34 = vcombine.low %v2351_v29, %v2352_v12 }
 0x18a   : >> { %v2595_v61 = vcombine.low %v2353_v3, %v2354_v47  ;;  %v3110_v16 = vmul.bf16 %v10314_v37, %v10047_v2  ;;  %v3111_v26 = vmul.bf16 %v10323_v10, %v10049_v15  ;;  %v2578_v54 = vrot.slane %v2571_v57, %v9999_v8 }
 0x18b   : >> { %v4562_v4 = vcombine.low %v4397_v33, %v4405_v1  ;;  %v4569_v28 = vrot.slane %v4561_v41, %v9999_v8  ;;  %v2586_v48 = vrot.slane %v2579_v55, %v9999_v8  ;;  %v2594_v44 = vrot.slane %v2587_v34, %v9999_v8 }
 0x18c   : >> { %v2602_v23 = vrot.slane %v2595_v61, %v9999_v8  ;;  %v3226_v63 = vcombine.low %v3110_v16, %v3111_v26  ;;  %v930_v52 = vrot.slane %v10318_v43, %v9814_v19  ;;  %v934_v15 = vrot.slane %v10318_v43, %v9821_v21 }
 0x18d   : >> { %v4576_v2 = vrot.slane %v4562_v4, %v9999_v8  ;;  %v4744_v37 = vcombine.low %v2578_v54, %v2586_v48  ;;  %v10406_v10 = vrot.slane %v9965_v45, %v9953_v39  ;;  %v10412_v46 = vrot.slane %v9970_v0, %v9953_v39 }
 0x18e   : >> { %v4745_v27 = vcombine.low %v2594_v44, %v2602_v23  ;;  %v3233_v59 = vrot.slane %v3226_v63, %v9953_v39  ;;  %v947_v13 = vsub.f32 %v930_v52, %v12166_v5  ;;  %v948_v62 = vsub.f32 %v934_v15, %v12166_v5 }
 0x18f   : >> { %v4578_v60 = vcombine.high %v4569_v28, %v4576_v2  ;;  %v4577_v56 = vcombine.low %v4569_v28, %v4576_v2  ;;  %v4752_v58 = vrot.slane %v4744_v37, %v9999_v8  ;;  %v12189_v36 = vmax.f32 %v10025_v22, 0.0 }
 0x190   : >> { %v4759_v11 = vrot.slane %v4745_v27, %v9999_v8  ;;  %v3234_v40 = vcombine.high %v3233_v59, %v3233_v59  ;;  %v3241_v45 = vrot.slane %v3233_v59, %v9953_v39  ;;  %v951_v53 = vand.u32 2147483647, %v947_v13 }
 0x191   : >> { %v10421_v35 = vpack.c.bf16 %v12189_v36, %v12189_v36  ;;  %4635 = vmatprep.subr.bf16.mxu0 %v4578_v60  ;;  %v952_v0 = vand.u32 2147483647, %v948_v62  ;;  %v995_v9 = vrot.slane %v10406_v10, %v9814_v19  ;;  %v999_v29 = vrot.slane %v10406_v10, %v9821_v21 }
 0x192   : >> { %4636 = vmatpush1.bf16.msra.mxu0 %v4577_v56  ;;  %v4761_v33 = vcombine.high %v4752_v58, %v4759_v11  ;;  %v4760_v12 = vcombine.low %v4752_v58, %v4759_v11  ;;  %v3248_v3 = vrot.slane %v3234_v40, %v9953_v39  ;;  %v3335_v47 = vunpack.i.h.s16 %v3241_v45 }
 0x193   : >> { %v12190_v1 = vmax.f32 %v10035_v38, 0.0  ;;  %v9287_v41 = vpack.i.b16 %v3241_v45, %v3241_v45  ;;  %v955_v57 = vsub.f32 1.0, %v951_v53  ;;  %v10433_v55 = vsub.f32 1.0, %v952_v0 }
 0x194   : >> { %4838 = vmatprep.subr.bf16.mxu1 %v4761_v33  ;;  %v3337_v34 = vunpack.i.h.s16 %v3248_v3  ;;  %v3367_v61 = vpack.i.b16 %v3335_v47, %v3335_v47  ;;  %v9288_v16 = vpack.i.b16 %v3248_v3, %v3248_v3  ;;  %v1012_v26 = vsub.f32 %v995_v9, %v12166_v5 }
 0x195   : >> { %v10431_v22 = vpack.c.bf16 %v12190_v1, %v12190_v1  ;;  %vm1053_vm3 = vcmp.ne.s32.totalorder %v10412_v46, 0  ;;  %4839 = vmatpush1.bf16.msra.mxu1 %v4760_v12  ;;  %v3513_v4 = vrot.slane %v9287_v41, %v9814_v19  ;;  %v3517_v38 = vrot.slane %v9287_v41, %v9821_v21 }
 0x196   : >> { %v959_v28 = vmax.f32 %v955_v57, 0.0  ;;  %v1013_v54 = vsub.f32 %v999_v29, %v12166_v5  ;;  %v3369_v48 = vpack.i.b16 %v3337_v34, %v3337_v34  ;;  %v3521_v44 = vrot.slane %v3367_v61, %v9814_v19 }
 0x197   : >> { %v3525_v23 = vrot.slane %v3367_v61, %v9821_v21  ;;  %v3529_v63 = vrot.slane %v9288_v16, %v9814_v19  ;;  %v3533_v52 = vrot.slane %v9288_v16, %v9821_v21  ;;  %v3863_v2 = vpack.i.b16 %v3513_v4, %v3513_v4 }
 0x198   : >> { %v3870_v37 = vpack.i.b16 %v3517_v38, %v3517_v38  ;;  %v960_v15 = vmax.f32 %v10433_v55, 0.0  ;;  %v3537_v27 = vrot.slane %v3369_v48, %v9814_v19  ;;  %v3541_v59 = vrot.slane %v3369_v48, %v9821_v21 }
 0x199   : >> { %v3877_v13 = vpack.i.b16 %v3521_v44, %v3521_v44  ;;  %v3884_v60 = vpack.i.b16 %v3525_v23, %v3525_v23  ;;  %v3868_v56 = vrot.slane %v3863_v2, %v9814_v19  ;;  %v3891_v62 = vpack.i.b16 %v3529_v63, %v3529_v63 }
 0x19a   : >> { %v3875_v58 = vrot.slane %v3870_v37, %v9814_v19  ;;  %v3898_v11 = vpack.i.b16 %v3533_v52, %v3533_v52  ;;  %v3905_v53 = vpack.i.b16 %v3537_v27, %v3537_v27  ;;  %v3912_v36 = vpack.i.b16 %v3541_v59, %v3541_v59 }
 0x19b   : >> { %v3882_v40 = vrot.slane %v3877_v13, %v9814_v19  ;;  %v3889_v45 = vrot.slane %v3884_v60, %v9814_v19  ;;  %v3896_v0 = vrot.slane %v3891_v62, %v9814_v19  ;;  %v4118_v29 = vmul.bf16 %v3868_v56, %v10038_v42 }
 0x19c   : >> { %v3903_v9 = vrot.slane %v3898_v11, %v9814_v19  ;;  %v4119_v33 = vmul.bf16 %v3875_v58, %v10041_v20  ;;  %v3910_v12 = vrot.slane %v3905_v53, %v9814_v19  ;;  %v3917_v3 = vrot.slane %v3912_v36, %v9814_v19 }
 0x19d   : >> { %v4120_v47 = vmul.bf16 %v3882_v40, %v10038_v42  ;;  %v4121_v1 = vmul.bf16 %v3889_v45, %v10041_v20  ;;  %v4122_v41 = vmul.bf16 %v3896_v0, %v10038_v42  ;;  %v10461_v61 = vpack.c.bf16 %v959_v28, %v959_v28 }
 0x19e   : >> { %v4123_v57 = vmul.bf16 %v3903_v9, %v10041_v20  ;;  %v4342_v34 = vcombine.low %v4118_v29, %v4119_v33  ;;  %v4124_v16 = vmul.bf16 %v3910_v12, %v10038_v42  ;;  %v4125_v4 = vmul.bf16 %v3917_v3, %v10041_v20 }
 0x19f   : >> { %v4350_v38 = vcombine.low %v4120_v47, %v4121_v1  ;;  %v1016_v48 = vand.u32 2147483647, %v1012_v26  ;;  %v1017_v63 = vand.u32 2147483647, %v1013_v54  ;;  %v12191_v52 = vmov 0.0  }
 0x1a0   : >> { %v4349_v44 = vrot.slane %v4342_v34, %v9999_v8  ;;  %v4358_v23 = vcombine.low %v4122_v41, %v4123_v57  ;;  %v9247_v2 = vsel %vm1053_vm3, 1.0, %v12191_v52  ;;  %v4366_v27 = vcombine.low %v4124_v16, %v4125_v4 }
 0x1a1   : >> { %v4357_v37 = vrot.slane %v4350_v38, %v9999_v8  ;;  %v1020_v28 = vsub.f32 1.0, %v1016_v48  ;;  %v1064_v59 = vrot.slane %v9247_v2, %v9814_v19  ;;  %v1021_v13 = vsub.f32 1.0, %v1017_v63 }
 0x1a2   : >> { %v4365_v42 = vrot.slane %v4358_v23, %v9999_v8  ;;  %v1068_v20 = vrot.slane %v9247_v2, %v9821_v21  ;;  %v2742_v26 = vcombine.high %v10318_v43, %v10318_v43  ;;  %v4373_v54 = vrot.slane %v4366_v27, %v9999_v8 }
 0x1a3   : >> { %v4543_v60 = vcombine.low %v4349_v44, %v4357_v37  ;;  %v1024_v56 = vmax.f32 %v1020_v28, 0.0  ;;  %v2784_v58 = vcombine.high %v10406_v10, %v10406_v10  ;;  %v1025_v62 = vmax.f32 %v1021_v13, 0.0 }
 0x1a4   : >> { %v2747_v11 = vrot.slane %v2742_v26, %v9814_v19  ;;  %v2751_v40 = vrot.slane %v2742_v26, %v9821_v21  ;;  %v2822_v45 = vcombine.high %v10412_v46, %v10412_v46  ;;  %v4544_v53 = vcombine.low %v4365_v42, %v4373_v54 }
 0x1a5   : >> { %v4551_v43 = vrot.slane %v4543_v60, %v9999_v8  ;;  %v1081_v36 = vmul.f32 %v1064_v59, %v1024_v56  ;;  %v2789_v0 = vrot.slane %v2784_v58, %v9814_v19  ;;  %v1082_v9 = vmul.f32 %v1068_v20, %v1025_v62 }
 0x1a6   : >> { %v2764_v10 = vsub.f32 %v2747_v11, %v12166_v5  ;;  %v2765_v29 = vsub.f32 %v2751_v40, %v12166_v5  ;;  %v2793_v33 = vrot.slane %v2784_v58, %v9821_v21  ;;  %v4558_v12 = vrot.slane %v4544_v53, %v9999_v8 }
 0x1a7   : >> { %v2806_v3 = vsub.f32 %v2789_v0, %v12166_v5  ;;  %vm2824_vm4 = vcmp.ne.s32.totalorder %v2822_v45, 0  ;;  %v4897_v47 = vstv %s10479_s23  ;;  %v9249_v46 = vpack.c.bf16 %v1082_v9, %v1081_v36 }
 0x1a8   : >> { %v2768_v1 = vand.u32 2147483647, %v2764_v10  ;;  %v2769_v41 = vand.u32 2147483647, %v2765_v29  ;;  %v2807_v57 = vsub.f32 %v2793_v33, %v12166_v5  ;;  %v4560_v34 = vcombine.high %v4551_v43, %v4558_v12 }
 0x1a9   : >> { %v4559_v16 = vcombine.low %v4551_v43, %v4558_v12  ;;  %v2810_v4 = vand.u32 2147483647, %v2806_v3  ;;  %v9271_v38 = vsel %vm2824_vm4, 1.0, %v12191_v52  ;;  %v1100_v48 = vrot.slane %v9249_v46, %v9953_v39 }
 0x1aa   : >> { %v2772_v44 = vsub.f32 1.0, %v2768_v1  ;;  %v2773_v23 = vsub.f32 1.0, %v2769_v41  ;;  %v2811_v63 = vand.u32 2147483647, %v2807_v57  ;;  %4637 = vmatprep.subr.bf16.mxu0 %v4560_v34  ;;  %v2835_v37 = vrot.slane %v9271_v38, %v9814_v19 }
 0x1ab   : >> { %v2814_v2 = vsub.f32 1.0, %v2810_v4  ;;  %v2839_v27 = vrot.slane %v9271_v38, %v9821_v21  ;;  %v10499_v28 = vadd.f32 %v4897_v47, %v12169_v6  ;;  %4638 = vmatpush1.bf16.msra.mxu0 %v4559_v16  ;;  %v1101_v59 = vcombine.high %v1100_v48, %v1100_v48 }
 0x1ac   : >> { %v2776_v42 = vmax.f32 %v2772_v44, 0.0  ;;  %v2777_v13 = vmax.f32 %v2773_v23, 0.0  ;;  %v2815_v20 = vsub.f32 1.0, %v2811_v63  ;;  %v10504_v26 = vpack.c.bf16 %v960_v15, %v960_v15 }
 0x1ad   : >> { %v2818_v54 = vmax.f32 %v2814_v2, 0.0  ;;  %v1108_v60 = vrot.slane %v1100_v48, %v9953_v39  ;;  %v10509_v56 = vrot.slane %v10499_v28, %v9814_v19  ;;  %v1115_v58 = vrot.slane %v1101_v59, %v9953_v39 }
 0x1ae   : >> { %v10512_v62 = vpack.c.bf16 %v2776_v42, %v2776_v42  ;;  %v10514_v11 = vpack.c.bf16 %v2777_v13, %v2777_v13  ;;  %v2819_v40 = vmax.f32 %v2815_v20, 0.0  ;;  %v10518_v15 = vrot.slane %v10499_v28, %v9821_v21 }
 0x1af   : >> { %v2852_v45 = vmul.f32 %v2835_v37, %v2818_v54  ;;  %v1140_v53 = vunpack.i.h.s16 %v1108_v60  ;;  %v9251_v55 = vpack.i.b16 %v1108_v60, %v1108_v60  ;;  %v1142_v43 = vunpack.i.h.s16 %v1115_v58 }
 0x1b0   : >> { %v2853_v36 = vmul.f32 %v2839_v27, %v2819_v40  ;;  %v9252_v0 = vpack.i.b16 %v1115_v58, %v1115_v58  ;;  %v10522_v9 = vmul.f32 %v10509_v56, %v12168_v49  ;;  %v10528_v12 = vmul.f32 %v10518_v15, %v12167_v50 }
 0x1b1   : >> { %v1148_v10 = vpack.i.b16 %v1140_v53, %v1140_v53  ;;  %v1158_v29 = vrot.slane %v9251_v55, %v9814_v19  ;;  %v1162_v33 = vrot.slane %v9251_v55, %v9821_v21  ;;  %v1150_v3 = vpack.i.b16 %v1142_v43, %v1142_v43 }
 0x1b2   : >> { %v9273_v47 = vpack.c.bf16 %v2853_v36, %v2852_v45  ;;  %v1174_v46 = vrot.slane %v9252_v0, %v9814_v19  ;;  %v1178_v1 = vrot.slane %v9252_v0, %v9821_v21  ;;  %vm4899_vm5 = vcmp.lt.f32.partialorder %v10499_v28, %v9795_v7 }
 0x1b3   : >> { %v1166_v41 = vrot.slane %v1148_v10, %v9814_v19  ;;  %v1170_v57 = vrot.slane %v1148_v10, %v9821_v21  ;;  %v1220_v34 = vpack.i.b16 %v1158_v29, %v1158_v29  ;;  %v1227_v16 = vpack.i.b16 %v1162_v33, %v1162_v33 }
 0x1b4   : >> { %v1182_v4 = vrot.slane %v1150_v3, %v9814_v19  ;;  %v1186_v38 = vrot.slane %v1150_v3, %v9821_v21  ;;  %v2871_v48 = vrot.slane %v9273_v47, %v9953_v39  ;;  %v1248_v44 = vpack.i.b16 %v1174_v46, %v1174_v46 }
 0x1b5   : >> { %v1255_v23 = vpack.i.b16 %v1178_v1, %v1178_v1  ;;  %v1234_v63 = vpack.i.b16 %v1166_v41, %v1166_v41  ;;  %v1241_v2 = vpack.i.b16 %v1170_v57, %v1170_v57  ;;  %v10538_v37 = vrot.slane %v1220_v34, %v9814_v19 }
 0x1b6   : >> { %v1262_v27 = vpack.i.b16 %v1182_v4, %v1182_v4  ;;  %v1269_v59 = vpack.i.b16 %v1186_v38, %v1186_v38  ;;  %v2872_v42 = vcombine.high %v2871_v48, %v2871_v48  ;;  %v1253_v13 = vrot.slane %v1248_v44, %v9814_v19 }
 0x1b7   : >> { %v1260_v20 = vrot.slane %v1255_v23, %v9814_v19  ;;  %v1239_v54 = vrot.slane %v1234_v63, %v9814_v19  ;;  %v1246_v60 = vrot.slane %v1241_v2, %v9814_v19  ;;  %v10545_v58 = vrot.slane %v2871_v48, %v9953_v39 }
 0x1b8   : >> { %v1267_v40 = vrot.slane %v1262_v27, %v9814_v19  ;;  %v1274_v45 = vrot.slane %v1269_v59, %v9814_v19  ;;  %v2886_v53 = vrot.slane %v2872_v42, %v9953_v39  ;;  %v1335_v55 = vmul.bf16 %v1253_v13, %v10461_v61 }
 0x1b9   : >> { %v1336_v43 = vmul.bf16 %v1260_v20, %v10504_v26  ;;  %v1333_v36 = vmul.bf16 %v1239_v54, %v10461_v61  ;;  %v1334_v0 = vmul.bf16 %v1246_v60, %v10504_v26  ;;  %v2911_v10 = vunpack.i.h.s16 %v10545_v58 }
 0x1ba   : >> { %v1337_v29 = vmul.bf16 %v1267_v40, %v10461_v61  ;;  %v1338_v33 = vmul.bf16 %v1274_v45, %v10504_v26  ;;  %v2913_v3 = vunpack.i.h.s16 %v2886_v53  ;;  %v9276_v47 = vpack.i.b16 %v2886_v53, %v2886_v53 }
 0x1bb   : >> { %v1409_v46 = vcombine.low %v1335_v55, %v1336_v43  ;;  %v1386_v1 = vcombine.low %v1333_v36, %v1334_v0  ;;  %v2919_v41 = vpack.i.b16 %v2911_v10, %v2911_v10  ;;  %v10558_v57 = vrot.slane %v1227_v16, %v9814_v19 }
 0x1bc   : >> { %v1432_v34 = vcombine.low %v1337_v29, %v1338_v33  ;;  %v2921_v4 = vpack.i.b16 %v2913_v3, %v2913_v3  ;;  %v2945_v38 = vrot.slane %v9276_v47, %v9814_v19  ;;  %v10562_v48 = vrot.slane %v9276_v47, %v9821_v21 }
 0x1bd   : >> { %v1416_v44 = vrot.slane %v1409_v46, %v9953_v39  ;;  %v10566_v23 = vrot.slane %v1386_v1, %v9953_v39  ;;  %v10569_v63 = vrot.slane %v2919_v41, %v9814_v19  ;;  %v10572_v2 = vrot.slane %v2919_v41, %v9821_v21 }
 0x1be   : >> { %v1439_v16 = vrot.slane %v1432_v34, %v9953_v39  ;;  %v2953_v27 = vrot.slane %v2921_v4, %v9814_v19  ;;  %v2957_v59 = vrot.slane %v2921_v4, %v9821_v21  ;;  %v3019_v42 = vpack.i.b16 %v2945_v38, %v2945_v38 }
 0x1bf   : >> { %v1417_v13 = vcombine.high %v1416_v44, %v1416_v44  ;;  %v1424_v20 = vrot.slane %v1416_v44, %v9953_v39 }
 0x1c0   : >> { %v1440_v40 = vcombine.high %v1439_v16, %v1439_v16  ;;  %v1447_v45 = vrot.slane %v1439_v16, %v9953_v39  ;;  %v3033_v53 = vpack.i.b16 %v2953_v27, %v2953_v27  ;;  %v3040_v55 = vpack.i.b16 %v2957_v59, %v2957_v59 }
 0x1c1   : >> { %v1431_v43 = vrot.slane %v1417_v13, %v9953_v39  ;;  %v1556_v36 = vunpack.i.h.s16 %v1424_v20  ;;  %v9259_v0 = vpack.i.b16 %v1424_v20, %v1424_v20  ;;  %v10585_v10 = vrot.slane %v3019_v42, %v9814_v19 }
 0x1c2   : >> { %v1454_v29 = vrot.slane %v1440_v40, %v9953_v39  ;;  %v1560_v33 = vunpack.i.h.s16 %v1447_v45  ;;  %v9261_v3 = vpack.i.b16 %v1447_v45, %v1447_v45  ;;  %v3038_v47 = vrot.slane %v3033_v53, %v9814_v19 }
 0x1c3   : >> { %v3045_v46 = vrot.slane %v3040_v55, %v9814_v19  ;;  %v1558_v1 = vunpack.i.h.s16 %v1431_v43  ;;  %v1588_v41 = vpack.i.b16 %v1556_v36, %v1556_v36  ;;  %v10590_v34 = vpack.i.b16 %v1431_v43, %v1431_v43 }
 0x1c4   : >> { %v1562_v4 = vunpack.i.h.s16 %v1454_v29  ;;  %v1592_v38 = vpack.i.b16 %v1560_v33, %v1560_v33  ;;  %v9262_v44 = vpack.i.b16 %v1454_v29, %v1454_v29  ;;  %v1710_v16 = vrot.slane %v9261_v3, %v9814_v19 }
 0x1c5   : >> { %v1714_v27 = vrot.slane %v9261_v3, %v9821_v21  ;;  %v3108_v59 = vmul.bf16 %v3038_v47, %v10512_v62  ;;  %v3109_v42 = vmul.bf16 %v3045_v46, %v10514_v11  ;;  %v10596_v13 = vpack.i.b16 %v1558_v1, %v1558_v1 }
 0x1c6   : >> { %v1594_v20 = vpack.i.b16 %v1562_v4, %v1562_v4  ;;  %v1718_v40 = vrot.slane %v1592_v38, %v9814_v19  ;;  %v1722_v45 = vrot.slane %v1592_v38, %v9821_v21  ;;  %v1726_v53 = vrot.slane %v9262_v44, %v9814_v19 }
 0x1c7   : >> { %v1730_v55 = vrot.slane %v9262_v44, %v9821_v21  ;;  %v2036_v43 = vpack.i.b16 %v1710_v16, %v1710_v16  ;;  %v2043_v36 = vpack.i.b16 %v1714_v27, %v1714_v27  ;;  %v3203_v29 = vcombine.low %v3108_v59, %v3109_v42 }
 0x1c8   : >> { %v1734_v33 = vrot.slane %v1594_v20, %v9814_v19  ;;  %v1738_v3 = vrot.slane %v1594_v20, %v9821_v21  ;;  %v2050_v47 = vpack.i.b16 %v1718_v40, %v1718_v40  ;;  %v2057_v46 = vpack.i.b16 %v1722_v45, %v1722_v45 }
 0x1c9   : >> { %v2041_v1 = vrot.slane %v2036_v43, %v9814_v19  ;;  %v2048_v4 = vrot.slane %v2043_v36, %v9814_v19  ;;  %v2064_v60 = vpack.i.b16 %v1726_v53, %v1726_v53  ;;  %v2071_v54 = vpack.i.b16 %v1730_v55, %v1730_v55 }
 0x1ca   : >> { %v2055_v38 = vrot.slane %v2050_v47, %v9814_v19  ;;  %v2062_v6 = vrot.slane %v2057_v46, %v9814_v19  ;;  %v2078_v44 = vpack.i.b16 %v1734_v33, %v1734_v33  ;;  %v2085_v16 = vpack.i.b16 %v1738_v3, %v1738_v3 }
 0x1cb   : >> { %v2069_v27 = vrot.slane %v2064_v60, %v9814_v19  ;;  %v2076_v59 = vrot.slane %v2071_v54, %v9814_v19  ;;  %v2339_v42 = vmul.bf16 %v2041_v1, %v10001_v14  ;;  %v2340_v20 = vmul.bf16 %v2048_v4, %v10003_v18 }
 0x1cc   : >> { %v2083_v40 = vrot.slane %v2078_v44, %v9814_v19  ;;  %v2090_v45 = vrot.slane %v2085_v16, %v9814_v19  ;;  %v2341_v53 = vmul.bf16 %v2055_v38, %v10001_v14  ;;  %v2342_v55 = vmul.bf16 %v2062_v6, %v10003_v18 }
 0x1cd   : >> { %v2343_v43 = vmul.bf16 %v2069_v27, %v10001_v14  ;;  %v2344_v36 = vmul.bf16 %v2076_v59, %v10003_v18  ;;  %v2539_v33 = vcombine.low %v2339_v42, %v2340_v20  ;;  %v3210_v60 = vrot.slane %v3203_v29, %v9953_v39 }
 0x1ce   : >> { %v2345_v54 = vmul.bf16 %v2083_v40, %v10001_v14  ;;  %v2346_v3 = vmul.bf16 %v2090_v45, %v10003_v18  ;;  %v2547_v47 = vcombine.low %v2341_v53, %v2342_v55  ;;  %v10622_v46 = vrot.slane %v9259_v0, %v9814_v19 }
 0x1cf   : >> { %v2546_v1 = vrot.slane %v2539_v33, %v9999_v8  ;;  %v2555_v4 = vcombine.low %v2343_v43, %v2344_v36  ;;  %v3211_v38 = vcombine.high %v3210_v60, %v3210_v60  ;;  %v3218_v6 = vrot.slane %v3210_v60, %v9953_v39 }
 0x1d0   : >> { %v2554_v44 = vrot.slane %v2547_v47, %v9999_v8  ;;  %v2563_v16 = vcombine.low %v2345_v54, %v2346_v3  ;;  %v10628_v27 = vrot.slane %v9259_v0, %v9821_v21  ;;  %v10631_v29 = vrot.slane %v1588_v41, %v9814_v19 }
 0x1d1   : >> { %v2562_v59 = vrot.slane %v2555_v4, %v9999_v8  ;;  %v3225_v42 = vrot.slane %v3211_v38, %v9953_v39  ;;  %v3331_v20 = vunpack.i.h.s16 %v3218_v6  ;;  %v9285_v40 = vpack.i.b16 %v3218_v6, %v3218_v6 }
 0x1d2   : >> { %v2570_v45 = vrot.slane %v2563_v16, %v9999_v8  ;;  %v4726_v53 = vcombine.low %v2546_v1, %v2554_v44  ;;  %v10637_v55 = vrot.slane %v1588_v41, %v9821_v21  ;;  %v10641_v43 = vrot.slane %v10590_v34, %v9814_v19 }
 0x1d3   : >> { %v3333_v0 = vunpack.i.h.s16 %v3225_v42  ;;  %v3363_v36 = vpack.i.b16 %v3331_v20, %v3331_v20  ;;  %v9286_v33 = vpack.i.b16 %v3225_v42, %v3225_v42  ;;  %v3481_v60 = vrot.slane %v9285_v40, %v9814_v19 }
 0x1d4   : >> { %v4727_v54 = vcombine.low %v2562_v59, %v2570_v45  ;;  %v4734_v3 = vrot.slane %v4726_v53, %v9999_v8  ;;  %v3485_v47 = vrot.slane %v9285_v40, %v9821_v21  ;;  %v10648_v1 = vrot.slane %v10590_v34, %v9821_v21 }
 0x1d5   : >> { %v3365_v41 = vpack.i.b16 %v3333_v0, %v3333_v0  ;;  %v3489_v4 = vrot.slane %v3363_v36, %v9814_v19  ;;  %v3493_v38 = vrot.slane %v3363_v36, %v9821_v21  ;;  %v3497_v6 = vrot.slane %v9286_v33, %v9814_v19 }
 0x1d6   : >> { %v4741_v44 = vrot.slane %v4727_v54, %v9999_v8  ;;  %v3501_v16 = vrot.slane %v9286_v33, %v9821_v21  ;;  %v3807_v59 = vpack.i.b16 %v3481_v60, %v3481_v60  ;;  %v3814_v42 = vpack.i.b16 %v3485_v47, %v3485_v47 }
 0x1d7   : >> { %v3505_v20 = vrot.slane %v3365_v41, %v9814_v19  ;;  %v3509_v40 = vrot.slane %v3365_v41, %v9821_v21  ;;  %v3821_v45 = vpack.i.b16 %v3489_v4, %v3489_v4  ;;  %v3828_v34 = vpack.i.b16 %v3493_v38, %v3493_v38 }
 0x1d8   : >> { %v4743_v53 = vcombine.high %v4734_v3, %v4741_v44  ;;  %v4742_v0 = vcombine.low %v4734_v3, %v4741_v44  ;;  %v3812_v49 = vrot.slane %v3807_v59, %v9814_v19  ;;  %v3819_v36 = vrot.slane %v3814_v42, %v9814_v19 }
 0x1d9   : >> { %v3826_v50 = vrot.slane %v3821_v45, %v9814_v19  ;;  %v3833_v54 = vrot.slane %v3828_v34, %v9814_v19  ;;  %v3835_v52 = vpack.i.b16 %v3497_v6, %v3497_v6  ;;  %v3842_v33 = vpack.i.b16 %v3501_v16, %v3501_v16 }
 0x1da   : >> { %4840 = vmatprep.subr.bf16.mxu1 %v4743_v53  ;;  %v3849_v60 = vpack.i.b16 %v3505_v20, %v3505_v20  ;;  %v3856_v47 = vpack.i.b16 %v3509_v40, %v3509_v40  ;;  %v4110_v5 = vmul.bf16 %v3812_v49, %v10421_v35  ;;  %v4111_v41 = vmul.bf16 %v3819_v36, %v10431_v22 }
 0x1db   : >> { %4841 = vmatpush1.bf16.msra.mxu1 %v4742_v0  ;;  %v3840_v3 = vrot.slane %v3835_v52, %v9814_v19  ;;  %v3847_v4 = vrot.slane %v3842_v33, %v9814_v19  ;;  %v4112_v38 = vmul.bf16 %v3826_v50, %v10421_v35  ;;  %v4113_v44 = vmul.bf16 %v3833_v54, %v10431_v22 }
 0x1dc   : >> { %v3854_v59 = vrot.slane %v3849_v60, %v9814_v19  ;;  %v3861_v6 = vrot.slane %v3856_v47, %v9814_v19  ;;  %v4310_v16 = vcombine.low %v4110_v5, %v4111_v41  ;;  %v1702_v42 = vrot.slane %v10596_v13, %v9814_v19 }
 0x1dd   : >> { %v4114_v49 = vmul.bf16 %v3840_v3, %v10421_v35  ;;  %v4115_v20 = vmul.bf16 %v3847_v4, %v10431_v22  ;;  %v4318_v40 = vcombine.low %v4112_v38, %v4113_v44  ;;  %v1706_v52 = vrot.slane %v10596_v13, %v9821_v21 }
 0x1de   : >> { %v4116_v50 = vmul.bf16 %v3854_v59, %v10421_v35  ;;  %v4117_v45 = vmul.bf16 %v3861_v6, %v10431_v22  ;;  %v4317_v34 = vrot.slane %v4310_v16, %v9999_v8  ;;  %v1980_v5 = vpack.i.b16 %v10622_v46, %v10622_v46 }
 0x1df   : >> { %v4325_v53 = vrot.slane %v4318_v40, %v9999_v8  ;;  %v4326_v0 = vcombine.low %v4114_v49, %v4115_v20  ;;  %v1987_v36 = vpack.i.b16 %v10628_v27, %v10628_v27  ;;  %v1994_v54 = vpack.i.b16 %v10631_v29, %v10631_v29 }
 0x1e0   : >> { %v4334_v33 = vcombine.low %v4116_v50, %v4117_v45  ;;  %v1985_v13 = vrot.slane %v1980_v5, %v9814_v19  ;;  %v2001_v60 = vpack.i.b16 %v10637_v55, %v10637_v55  ;;  %v2008_v47 = vpack.i.b16 %v10641_v43, %v10641_v43 }
 0x1e1   : >> { %v4333_v46 = vrot.slane %v4326_v0, %v9999_v8  ;;  %v4525_v41 = vcombine.low %v4317_v34, %v4325_v53  ;;  %v1992_v3 = vrot.slane %v1987_v36, %v9814_v19  ;;  %v1999_v4 = vrot.slane %v1994_v54, %v9814_v19 }
 0x1e2   : >> { %v4341_v27 = vrot.slane %v4334_v33, %v9999_v8  ;;  %v2006_v29 = vrot.slane %v2001_v60, %v9814_v19  ;;  %v2013_v38 = vrot.slane %v2008_v47, %v9814_v19  ;;  %v2015_v44 = vpack.i.b16 %v10648_v1, %v10648_v1 }
 0x1e3   : >> { %v4533_v55 = vrot.slane %v4525_v41, %v9999_v8  ;;  %v2022_v59 = vpack.i.b16 %v1702_v42, %v1702_v42  ;;  %v2029_v43 = vpack.i.b16 %v1706_v52, %v1706_v52  ;;  %v2331_v6 = vmul.bf16 %v1985_v13, %v10001_v14 }
 0x1e4   : >> { %v4526_v16 = vcombine.low %v4333_v46, %v4341_v27  ;;  %v2020_v49 = vrot.slane %v2015_v44, %v9814_v19  ;;  %v2332_v20 = vmul.bf16 %v1992_v3, %v10003_v18  ;;  %v2333_v40 = vmul.bf16 %v1999_v4, %v10001_v14 }
 0x1e5   : >> { %v2027_v50 = vrot.slane %v2022_v59, %v9814_v19  ;;  %v2034_v45 = vrot.slane %v2029_v43, %v9814_v19  ;;  %v2334_v34 = vmul.bf16 %v2006_v29, %v10003_v18  ;;  %v2335_v1 = vmul.bf16 %v2013_v38, %v10001_v14 }
 0x1e6   : >> { %v4540_v42 = vrot.slane %v4526_v16, %v9999_v8  ;;  %v2336_v52 = vmul.bf16 %v2020_v49, %v10003_v18  ;;  %v2507_v5 = vcombine.low %v2331_v6, %v2332_v20  ;;  %v12192_v53 = vpack.i.b16 %v10562_v48, %v10562_v48 }
 0x1e7   : >> { %v2337_v36 = vmul.bf16 %v2027_v50, %v10001_v14  ;;  %v2338_v54 = vmul.bf16 %v2034_v45, %v10003_v18  ;;  %v2515_v33 = vcombine.low %v2333_v40, %v2334_v34  ;;  %v3106_v13 = vmul.bf16 %v10585_v10, %v10512_v62 }
 0x1e8   : >> { %v3031_v0 = vrot.slane %v12192_v53, %v9814_v19  ;;  %v4542_v60 = vcombine.high %v4533_v55, %v4540_v42  ;;  %v4541_v47 = vcombine.low %v4533_v55, %v4540_v42  ;;  %v2514_v46 = vrot.slane %v2507_v5, %v9999_v8 }
 0x1e9   : >> { %v2523_v41 = vcombine.low %v2335_v1, %v2336_v52  ;;  %v2522_v3 = vrot.slane %v2515_v33, %v9999_v8  ;;  %v2531_v4 = vcombine.low %v2337_v36, %v2338_v54  ;;  %v1401_v48 = vrot.slane %v10566_v23, %v9953_v39 }
 0x1ea   : >> { %v3107_v27 = vmul.bf16 %v3031_v0, %v10514_v11  ;;  %4639 = vmatprep.subr.bf16.mxu0 %v4542_v60  ;;  %v12193_v10 = vcombine.high %v10566_v23, %v10566_v23  ;;  %v3005_v44 = vpack.i.b16 %v10569_v63, %v10569_v63  ;;  %v3012_v55 = vpack.i.b16 %v10572_v2, %v10572_v2 }
 0x1eb   : >> { %v2530_v29 = vrot.slane %v2523_v41, %v9999_v8  ;;  %4640 = vmatpush1.bf16.msra.mxu0 %v4541_v47  ;;  %v2538_v59 = vrot.slane %v2531_v4, %v9999_v8  ;;  %v4708_v43 = vcombine.low %v2514_v46, %v2522_v3  ;;  %v1552_v16 = vunpack.i.h.s16 %v1401_v48 }
 0x1ec   : >> { %v1408_v38 = vrot.slane %v12193_v10, %v9953_v39  ;;  %v3180_v6 = vcombine.low %v3106_v13, %v3107_v27  ;;  %v9257_v20 = vpack.i.b16 %v1401_v48, %v1401_v48  ;;  %v10733_v50 = vrot.slane %v3005_v44, %v9814_v19 }
 0x1ed   : >> { %v4709_v23 = vcombine.low %v2530_v29, %v2538_v59  ;;  %v4716_v45 = vrot.slane %v4708_v43, %v9999_v8  ;;  %v1584_v34 = vpack.i.b16 %v1552_v16, %v1552_v16 }
 0x1ee   : >> { %v1554_v49 = vunpack.i.h.s16 %v1408_v38  ;;  %v9258_v40 = vpack.i.b16 %v1408_v38, %v1408_v38  ;;  %v3187_v63 = vrot.slane %v3180_v6, %v9953_v39  ;;  %v1646_v42 = vrot.slane %v9257_v20, %v9814_v19 }
 0x1ef   : >> { %v1650_v52 = vrot.slane %v9257_v20, %v9821_v21  ;;  %v4723_v53 = vrot.slane %v4709_v23, %v9999_v8  ;;  %v1654_v54 = vrot.slane %v1584_v34, %v9814_v19  ;;  %v1658_v33 = vrot.slane %v1584_v34, %v9821_v21 }
 0x1f0   : >> { %v1586_v1 = vpack.i.b16 %v1554_v49, %v1554_v49  ;;  %v10740_v5 = vrot.slane %v9258_v40, %v9814_v19  ;;  %v3188_v0 = vcombine.high %v3187_v63, %v3187_v63  ;;  %v3195_v36 = vrot.slane %v3187_v63, %v9953_v39 }
 0x1f1   : >> { %v10747_v13 = vrot.slane %v9258_v40, %v9821_v21  ;;  %v4725_v46 = vcombine.high %v4716_v45, %v4723_v53  ;;  %v4724_v41 = vcombine.low %v4716_v45, %v4723_v53  ;;  %v1924_v48 = vpack.i.b16 %v1646_v42, %v1646_v42 }
 0x1f2   : >> { %v10750_v60 = vrot.slane %v1586_v1, %v9814_v19  ;;  %v10753_v47 = vrot.slane %v1586_v1, %v9821_v21  ;;  %v3202_v3 = vrot.slane %v3188_v0, %v9953_v39  ;;  %v3327_v4 = vunpack.i.h.s16 %v3195_v36 }
 0x1f3   : >> { %v9283_v27 = vpack.i.b16 %v3195_v36, %v3195_v36  ;;  %v1931_v29 = vpack.i.b16 %v1650_v52, %v1650_v52  ;;  %v1938_v10 = vpack.i.b16 %v1654_v54, %v1654_v54  ;;  %4842 = vmatprep.subr.bf16.mxu1 %v4725_v46  ;;  %v1945_v43 = vpack.i.b16 %v1658_v33, %v1658_v33 }
 0x1f4   : >> { %v3329_v38 = vunpack.i.h.s16 %v3202_v3  ;;  %v3359_v44 = vpack.i.b16 %v3327_v4, %v3327_v4  ;;  %v9284_v59 = vpack.i.b16 %v3202_v3, %v3202_v3  ;;  %4843 = vmatpush1.bf16.msra.mxu1 %v4724_v41  ;;  %v10759_v49 = vrot.slane %v1924_v48, %v9814_v19 }
 0x1f5   : >> { %v3449_v6 = vrot.slane %v9283_v27, %v9814_v19  ;;  %v3453_v16 = vrot.slane %v9283_v27, %v9821_v21  ;;  %v1936_v20 = vrot.slane %v1931_v29, %v9814_v19  ;;  %v1943_v52 = vrot.slane %v1938_v10, %v9814_v19 }
 0x1f6   : >> { %v3361_v40 = vpack.i.b16 %v3329_v38, %v3329_v38  ;;  %v3457_v23 = vrot.slane %v3359_v44, %v9814_v19  ;;  %v3461_v45 = vrot.slane %v3359_v44, %v9821_v21  ;;  %v3465_v63 = vrot.slane %v9284_v59, %v9814_v19 }
 0x1f7   : >> { %v3469_v34 = vrot.slane %v9284_v59, %v9821_v21  ;;  %v3751_v1 = vpack.i.b16 %v3449_v6, %v3449_v6  ;;  %v3758_v42 = vpack.i.b16 %v3453_v16, %v3453_v16 }
 0x1f8   : >> { %v3473_v53 = vrot.slane %v3361_v40, %v9814_v19  ;;  %v3477_v0 = vrot.slane %v3361_v40, %v9821_v21  ;;  %v3765_v36 = vpack.i.b16 %v3457_v23, %v3457_v23  ;;  %v3772_v54 = vpack.i.b16 %v3461_v45, %v3461_v45 }
 0x1f9   : >> { %v3756_v33 = vrot.slane %v3751_v1, %v9814_v19  ;;  %v3763_v46 = vrot.slane %v3758_v42, %v9814_v19  ;;  %v3779_v41 = vpack.i.b16 %v3465_v63, %v3465_v63  ;;  %v3786_v3 = vpack.i.b16 %v3469_v34, %v3469_v34 }
 0x1fa   : >> { %v3770_v4 = vrot.slane %v3765_v36, %v9814_v19  ;;  %v3777_v27 = vrot.slane %v3772_v54, %v9814_v19  ;;  %v3793_v48 = vpack.i.b16 %v3473_v53, %v3473_v53  ;;  %v3800_v29 = vpack.i.b16 %v3477_v0, %v3477_v0 }
 0x1fb   : >> { %v3784_v10 = vrot.slane %v3779_v41, %v9814_v19  ;;  %v3791_v38 = vrot.slane %v3786_v3, %v9814_v19  ;;  %v4102_v44 = vmul.bf16 %v3756_v33, %v10421_v35  ;;  %v4103_v59 = vmul.bf16 %v3763_v46, %v10431_v22 }
 0x1fc   : >> { %v3798_v6 = vrot.slane %v3793_v48, %v9814_v19  ;;  %v3805_v16 = vrot.slane %v3800_v29, %v9814_v19  ;;  %v4104_v40 = vmul.bf16 %v3770_v4, %v10421_v35  ;;  %v4105_v23 = vmul.bf16 %v3777_v27, %v10431_v22 }
 0x1fd   : >> { %v4106_v45 = vmul.bf16 %v3784_v10, %v10421_v35  ;;  %v4107_v63 = vmul.bf16 %v3791_v38, %v10431_v22  ;;  %v4278_v34 = vcombine.low %v4102_v44, %v4103_v59  ;;  %v1950_v1 = vrot.slane %v1945_v43, %v9814_v19 }
 0x1fe   : >> { %v4108_v42 = vmul.bf16 %v3798_v6, %v10421_v35  ;;  %v4109_v53 = vmul.bf16 %v3805_v16, %v10431_v22  ;;  %v4286_v0 = vcombine.low %v4104_v40, %v4105_v23  ;;  %v1952_v36 = vpack.i.b16 %v10740_v5, %v10740_v5 }
 0x1ff   : >> { %v4285_v54 = vrot.slane %v4278_v34, %v9999_v8  ;;  %v4294_v33 = vcombine.low %v4106_v45, %v4107_v63  ;;  %v1959_v46 = vpack.i.b16 %v10747_v13, %v10747_v13  ;;  %v1966_v41 = vpack.i.b16 %v10750_v60, %v10750_v60 }
 0x200   : >> { %v4293_v3 = vrot.slane %v4286_v0, %v9999_v8  ;;  %v4302_v43 = vcombine.low %v4108_v42, %v4109_v53  ;;  %v1957_v4 = vrot.slane %v1952_v36, %v9814_v19  ;;  %v1973_v27 = vpack.i.b16 %v10753_v47, %v10753_v47 }
 0x201   : >> { %v4301_v48 = vrot.slane %v4294_v33, %v9999_v8  ;;  %v1964_v5 = vrot.slane %v1959_v46, %v9814_v19  ;;  %v1971_v29 = vrot.slane %v1966_v41, %v9814_v19  ;;  %v2323_v13 = vmul.bf16 %v10759_v49, %v10001_v14 }
 0x202   : >> { %v4309_v10 = vrot.slane %v4302_v43, %v9999_v8  ;;  %v4507_v60 = vcombine.low %v4285_v54, %v4293_v3  ;;  %v1978_v38 = vrot.slane %v1973_v27, %v9814_v19  ;;  %v2324_v44 = vmul.bf16 %v1936_v20, %v10003_v18 }
 0x203   : >> { %v2325_v59 = vmul.bf16 %v1943_v52, %v10001_v14  ;;  %v2326_v47 = vmul.bf16 %v1950_v1, %v10003_v18  ;;  %v2327_v6 = vmul.bf16 %v1957_v4, %v10001_v14  ;;  %v2328_v16 = vmul.bf16 %v1964_v5, %v10003_v18 }
 0x204   : >> { %v4508_v40 = vcombine.low %v4301_v48, %v4309_v10  ;;  %v4515_v23 = vrot.slane %v4507_v60, %v9999_v8  ;;  %v2329_v49 = vmul.bf16 %v1971_v29, %v10001_v14  ;;  %v2330_v45 = vmul.bf16 %v1978_v38, %v10003_v18 }
 0x205   : >> { %v2475_v63 = vcombine.low %v2323_v13, %v2324_v44  ;;  %v2483_v34 = vcombine.low %v2325_v59, %v2326_v47  ;;  %v2491_v42 = vcombine.low %v2327_v6, %v2328_v16  ;;  %v3017_v20 = vrot.slane %v3012_v55, %v9814_v19 }
 0x206   : >> { %v4522_v52 = vrot.slane %v4508_v40, %v9999_v8  ;;  %v2499_v1 = vcombine.low %v2329_v49, %v2330_v45  ;;  %v3104_v53 = vmul.bf16 %v10733_v50, %v10512_v62  ;;  %v1331_v0 = vmul.bf16 %v10538_v37, %v10461_v61 }
 0x207   : >> { %v2482_v36 = vrot.slane %v2475_v63, %v9999_v8  ;;  %v2490_v54 = vrot.slane %v2483_v34, %v9999_v8  ;;  %v2498_v33 = vrot.slane %v2491_v42, %v9999_v8  ;;  %v3105_v46 = vmul.bf16 %v3017_v20, %v10514_v11 }
 0x208   : >> { %v4524_v41 = vcombine.high %v4515_v23, %v4522_v52  ;;  %v4523_v2 = vcombine.low %v4515_v23, %v4522_v52  ;;  %v2506_v55 = vrot.slane %v2499_v1, %v9999_v8  ;;  %v1332_v3 = vmul.bf16 %v10558_v57, %v10504_v26 }
 0x209   : >> { %v4690_v43 = vcombine.low %v2482_v36, %v2490_v54  ;;  %v3157_v50 = vcombine.low %v3104_v53, %v3105_v46  ;;  %v9275_v61 = vpack.i.b16 %v10545_v58, %v10545_v58  ;;  %v10832_v37 = vadd.f32 %v10522_v9, %v9862_v24 }
 0x20a   : >> { %4641 = vmatprep.subr.bf16.mxu0 %v4524_v41  ;;  %v4691_v4 = vcombine.low %v2498_v33, %v2506_v55  ;;  %v1363_v27 = vcombine.low %v1331_v0, %v1332_v3  ;;  %v10836_v48 = vadd.f32 %v10528_v12, %v9864_v51  ;;  %v4915_v5 = vmul.f32 %v10509_v56, %v9850_v31 }
 0x20b   : >> { %4642 = vmatpush1.bf16.msra.mxu0 %v4523_v2  ;;  %v4698_v26 = vrot.slane %v4690_v43, %v9999_v8  ;;  %v3164_v57 = vrot.slane %v3157_v50, %v9953_v39  ;;  %v2929_v58 = vrot.slane %v9275_v61, %v9814_v19  ;;  %v2933_v9 = vrot.slane %v9275_v61, %v9821_v21 }
 0x20c   : >> { %v4705_v29 = vrot.slane %v4691_v4, %v9999_v8  ;;  %v1370_v13 = vrot.slane %v1363_v27, %v9953_v39  ;;  %v10848_v12 = vmul.f32 %v10518_v15, %v9852_v32  ;;  %v10851_v10 = vadd.f32 %v4915_v5, %v9846_v30 }
 0x20d   : >> { %v3165_v60 = vcombine.high %v3164_v57, %v3164_v57  ;;  %v3172_v38 = vrot.slane %v3164_v57, %v9953_v39  ;;  %v2991_v44 = vpack.i.b16 %v2929_v58, %v2929_v58  ;;  %v2998_v59 = vpack.i.b16 %v2933_v9, %v2933_v9 }
 0x20e   : >> { %v4707_v47 = vcombine.high %v4698_v26, %v4705_v29  ;;  %v4706_v6 = vcombine.low %v4698_v26, %v4705_v29  ;;  %v1371_v16 = vcombine.high %v1370_v13, %v1370_v13  ;;  %v1378_v40 = vrot.slane %v1370_v13, %v9953_v39 }
 0x20f   : >> { %v3179_v23 = vrot.slane %v3165_v60, %v9953_v39  ;;  %v3323_v49 = vunpack.i.h.s16 %v3172_v38  ;;  %v9281_v45 = vpack.i.b16 %v3172_v38, %v3172_v38  ;;  %v10857_v63 = vrot.slane %v2991_v44, %v9814_v19 }
 0x210   : >> { %4844 = vmatprep.subr.bf16.mxu1 %v4707_v47  ;;  %v1385_v34 = vrot.slane %v1371_v16, %v9953_v39  ;;  %v1548_v42 = vunpack.i.h.s16 %v1378_v40  ;;  %v9255_v20 = vpack.i.b16 %v1378_v40, %v1378_v40  ;;  %v10861_v52 = vrot.slane %v2998_v59, %v9814_v19 }
 0x211   : >> { %4845 = vmatpush1.bf16.msra.mxu1 %v4706_v6  ;;  %v3325_v1 = vunpack.i.h.s16 %v3179_v23  ;;  %v3355_v53 = vpack.i.b16 %v3323_v49, %v3323_v49  ;;  %v9282_v0 = vpack.i.b16 %v3179_v23, %v3179_v23  ;;  %v3417_v36 = vrot.slane %v9281_v45, %v9814_v19 }
 0x212   : >> { %v3421_v54 = vrot.slane %v9281_v45, %v9821_v21  ;;  %v1550_v33 = vunpack.i.h.s16 %v1385_v34  ;;  %v1580_v46 = vpack.i.b16 %v1548_v42, %v1548_v42  ;;  %v9256_v41 = vpack.i.b16 %v1385_v34, %v1385_v34 }
 0x213   : >> { %v3357_v2 = vpack.i.b16 %v3325_v1, %v3325_v1  ;;  %v3425_v55 = vrot.slane %v3355_v53, %v9814_v19  ;;  %v3429_v3 = vrot.slane %v3355_v53, %v9821_v21  ;;  %v3433_v43 = vrot.slane %v9282_v0, %v9814_v19 }
 0x214   : >> { %v3437_v50 = vrot.slane %v9282_v0, %v9821_v21  ;;  %v3695_v61 = vpack.i.b16 %v3417_v36, %v3417_v36  ;;  %v3702_v4 = vpack.i.b16 %v3421_v54, %v3421_v54  ;;  %v1582_v27 = vpack.i.b16 %v1550_v33, %v1550_v33 }
 0x215   : >> { %v3441_v5 = vrot.slane %v3357_v2, %v9814_v19  ;;  %v3445_v26 = vrot.slane %v3357_v2, %v9821_v21  ;;  %v3709_v57 = vpack.i.b16 %v3425_v55, %v3425_v55  ;;  %v3716_v58 = vpack.i.b16 %v3429_v3, %v3429_v3 }
 0x216   : >> { %v3700_v9 = vrot.slane %v3695_v61, %v9814_v19  ;;  %v3707_v29 = vrot.slane %v3702_v4, %v9814_v19  ;;  %v3723_v13 = vpack.i.b16 %v3433_v43, %v3433_v43  ;;  %v3730_v60 = vpack.i.b16 %v3437_v50, %v3437_v50 }
 0x217   : >> { %v3714_v38 = vrot.slane %v3709_v57, %v9814_v19  ;;  %v3721_v44 = vrot.slane %v3716_v58, %v9814_v19  ;;  %v3737_v59 = vpack.i.b16 %v3441_v5, %v3441_v5  ;;  %v3744_v47 = vpack.i.b16 %v3445_v26, %v3445_v26 }
 0x218   : >> { %v3728_v6 = vrot.slane %v3723_v13, %v9814_v19  ;;  %v3735_v16 = vrot.slane %v3730_v60, %v9814_v19  ;;  %v4094_v40 = vmul.bf16 %v3700_v9, %v10421_v35  ;;  %v4095_v23 = vmul.bf16 %v3707_v29, %v10431_v22 }
 0x219   : >> { %v3742_v49 = vrot.slane %v3737_v59, %v9814_v19  ;;  %v3749_v45 = vrot.slane %v3744_v47, %v9814_v19  ;;  %v4096_v34 = vmul.bf16 %v3714_v38, %v10421_v35  ;;  %v4097_v42 = vmul.bf16 %v3721_v44, %v10431_v22 }
 0x21a   : >> { %v4098_v1 = vmul.bf16 %v3728_v6, %v10421_v35  ;;  %v4099_v53 = vmul.bf16 %v3735_v16, %v10431_v22  ;;  %v4246_v0 = vcombine.low %v4094_v40, %v4095_v23  ;;  %v1614_v36 = vrot.slane %v9255_v20, %v9814_v19 }
 0x21b   : >> { %v4100_v54 = vmul.bf16 %v3742_v49, %v10421_v35  ;;  %v4101_v33 = vmul.bf16 %v3749_v45, %v10431_v22  ;;  %v4254_v2 = vcombine.low %v4096_v34, %v4097_v42  ;;  %v1618_v55 = vrot.slane %v9255_v20, %v9821_v21 }
 0x21c   : >> { %v4253_v3 = vrot.slane %v4246_v0, %v9999_v8  ;;  %v4262_v43 = vcombine.low %v4098_v1, %v4099_v53  ;;  %v1622_v50 = vrot.slane %v1580_v46, %v9814_v19  ;;  %v1626_v61 = vrot.slane %v1580_v46, %v9821_v21 }
 0x21d   : >> { %v4261_v4 = vrot.slane %v4254_v2, %v9999_v8  ;;  %v4270_v5 = vcombine.low %v4100_v54, %v4101_v33  ;;  %v1630_v26 = vrot.slane %v9256_v41, %v9814_v19  ;;  %v1634_v57 = vrot.slane %v9256_v41, %v9821_v21 }
 0x21e   : >> { %v4269_v58 = vrot.slane %v4262_v43, %v9999_v8  ;;  %v1638_v9 = vrot.slane %v1582_v27, %v9814_v19  ;;  %v1642_v20 = vrot.slane %v1582_v27, %v9821_v21  ;;  %v1868_v29 = vpack.i.b16 %v1614_v36, %v1614_v36 }
 0x21f   : >> { %v4277_v13 = vrot.slane %v4270_v5, %v9999_v8  ;;  %v4489_v60 = vcombine.low %v4253_v3, %v4261_v4  ;;  %v1875_v38 = vpack.i.b16 %v1618_v55, %v1618_v55  ;;  %v1882_v44 = vpack.i.b16 %v1622_v50, %v1622_v50 }
 0x220   : >> { %v1873_v46 = vrot.slane %v1868_v29, %v9814_v19  ;;  %v1889_v59 = vpack.i.b16 %v1626_v61, %v1626_v61  ;;  %v1896_v47 = vpack.i.b16 %v1630_v26, %v1630_v26  ;;  %v1903_v6 = vpack.i.b16 %v1634_v57, %v1634_v57 }
 0x221   : >> { %v4490_v16 = vcombine.low %v4269_v58, %v4277_v13  ;;  %v4497_v41 = vrot.slane %v4489_v60, %v9999_v8  ;;  %v1880_v40 = vrot.slane %v1875_v38, %v9814_v19  ;;  %v1887_v23 = vrot.slane %v1882_v44, %v9814_v19 }
 0x222   : >> { %v1894_v27 = vrot.slane %v1889_v59, %v9814_v19  ;;  %v1901_v49 = vrot.slane %v1896_v47, %v9814_v19  ;;  %v1908_v45 = vrot.slane %v1903_v6, %v9814_v19  ;;  %v1910_v34 = vpack.i.b16 %v1638_v9, %v1638_v9 }
 0x223   : >> { %v4504_v42 = vrot.slane %v4490_v16, %v9999_v8  ;;  %v1917_v1 = vpack.i.b16 %v1642_v20, %v1642_v20  ;;  %v2315_v53 = vmul.bf16 %v1873_v46, %v10001_v14  ;;  %v2316_v0 = vmul.bf16 %v1880_v40, %v10003_v18  ;;  %v12196_v46 = vld [vmem:[#allocation15_spill] sm:$0xff] }
 0x224   : >> { %v1915_v36 = vrot.slane %v1910_v34, %v9814_v19  ;;  %v2317_v54 = vmul.bf16 %v1887_v23, %v10001_v14  ;;  %v2318_v33 = vmul.bf16 %v1894_v27, %v10003_v18  ;;  %v2319_v2 = vmul.bf16 %v1901_v49, %v10001_v14 }
 0x225   : >> { %v4506_v55 = vcombine.high %v4497_v41, %v4504_v42  ;;  %v4505_v3 = vcombine.low %v4497_v41, %v4504_v42  ;;  %v1922_v43 = vrot.slane %v1917_v1, %v9814_v19  ;;  %v2320_v50 = vmul.bf16 %v1908_v45, %v10003_v18 }
 0x226   : >> { %v2321_v61 = vmul.bf16 %v1915_v36, %v10001_v14  ;;  %v2443_v4 = vcombine.low %v2315_v53, %v2316_v0  ;;  %v2451_v5 = vcombine.low %v2317_v54, %v2318_v33  ;;  %v3102_v26 = vmul.bf16 %v10857_v63, %v10512_v62  ;;  %v12194_v62 = vld [vmem:[#allocation16_spill] sm:$0xff] }
 0x227   : >> { %4643 = vmatprep.subr.bf16.mxu0 %v4506_v55  ;;  %v2322_v57 = vmul.bf16 %v1922_v43, %v10003_v18  ;;  %v2459_v58 = vcombine.low %v2319_v2, %v2320_v50  ;;  %v3103_v9 = vmul.bf16 %v10861_v52, %v10514_v11  ;;  %v10925_v20 = vadd.f32 %v10848_v12, %v9848_v17  ;;  %v12195_v12 = vld [vmem:[#allocation14_spill] sm:$0xff] }
 0x228   : >> { %4644 = vmatpush1.bf16.msra.mxu0 %v4505_v3  ;;  %v2450_v29 = vrot.slane %v2443_v4, %v9999_v8  ;;  %v2458_v14 = vrot.slane %v2451_v5, %v9999_v8  ;;  %v4919_v13 = vmul.f32 %v10509_v56, %v9874_v25  ;;  %v4920_v63 = vmul.f32 %v10518_v15, %v12194_v62 }
 0x229   : >> { %v2466_v18 = vrot.slane %v2459_v58, %v9999_v8  ;;  %v2467_v60 = vcombine.low %v2321_v61, %v2322_v57  ;;  %v3134_v38 = vcombine.low %v3102_v26, %v3103_v9  ;;  %v4923_v11 = vand.u32 2147483647, %v10832_v37 }
 0x22a   : >> { %v4672_v52 = vcombine.low %v2450_v29, %v2458_v14  ;;  %v10936_v44 = vadd.f32 %v4919_v13, %v12195_v12  ;;  %v10939_v59 = vadd.f32 %v4920_v63, %v12196_v46  ;;  %v4924_v47 = vand.u32 2147483647, %v10836_v48 }
 0x22b   : >> { %v2474_v56 = vrot.slane %v2467_v60, %v9999_v8  ;;  %v3141_v6 = vrot.slane %v3134_v38, %v9953_v39  ;;  %vm10944_vm6 = vcmp.le.f32.partialorder %v4923_v11, 1.0  ;;  %v4927_v16 = vand.u32 2147483647, %v10851_v10 }
 0x22c   : >> { %v4680_v41 = vrot.slane %v4672_v52, %v9999_v8  ;;  %vm10950_vm7 = vcmp.le.f32.partialorder %v4924_v47, 1.0  ;;  %v4928_v23 = vand.u32 2147483647, %v10925_v20  ;;  %v4933_v27 = vand.u32 2147483647, %v10936_v44 }
 0x22d   : >> { %v4673_v49 = vcombine.low %v2466_v18, %v2474_v56  ;;  %v3142_v45 = vcombine.high %v3141_v6, %v3141_v6  ;;  %v3149_v34 = vrot.slane %v3141_v6, %v9953_v39  ;;  %vm10957_vm8 = vcmp.le.f32.partialorder %v4927_v16, 1.0  ;;  %v2699_v52 = vld [vmem:[%s9790_s13] sm:$0x3] }
 0x22e   : >> { %vm10961_vm9 = vcmp.le.f32.partialorder %v4928_v23, 1.0  ;;  %v4934_v53 = vand.u32 2147483647, %v10939_v59  ;;  %vm10966_vm10 = vcmp.le.f32.partialorder %v4933_v27, 1.0  ;;  %v12207_v36 = vmov 0   ;;  %vm4931_vm14 = vmand %vm10944_vm6, %vm10957_vm8 }
 0x22f   : >> { %v4939_v54 = vsel %vm4899_vm5, 1, %v12207_v36  ;;  %v4687_v33 = vrot.slane %v4673_v49, %v9999_v8  ;;  %v3156_v2 = vrot.slane %v3142_v45, %v9953_v39  ;;  %v3319_v55 = vunpack.i.h.s16 %v3149_v34  ;;  %vm4932_vm15 = vmand %vm10950_vm7, %vm10961_vm9 }
 0x230   : >> { %v9279_v3 = vpack.i.b16 %v3149_v34, %v3149_v34  ;;  %vm10976_vm11 = vcmp.le.f32.partialorder %v4934_v53, 1.0  ;;  %v4943_v50 = vrot.slane %v4939_v54, %v9814_v19  ;;  %v4947_v61 = vrot.slane %v4939_v54, %v9821_v21  ;;  %vm11028_vm1 = vmand %vm4931_vm14, %vm10966_vm10 }
 0x231   : >> { %v4952_v4 = vadd.f32 1.0, %v10832_v37  ;;  %v4689_v5 = vcombine.high %v4680_v41, %v4687_v33  ;;  %v4688_v26 = vcombine.low %v4680_v41, %v4687_v33  ;;  %v3321_v28 = vunpack.i.h.s16 %v3156_v2  ;;  %vm11036_vm2 = vmand %vm4932_vm15, %vm10976_vm11 }
 0x232   : >> { %v3351_v57 = vpack.i.b16 %v3319_v55, %v3319_v55  ;;  %v9280_v58 = vpack.i.b16 %v3156_v2, %v3156_v2  ;;  %v3385_v9 = vrot.slane %v9279_v3, %v9814_v19  ;;  %v3389_v29 = vrot.slane %v9279_v3, %v9821_v21 }
 0x233   : >> { %vm10985_vm12 = vcmp.eq.s32.totalorder %v4943_v50, 1  ;;  %4846 = vmatprep.subr.bf16.mxu1 %v4689_v5  ;;  %v3353_v13 = vpack.i.b16 %v3321_v28, %v3321_v28  ;;  %vm10991_vm13 = vcmp.eq.s32.totalorder %v4947_v61, 1  ;;  %v4953_v15 = vadd.f32 1.0, %v10836_v48 }
 0x234   : >> { %v3393_v62 = vrot.slane %v3351_v57, %v9814_v19  ;;  %v3397_v37 = vrot.slane %v3351_v57, %v9821_v21  ;;  %4847 = vmatpush1.bf16.msra.mxu1 %v4688_v26  ;;  %v3401_v18 = vrot.slane %v9280_v58, %v9814_v19  ;;  %v3405_v60 = vrot.slane %v9280_v58, %v9821_v21  ;;  %vm4950_vm3 = vmand %vm11028_vm1, %vm10985_vm12 }
 0x235   : >> { %v3639_v38 = vpack.i.b16 %v3385_v9, %v3385_v9  ;;  %v3646_v11 = vpack.i.b16 %v3389_v29, %v3389_v29  ;;  %v3409_v12 = vrot.slane %v3353_v13, %v9814_v19  ;;  %v3413_v46 = vrot.slane %v3353_v13, %v9821_v21  ;;  %vm4951_vm4 = vmand %vm11036_vm2, %vm10991_vm13 }
 0x236   : >> { %v3653_v47 = vpack.i.b16 %v3393_v62, %v3393_v62  ;;  %v3660_v56 = vpack.i.b16 %v3397_v37, %v3397_v37  ;;  %v3667_v41 = vpack.i.b16 %v3401_v18, %v3401_v18  ;;  %v3674_v23 = vpack.i.b16 %v3405_v60, %v3405_v60 }
 0x237   : >> { %v3644_v6 = vrot.slane %v3639_v38, %v9814_v19  ;;  %v3651_v16 = vrot.slane %v3646_v11, %v9814_v19  ;;  %v3681_v45 = vpack.i.b16 %v3409_v12, %v3409_v12  ;;  %v3688_v34 = vpack.i.b16 %v3413_v46, %v3413_v46  ;;  %4865 = vmatmul.mubr.bf16.vlgmr.msra.gmra.mxu1 %v2699_v52 }
 0x238   : >> { %v3658_v27 = vrot.slane %v3653_v47, %v9814_v19  ;;  %v3665_v49 = vrot.slane %v3660_v56, %v9814_v19  ;;  %v3672_v53 = vrot.slane %v3667_v41, %v9814_v19  ;;  %v3679_v54 = vrot.slane %v3674_v23, %v9814_v19  ;;  %8989 = vmatprep.mubr.bf16.mxu1 %v12207_v36 }
 0x239   : >> { %v4086_v33 = vmul.bf16 %v3644_v6, %v10421_v35  ;;  %v4087_v2 = vmul.bf16 %v3651_v16, %v10431_v22  ;;  %v3686_v55 = vrot.slane %v3681_v45, %v9814_v19  ;;  %v3693_v3 = vrot.slane %v3688_v34, %v9814_v19 }
 0x23a   : >> { %v4088_v50 = vmul.bf16 %v3658_v27, %v10421_v35  ;;  %v4089_v1 = vmul.bf16 %v3665_v49, %v10431_v22  ;;  %v4090_v61 = vmul.bf16 %v3672_v53, %v10421_v35  ;;  %v4091_v5 = vmul.bf16 %v3679_v54, %v10431_v22 }
 0x23b   : >> { %v4214_v26 = vcombine.low %v4086_v33, %v4087_v2  ;;  %v4092_v42 = vmul.bf16 %v3686_v55, %v10421_v35  ;;  %v4093_v0 = vmul.bf16 %v3693_v3, %v10431_v22  ;;  %v4954_v58 = vmul.f32 1.5, %v4952_v4 }
 0x23c   : >> { %v4222_v57 = vcombine.low %v4088_v50, %v4089_v1  ;;  %v4230_v29 = vcombine.low %v4090_v61, %v4091_v5  ;;  %v4955_v43 = vmul.f32 1.5, %v4953_v15  ;;  %v4956_v13 = vadd.f32 1.0, %v10851_v10  ;;  %v12218_v1 = vld [vmem:[#allocation10_spill] sm:$0xff] }
 0x23d   : >> { %v4221_v9 = vrot.slane %v4214_v26, %v9999_v8  ;;  %v4238_v48 = vcombine.low %v4092_v42, %v4093_v0  ;;  %v4957_v35 = vadd.f32 1.0, %v10925_v20  ;;  %v4960_v22 = vadd.f32 1.0, %v10936_v44 }
 0x23e   : >> { %v4229_v62 = vrot.slane %v4222_v57, %v9999_v8  ;;  %v4237_v4 = vrot.slane %v4230_v29, %v9999_v8  ;;  %v4958_v37 = vmul.f32 1.5, %v4956_v13  ;;  %v4961_v18 = vadd.f32 1.0, %v10939_v59 }
 0x23f   : >> { %v4966_v60 = vcombine.low %v4954_v58, %v4955_v43  ;;  %v4245_v10 = vrot.slane %v4238_v48, %v9999_v8  ;;  %v4959_v11 = vmul.f32 1.5, %v4957_v35  ;;  %v4962_v52 = vmul.f32 1.5, %v4960_v22  ;;  %v4470_v58 = vld [vmem:[%s9790_s13 + $0x2] sm:$0x3] }
 0x240   : >> { %v4471_v38 = vcombine.low %v4221_v9, %v4229_v62  ;;  %v4963_v12 = vmul.f32 1.5, %v4961_v18  ;;  %v5155_v20 = vsel %vm4950_vm3, 1, %v12207_v36  ;;  %v5156_v44 = vsel %vm4951_vm4, 1, %v12207_v36 }
 0x241   : >> { %v4973_v63 = vrot.slane %v4966_v60, %v9953_v39  ;;  %v4472_v46 = vcombine.low %v4237_v4, %v4245_v10  ;;  %v5031_v47 = vcombine.low %v4958_v37, %v4959_v11  ;;  %v5157_v56 = vcombine.low %v5155_v20, %v5156_v44 }
 0x242   : >> { %v4479_v59 = vrot.slane %v4471_v38, %v9999_v8  ;;  %v5096_v41 = vcombine.low %v4962_v52, %v4963_v12 }
 0x243   : >> { %v4974_v6 = vcombine.high %v4973_v63, %v4973_v63  ;;  %v4981_v16 = vrot.slane %v4973_v63, %v9953_v39  ;;  %v4486_v23 = vrot.slane %v4472_v46, %v9999_v8  ;;  %v11071_v27 = vrot.slane %v5031_v47, %v9953_v39 }
 0x244   : >> { %v11074_v14 = vrot.slane %v5157_v56, %v9953_v39  ;;  %v11080_v53 = vrot.slane %v5096_v41, %v9953_v39 }
 0x245   : >> { %v4988_v49 = vrot.slane %v4974_v6, %v9953_v39  ;;  %v4992_v45 = vrot.slane %v4981_v16, %v9814_v19  ;;  %v4996_v34 = vrot.slane %v4981_v16, %v9821_v21  ;;  %v4488_v54 = vcombine.high %v4479_v59, %v4486_v23 }
 0x246   : >> { %v4487_v33 = vcombine.low %v4479_v59, %v4486_v23  ;;  %v5039_v2 = vcombine.high %v11071_v27, %v11071_v27  ;;  %v5165_v55 = vcombine.high %v11074_v14, %v11074_v14  ;;  %v5104_v26 = vcombine.high %v11080_v53, %v11080_v53 }
 0x247   : >> { %v5000_v3 = vrot.slane %v4988_v49, %v9814_v19  ;;  %v5004_v50 = vrot.slane %v4988_v49, %v9821_v21  ;;  %v5009_v40 = vsub.f32 %v4992_v45, %v12218_v1  ;;  %v5010_v61 = vsub.f32 %v4996_v34, %v12218_v1  ;;  %4645 = vmatprep.subr.bf16.mxu0 %v4488_v54 }
 0x248   : >> { %v5053_v5 = vrot.slane %v5039_v2, %v9953_v39  ;;  %v11094_v28 = vrot.slane %v5165_v55, %v9953_v39  ;;  %4646 = vmatpush1.bf16.msra.mxu0 %v4487_v33  ;;  %v5118_v43 = vrot.slane %v5104_v26, %v9953_v39  ;;  %v6826_v44 = vcombine.high %v4981_v16, %v4981_v16 }
 0x249   : >> { %v5011_v15 = vsub.f32 %v5000_v3, %v12218_v1  ;;  %v5012_v42 = vsub.f32 %v5004_v50, %v12218_v1  ;;  %v5013_v0 = vand.u32 2147483647, %v5009_v40  ;;  %v5014_v57 = vand.u32 2147483647, %v5010_v61 }
 0x24a   : >> { %v5065_v9 = vrot.slane %v5053_v5, %v9814_v19  ;;  %v5069_v29 = vrot.slane %v5053_v5, %v9821_v21  ;;  %vm5181_vm5 = vcmp.ne.s32.totalorder %v11094_v28, 0  ;;  %v5130_v4 = vrot.slane %v5118_v43, %v9814_v19 }
 0x24b   : >> { %v5015_v13 = vand.u32 2147483647, %v5011_v15  ;;  %v5016_v62 = vand.u32 2147483647, %v5012_v42  ;;  %v5017_v48 = vsub.f32 1.0, %v5013_v0  ;;  %v5134_v37 = vrot.slane %v5118_v43, %v9821_v21  ;;  %4664 = vmatmul.mubr.bf16.vlgmr.msra.gmra.mxu0 %v4470_v58 }
 0x24c   : >> { %v5076_v35 = vsub.f32 %v5065_v9, %v12218_v1  ;;  %v5077_v22 = vsub.f32 %v5069_v29, %v12218_v1  ;;  %v11107_v18 = vsub.f32 1.0, %v5014_v57  ;;  %8788 = vmatprep.mubr.bf16.mxu0 %v12207_v36  ;;  %v5141_v12 = vsub.f32 %v5130_v4, %v12218_v1 }
 0x24d   : >> { %v5019_v60 = vsub.f32 1.0, %v5015_v13  ;;  %v5020_v10 = vsub.f32 1.0, %v5016_v62  ;;  %v5021_v38 = vmax.f32 %v5017_v48, 0.0  ;;  %v5142_v63 = vsub.f32 %v5134_v37, %v12218_v1 }
 0x24e   : >> { %v5080_v11 = vand.u32 2147483647, %v5076_v35  ;;  %v5081_v52 = vand.u32 2147483647, %v5077_v22  ;;  %v5145_v47 = vand.u32 2147483647, %v5141_v12  ;;  %v6827_v36 = vcombine.high %v4988_v49, %v4988_v49 }
 0x24f   : >> { %v5023_v20 = vmax.f32 %v5019_v60, 0.0  ;;  %v5146_v56 = vand.u32 2147483647, %v5142_v63  ;;  %v5024_v41 = vmax.f32 %v5020_v10, 0.0  ;;  %v12219_v23 = vmov 0.0  }
 0x250   : >> { %v5084_v46 = vsub.f32 1.0, %v5080_v11  ;;  %v5085_v59 = vsub.f32 1.0, %v5081_v52  ;;  %v9296_v45 = vsel %vm5181_vm5, 1.0, %v12219_v23  ;;  %v11116_v34 = vpack.c.bf16 %v5021_v38, %v5021_v38 }
 0x251   : >> { %v11118_v54 = vpack.c.bf16 %v5023_v20, %v5023_v20  ;;  %v5149_v33 = vsub.f32 1.0, %v5145_v47  ;;  %v5150_v2 = vsub.f32 1.0, %v5146_v56  ;;  %v5199_v16 = vrot.slane %v9296_v45, %v9814_v19 }
 0x252   : >> { %v5203_v55 = vrot.slane %v9296_v45, %v9821_v21  ;;  %v6831_v3 = vrot.slane %v6826_v44, %v9814_v19  ;;  %v6835_v50 = vrot.slane %v6826_v44, %v9821_v21  ;;  %v5088_v40 = vmax.f32 %v5084_v46, 0.0 }
 0x253   : >> { %v5089_v61 = vmax.f32 %v5085_v59, 0.0  ;;  %v5153_v26 = vmax.f32 %v5149_v33, 0.0  ;;  %v5154_v15 = vmax.f32 %v5150_v2, 0.0  ;;  %v6839_v49 = vrot.slane %v6827_v36, %v9814_v19 }
 0x254   : >> { %v6843_v42 = vrot.slane %v6827_v36, %v9821_v21  ;;  %v6848_v0 = vsub.f32 %v6831_v3, %v12218_v1  ;;  %v6849_v57 = vsub.f32 %v6835_v50, %v12218_v1  ;;  %v6869_v29 = vcombine.high %v5053_v5, %v5053_v5 }
 0x255   : >> { %v5210_v58 = vmul.f32 %v5199_v16, %v5153_v26  ;;  %v5211_v9 = vmul.f32 %v5203_v55, %v5154_v15  ;;  %v6911_v13 = vcombine.high %v5118_v43, %v5118_v43  ;;  %v6850_v62 = vsub.f32 %v6839_v49, %v12218_v1 }
 0x256   : >> { %v6851_v48 = vsub.f32 %v6843_v42, %v12218_v1  ;;  %v6852_v35 = vand.u32 2147483647, %v6848_v0  ;;  %v6853_v22 = vand.u32 2147483647, %v6849_v57  ;;  %v6881_v37 = vrot.slane %v6869_v29, %v9814_v19 }
 0x257   : >> { %v9298_v4 = vpack.c.bf16 %v5211_v9, %v5210_v58  ;;  %v6885_v60 = vrot.slane %v6869_v29, %v9821_v21  ;;  %v6923_v10 = vrot.slane %v6911_v13, %v9814_v19  ;;  %v11133_v38 = vpack.c.bf16 %v5024_v41, %v5024_v41 }
 0x258   : >> { %v6854_v11 = vand.u32 2147483647, %v6850_v62  ;;  %v6855_v52 = vand.u32 2147483647, %v6851_v48  ;;  %v11135_v12 = vsub.f32 1.0, %v6852_v35  ;;  %v6892_v43 = vsub.f32 %v6881_v37, %v12218_v1 }
 0x259   : >> { %v5250_v5 = vrot.slane %v9298_v4, %v9953_v39  ;;  %v6893_v63 = vsub.f32 %v6885_v60, %v12218_v1  ;;  %v6927_v20 = vrot.slane %v6911_v13, %v9821_v21  ;;  %v11141_v44 = vpack.c.bf16 %v5088_v40, %v5088_v40 }
 0x25a   : >> { %v11143_v46 = vpack.c.bf16 %v5089_v61, %v5089_v61  ;;  %v6858_v59 = vsub.f32 1.0, %v6854_v11  ;;  %v6859_v47 = vsub.f32 1.0, %v6855_v52  ;;  %v6896_v41 = vand.u32 2147483647, %v6892_v43 }
 0x25b   : >> { %v5251_v56 = vcombine.high %v5250_v5, %v5250_v5  ;;  %v6897_v45 = vand.u32 2147483647, %v6893_v63  ;;  %v6934_v36 = vsub.f32 %v6923_v10, %v12218_v1  ;;  %v11146_v33 = vsub.f32 1.0, %v6853_v22 }
 0x25c   : >> { %v6862_v16 = vmax.f32 %v6858_v59, 0.0  ;;  %v6863_v55 = vmax.f32 %v6859_v47, 0.0  ;;  %v6900_v50 = vsub.f32 1.0, %v6896_v41  ;;  %v6935_v61 = vsub.f32 %v6927_v20, %v12218_v1 }
 0x25d   : >> { %v5265_v3 = vrot.slane %v5251_v56, %v9953_v39  ;;  %v6901_v40 = vsub.f32 1.0, %v6897_v45  ;;  %v6938_v49 = vand.u32 2147483647, %v6934_v36  ;;  %v6949_v42 = vcombine.high %v11094_v28, %v11094_v28 }
 0x25e   : >> { %v11151_v26 = vpack.c.bf16 %v6862_v16, %v6862_v16  ;;  %v11153_v15 = vpack.c.bf16 %v6863_v55, %v6863_v55  ;;  %v6904_v57 = vmax.f32 %v6900_v50, 0.0  ;;  %v6939_v9 = vand.u32 2147483647, %v6935_v61 }
 0x25f   : >> { %v5273_v0 = vunpack.i.h.s16 %v5265_v3  ;;  %v6905_v58 = vmax.f32 %v6901_v40, 0.0  ;;  %v6942_v29 = vsub.f32 1.0, %v6938_v49  ;;  %vm6951_vm6 = vcmp.ne.s32.totalorder %v6949_v42, 0 }
 0x260   : >> { %v9302_v13 = vpack.i.b16 %v5265_v3, %v5265_v3  ;;  %v5258_v62 = vrot.slane %v5250_v5, %v9953_v39  ;;  %v11158_v35 = vpack.c.bf16 %v6904_v57, %v6904_v57  ;;  %v6943_v4 = vsub.f32 1.0, %v6939_v9 }
 0x261   : >> { %v5281_v48 = vpack.i.b16 %v5273_v0, %v5273_v0  ;;  %v11160_v22 = vpack.c.bf16 %v6905_v58, %v6905_v58  ;;  %v6946_v37 = vmax.f32 %v6942_v29, 0.0  ;;  %v9320_v60 = vsel %vm6951_vm6, 1.0, %v12219_v23 }
 0x262   : >> { %v5333_v28 = vrot.slane %v9302_v13, %v9814_v19  ;;  %v5337_v10 = vrot.slane %v9302_v13, %v9821_v21  ;;  %v6947_v43 = vmax.f32 %v6943_v4, 0.0  ;;  %v6969_v5 = vrot.slane %v9320_v60, %v9814_v19 }
 0x263   : >> { %v5341_v11 = vrot.slane %v5281_v48, %v9814_v19  ;;  %v5345_v52 = vrot.slane %v5281_v48, %v9821_v21  ;;  %v6973_v63 = vrot.slane %v9320_v60, %v9821_v21  ;;  %v5271_v47 = vunpack.i.h.s16 %v5258_v62 }
 0x264   : >> { %v5431_v20 = vpack.i.b16 %v5333_v28, %v5333_v28  ;;  %v5438_v59 = vpack.i.b16 %v5337_v10, %v5337_v10  ;;  %v6980_v45 = vmul.f32 %v6969_v5, %v6946_v37  ;;  %v9301_v36 = vpack.i.b16 %v5258_v62, %v5258_v62 }
 0x265   : >> { %v5445_v56 = vpack.i.b16 %v5341_v11, %v5341_v11  ;;  %v5452_v41 = vpack.i.b16 %v5345_v52, %v5345_v52  ;;  %v6981_v16 = vmul.f32 %v6973_v63, %v6947_v43  ;;  %v5279_v50 = vpack.i.b16 %v5271_v47, %v5271_v47 }
 0x266   : >> { %v5436_v55 = vrot.slane %v5431_v20, %v9814_v19  ;;  %v5443_v3 = vrot.slane %v5438_v59, %v9814_v19  ;;  %v5317_v49 = vrot.slane %v9301_v36, %v9814_v19  ;;  %v5321_v42 = vrot.slane %v9301_v36, %v9821_v21 }
 0x267   : >> { %v5450_v40 = vrot.slane %v5445_v56, %v9814_v19  ;;  %v5457_v61 = vrot.slane %v5452_v41, %v9814_v19  ;;  %v9322_v0 = vpack.c.bf16 %v6981_v16, %v6980_v45  ;;  %v5325_v9 = vrot.slane %v5279_v50, %v9814_v19 }
 0x268   : >> { %v5470_v57 = vmul.bf16 %v5436_v55, %v11141_v44  ;;  %v5471_v58 = vmul.bf16 %v5443_v3, %v11143_v46  ;;  %v5329_v62 = vrot.slane %v5279_v50, %v9821_v21  ;;  %v5403_v48 = vpack.i.b16 %v5317_v49, %v5317_v49 }
 0x269   : >> { %v5472_v29 = vmul.bf16 %v5450_v40, %v11141_v44  ;;  %v5473_v13 = vmul.bf16 %v5457_v61, %v11143_v46  ;;  %v7020_v4 = vrot.slane %v9322_v0, %v9953_v39  ;;  %v5417_v60 = vpack.i.b16 %v5325_v9, %v5325_v9 }
 0x26a   : >> { %v5628_v37 = vcombine.low %v5470_v57, %v5471_v58  ;;  %v5410_v28 = vpack.i.b16 %v5321_v42, %v5321_v42  ;;  %v5424_v11 = vpack.i.b16 %v5329_v62, %v5329_v62  ;;  %v11183_v52 = vrot.slane %v5403_v48, %v9814_v19 }
 0x26b   : >> { %v5651_v10 = vcombine.low %v5472_v29, %v5473_v13  ;;  %v11187_v43 = vrot.slane %v11071_v27, %v9953_v39  ;;  %v7021_v5 = vcombine.high %v7020_v4, %v7020_v4  ;;  %v11191_v20 = vrot.slane %v5417_v60, %v9814_v19 }
 0x26c   : >> { %v5635_v63 = vrot.slane %v5628_v37, %v9953_v39  ;;  %v11194_v59 = vrot.slane %v7020_v4, %v9953_v39  ;;  %v11198_v56 = vrot.slane %v5424_v11, %v9814_v19  ;;  %v11201_v41 = vrot.slane %v5410_v28, %v9814_v19 }
 0x26d   : >> { %v5658_v47 = vrot.slane %v5651_v10, %v9953_v39  ;;  %v7035_v45 = vrot.slane %v7021_v5, %v9953_v39 }
 0x26e   : >> { %v5636_v36 = vcombine.high %v5635_v63, %v5635_v63  ;;  %v5643_v16 = vrot.slane %v5635_v63, %v9953_v39 }
 0x26f   : >> { %v5659_v3 = vcombine.high %v5658_v47, %v5658_v47  ;;  %v5666_v50 = vrot.slane %v5658_v47, %v9953_v39  ;;  %v7043_v49 = vunpack.i.h.s16 %v7035_v45  ;;  %v11215_v13 = vpack.i.b16 %v7035_v45, %v7035_v45 }
 0x270   : >> { %v5650_v42 = vrot.slane %v5636_v36, %v9953_v39  ;;  %v5699_v0 = vunpack.i.h.s16 %v5643_v16  ;;  %v9315_v57 = vpack.i.b16 %v5643_v16, %v5643_v16 }
 0x271   : >> { %v5673_v58 = vrot.slane %v5659_v3, %v9953_v39  ;;  %v5703_v9 = vunpack.i.h.s16 %v5666_v50  ;;  %v9317_v29 = vpack.i.b16 %v5666_v50, %v5666_v50  ;;  %v7051_v62 = vpack.i.b16 %v7043_v49, %v7043_v49 }
 0x272   : >> { %v5701_v48 = vunpack.i.h.s16 %v5650_v42  ;;  %v5731_v4 = vpack.i.b16 %v5699_v0, %v5699_v0  ;;  %v9316_v37 = vpack.i.b16 %v5650_v42, %v5650_v42 }
 0x273   : >> { %v5705_v60 = vunpack.i.h.s16 %v5673_v58  ;;  %v5735_v28 = vpack.i.b16 %v5703_v9, %v5703_v9  ;;  %v9318_v10 = vpack.i.b16 %v5673_v58, %v5673_v58  ;;  %v5965_v11 = vrot.slane %v9317_v29, %v9814_v19 }
 0x274   : >> { %v5969_v5 = vrot.slane %v9317_v29, %v9821_v21  ;;  %v7111_v63 = vrot.slane %v7051_v62, %v9814_v19  ;;  %v7115_v47 = vrot.slane %v7051_v62, %v9821_v21  ;;  %v5733_v36 = vpack.i.b16 %v5701_v48, %v5701_v48 }
 0x275   : >> { %v5737_v16 = vpack.i.b16 %v5705_v60, %v5705_v60  ;;  %v5973_v45 = vrot.slane %v5735_v28, %v9814_v19  ;;  %v5977_v3 = vrot.slane %v5735_v28, %v9821_v21  ;;  %v5981_v50 = vrot.slane %v9318_v10, %v9814_v19 }
 0x276   : >> { %v5985_v49 = vrot.slane %v9318_v10, %v9821_v21  ;;  %v6387_v42 = vpack.i.b16 %v5965_v11, %v5965_v11  ;;  %v6394_v0 = vpack.i.b16 %v5969_v5, %v5969_v5  ;;  %v7215_v58 = vpack.i.b16 %v7111_v63, %v7111_v63 }
 0x277   : >> { %v5989_v9 = vrot.slane %v5737_v16, %v9814_v19  ;;  %v5993_v29 = vrot.slane %v5737_v16, %v9821_v21  ;;  %v6401_v2 = vpack.i.b16 %v5973_v45, %v5973_v45  ;;  %v6408_v6 = vpack.i.b16 %v5977_v3, %v5977_v3 }
 0x278   : >> { %v6392_v62 = vrot.slane %v6387_v42, %v9814_v19  ;;  %v6399_v48 = vrot.slane %v6394_v0, %v9814_v19  ;;  %v6415_v60 = vpack.i.b16 %v5981_v50, %v5981_v50  ;;  %v6422_v27 = vpack.i.b16 %v5985_v49, %v5985_v49 }
 0x279   : >> { %v6406_v28 = vrot.slane %v6401_v2, %v9814_v19  ;;  %v6413_v61 = vrot.slane %v6408_v6, %v9814_v19  ;;  %v6429_v10 = vpack.i.b16 %v5989_v9, %v5989_v9  ;;  %v6436_v11 = vpack.i.b16 %v5993_v29, %v5993_v29 }
 0x27a   : >> { %v6420_v5 = vrot.slane %v6415_v60, %v9814_v19  ;;  %v6427_v63 = vrot.slane %v6422_v27, %v9814_v19  ;;  %v6498_v16 = vmul.bf16 %v6392_v62, %v11118_v54  ;;  %v6499_v45 = vmul.bf16 %v6399_v48, %v11133_v38 }
 0x27b   : >> { %v6434_v3 = vrot.slane %v6429_v10, %v9814_v19  ;;  %v6441_v42 = vrot.slane %v6436_v11, %v9814_v19  ;;  %v6500_v50 = vmul.bf16 %v6406_v28, %v11118_v54  ;;  %v6501_v2 = vmul.bf16 %v6413_v61, %v11133_v38 }
 0x27c   : >> { %v6502_v6 = vmul.bf16 %v6420_v5, %v11118_v54  ;;  %v6503_v49 = vmul.bf16 %v6427_v63, %v11133_v38  ;;  %v6794_v0 = vcombine.low %v6498_v16, %v6499_v45  ;;  %v7220_v9 = vrot.slane %v7215_v58, %v9814_v19 }
 0x27d   : >> { %v6504_v27 = vmul.bf16 %v6434_v3, %v11118_v54  ;;  %v6505_v29 = vmul.bf16 %v6441_v42, %v11133_v38  ;;  %v6802_v62 = vcombine.low %v6500_v50, %v6501_v2  ;;  %v7222_v48 = vpack.i.b16 %v7115_v47, %v7115_v47 }
 0x27e   : >> { %v6801_v60 = vrot.slane %v6794_v0, %v9999_v8  ;;  %v6810_v10 = vcombine.low %v6502_v6, %v6503_v49  ;;  %v7242_v28 = vmul.bf16 %v7220_v9, %v11158_v35  ;;  %v5933_v61 = vrot.slane %v9315_v57, %v9814_v19 }
 0x27f   : >> { %v6809_v11 = vrot.slane %v6802_v62, %v9999_v8  ;;  %v6818_v5 = vcombine.low %v6504_v27, %v6505_v29  ;;  %v7227_v63 = vrot.slane %v7222_v48, %v9814_v19  ;;  %v5937_v58 = vrot.slane %v9315_v57, %v9821_v21 }
 0x280   : >> { %v6817_v16 = vrot.slane %v6810_v10, %v9999_v8  ;;  %v5941_v45 = vrot.slane %v5731_v4, %v9814_v19  ;;  %v5945_v47 = vrot.slane %v5731_v4, %v9821_v21  ;;  %v5949_v3 = vrot.slane %v9316_v37, %v9814_v19 }
 0x281   : >> { %v6825_v42 = vrot.slane %v6818_v5, %v9999_v8  ;;  %v8923_v50 = vcombine.low %v6801_v60, %v6809_v11  ;;  %v7243_v2 = vmul.bf16 %v7227_v63, %v11160_v22  ;;  %v5953_v6 = vrot.slane %v9316_v37, %v9821_v21 }
 0x282   : >> { %v5957_v49 = vrot.slane %v5733_v36, %v9814_v19  ;;  %v5961_v0 = vrot.slane %v5733_v36, %v9821_v21  ;;  %v6331_v57 = vpack.i.b16 %v5933_v61, %v5933_v61  ;;  %v6338_v9 = vpack.i.b16 %v5937_v58, %v5937_v58 }
 0x283   : >> { %v8924_v27 = vcombine.low %v6817_v16, %v6825_v42  ;;  %v8931_v29 = vrot.slane %v8923_v50, %v9999_v8  ;;  %v7421_v62 = vcombine.low %v7242_v28, %v7243_v2  ;;  %v6345_v4 = vpack.i.b16 %v5941_v45, %v5941_v45 }
 0x284   : >> { %v6336_v48 = vrot.slane %v6331_v57, %v9814_v19  ;;  %v6343_v10 = vrot.slane %v6338_v9, %v9814_v19  ;;  %v6352_v60 = vpack.i.b16 %v5945_v47, %v5945_v47  ;;  %v6359_v11 = vpack.i.b16 %v5949_v3, %v5949_v3 }
 0x285   : >> { %v8938_v5 = vrot.slane %v8924_v27, %v9999_v8  ;;  %v7428_v37 = vrot.slane %v7421_v62, %v9953_v39  ;;  %v11265_v63 = vrot.slane %v6345_v4, %v9814_v19  ;;  %v6366_v36 = vpack.i.b16 %v5953_v6, %v5953_v6 }
 0x286   : >> { %v6357_v61 = vrot.slane %v6352_v60, %v9814_v19  ;;  %v11269_v58 = vrot.slane %v6359_v11, %v9814_v19  ;;  %v6373_v28 = vpack.i.b16 %v5957_v49, %v5957_v49  ;;  %v6380_v16 = vpack.i.b16 %v5961_v0, %v5961_v0 }
 0x287   : >> { %v8940_v45 = vcombine.high %v8931_v29, %v8938_v5  ;;  %v8939_v42 = vcombine.low %v8931_v29, %v8938_v5  ;;  %v7429_v50 = vcombine.high %v7428_v37, %v7428_v37  ;;  %v7436_v47 = vrot.slane %v7428_v37, %v9953_v39 }
 0x288   : >> { %v6371_v3 = vrot.slane %v6366_v36, %v9814_v19  ;;  %v6378_v2 = vrot.slane %v6373_v28, %v9814_v19  ;;  %v6385_v57 = vrot.slane %v6380_v16, %v9814_v19  ;;  %v6490_v6 = vmul.bf16 %v6336_v48, %v11118_v54 }
 0x289   : >> { %8957 = vmatprep.subr.bf16.mxu1 %v8940_v45  ;;  %v7443_v9 = vrot.slane %v7429_v50, %v9953_v39  ;;  %v7473_v27 = vunpack.i.h.s16 %v7436_v47  ;;  %v9341_v62 = vpack.i.b16 %v7436_v47, %v7436_v47  ;;  %v6491_v49 = vmul.bf16 %v6343_v10, %v11133_v38 }
 0x28a   : >> { %8958 = vmatpush1.bf16.msra.mxu1 %v8939_v42  ;;  %v6492_v0 = vmul.bf16 %v11265_v63, %v11118_v54  ;;  %v6493_v29 = vmul.bf16 %v6357_v61, %v11133_v38  ;;  %v6494_v4 = vmul.bf16 %v11269_v58, %v11118_v54  ;;  %v6495_v60 = vmul.bf16 %v6371_v3, %v11133_v38 }
 0x28b   : >> { %v7475_v11 = vunpack.i.h.s16 %v7443_v9  ;;  %v7505_v48 = vpack.i.b16 %v7473_v27, %v7473_v27  ;;  %v9342_v5 = vpack.i.b16 %v7443_v9, %v7443_v9  ;;  %v7735_v37 = vrot.slane %v9341_v62, %v9814_v19 }
 0x28c   : >> { %v7739_v36 = vrot.slane %v9341_v62, %v9821_v21  ;;  %v6496_v10 = vmul.bf16 %v6378_v2, %v11118_v54  ;;  %v6497_v28 = vmul.bf16 %v6385_v57, %v11133_v38  ;;  %v6762_v16 = vcombine.low %v6490_v6, %v6491_v49 }
 0x28d   : >> { %v7507_v63 = vpack.i.b16 %v7475_v11, %v7475_v11  ;;  %v7743_v61 = vrot.slane %v7505_v48, %v9814_v19  ;;  %v7747_v45 = vrot.slane %v7505_v48, %v9821_v21  ;;  %v7751_v58 = vrot.slane %v9342_v5, %v9814_v19 }
 0x28e   : >> { %v7755_v42 = vrot.slane %v9342_v5, %v9821_v21  ;;  %v8157_v50 = vpack.i.b16 %v7735_v37, %v7735_v37  ;;  %v8164_v47 = vpack.i.b16 %v7739_v36, %v7739_v36  ;;  %v6769_v3 = vrot.slane %v6762_v16, %v9999_v8 }
 0x28f   : >> { %v7759_v9 = vrot.slane %v7507_v63, %v9814_v19  ;;  %v7763_v2 = vrot.slane %v7507_v63, %v9821_v21  ;;  %v8171_v27 = vpack.i.b16 %v7743_v61, %v7743_v61  ;;  %v8178_v57 = vpack.i.b16 %v7747_v45, %v7747_v45 }
 0x290   : >> { %v8162_v6 = vrot.slane %v8157_v50, %v9814_v19  ;;  %v8169_v62 = vrot.slane %v8164_v47, %v9814_v19  ;;  %v8185_v49 = vpack.i.b16 %v7751_v58, %v7751_v58  ;;  %v8192_v11 = vpack.i.b16 %v7755_v42, %v7755_v42 }
 0x291   : >> { %v8176_v48 = vrot.slane %v8171_v27, %v9814_v19  ;;  %v8183_v5 = vrot.slane %v8178_v57, %v9814_v19  ;;  %v8199_v37 = vpack.i.b16 %v7759_v9, %v7759_v9  ;;  %v8206_v36 = vpack.i.b16 %v7763_v2, %v7763_v2 }
 0x292   : >> { %v8190_v16 = vrot.slane %v8185_v49, %v9814_v19  ;;  %v8197_v55 = vrot.slane %v8192_v11, %v9814_v19  ;;  %v8268_v63 = vmul.bf16 %v8162_v6, %v11151_v26  ;;  %v8269_v61 = vmul.bf16 %v8169_v62, %v11153_v15 }
 0x293   : >> { %v8204_v45 = vrot.slane %v8199_v37, %v9814_v19  ;;  %v8211_v50 = vrot.slane %v8206_v36, %v9814_v19  ;;  %v8270_v58 = vmul.bf16 %v8176_v48, %v11151_v26  ;;  %v8271_v42 = vmul.bf16 %v8183_v5, %v11153_v15 }
 0x294   : >> { %v8272_v47 = vmul.bf16 %v8190_v16, %v11151_v26  ;;  %v8273_v9 = vmul.bf16 %v8197_v55, %v11153_v15  ;;  %v8564_v2 = vcombine.low %v8268_v63, %v8269_v61  ;;  %v6770_v27 = vcombine.low %v6492_v0, %v6493_v29 }
 0x295   : >> { %v8274_v57 = vmul.bf16 %v8204_v45, %v11151_v26  ;;  %v8275_v6 = vmul.bf16 %v8211_v50, %v11153_v15  ;;  %v8572_v49 = vcombine.low %v8270_v58, %v8271_v42  ;;  %v6778_v62 = vcombine.low %v6494_v4, %v6495_v60 }
 0x296   : >> { %v8571_v11 = vrot.slane %v8564_v2, %v9999_v8  ;;  %v8580_v37 = vcombine.low %v8272_v47, %v8273_v9  ;;  %v6777_v36 = vrot.slane %v6770_v27, %v9999_v8  ;;  %v6786_v48 = vcombine.low %v6496_v10, %v6497_v28 }
 0x297   : >> { %v8579_v5 = vrot.slane %v8572_v49, %v9999_v8  ;;  %v8588_v40 = vcombine.low %v8274_v57, %v8275_v6  ;;  %v6785_v16 = vrot.slane %v6778_v62, %v9999_v8  ;;  %v7103_v55 = vrot.slane %v11215_v13, %v9814_v19 }
 0x298   : >> { %v8587_v0 = vrot.slane %v8580_v37, %v9999_v8  ;;  %v6793_v29 = vrot.slane %v6786_v48, %v9999_v8  ;;  %v8905_v63 = vcombine.low %v6769_v3, %v6777_v36  ;;  %v7107_v4 = vrot.slane %v11215_v13, %v9821_v21 }
 0x299   : >> { %v8595_v60 = vrot.slane %v8588_v40, %v9999_v8  ;;  %v8722_v61 = vcombine.low %v8571_v11, %v8579_v5  ;;  %v7201_v10 = vpack.i.b16 %v7103_v55, %v7103_v55  ;;  %v12220_v28 = vmul.bf16 %v11198_v56, %v11143_v46 }
 0x29a   : >> { %v12221_v45 = vmul.bf16 %v11191_v20, %v11141_v44  ;;  %v8906_v58 = vcombine.low %v6785_v16, %v6793_v29  ;;  %v8913_v42 = vrot.slane %v8905_v63, %v9999_v8  ;;  %v7208_v47 = vpack.i.b16 %v7107_v4, %v7107_v4 }
 0x29b   : >> { %v12222_v3 = vunpack.i.h.s16 %v11194_v59  ;;  %v8723_v13 = vcombine.low %v8587_v0, %v8595_v60  ;;  %v8730_v40 = vrot.slane %v8722_v61, %v9999_v8  ;;  %v7206_v2 = vrot.slane %v7201_v10, %v9814_v19 }
 0x29c   : >> { %v5605_v50 = vcombine.low %v12221_v45, %v12220_v28  ;;  %v8920_v56 = vrot.slane %v8906_v58, %v9999_v8  ;;  %v7213_v20 = vrot.slane %v7208_v47, %v9814_v19  ;;  %v5467_v58 = vmul.bf16 %v11201_v41, %v11143_v46 }
 0x29d   : >> { %v7049_v9 = vpack.i.b16 %v12222_v3, %v12222_v3  ;;  %v8737_v49 = vrot.slane %v8723_v13, %v9999_v8  ;;  %v7240_v62 = vmul.bf16 %v7206_v2, %v11158_v35  ;;  %v5057_v46 = vrot.slane %v11187_v43, %v9814_v19 }
 0x29e   : >> { %v5612_v27 = vrot.slane %v5605_v50, %v9953_v39  ;;  %v8922_v36 = vcombine.high %v8913_v42, %v8920_v56  ;;  %v8921_v48 = vcombine.low %v8913_v42, %v8920_v56  ;;  %v7241_v5 = vmul.bf16 %v7213_v20, %v11160_v22 }
 0x29f   : >> { %v7095_v57 = vrot.slane %v7049_v9, %v9814_v19  ;;  %v7099_v6 = vrot.slane %v7049_v9, %v9821_v21  ;;  %v8739_v55 = vcombine.high %v8730_v40, %v8737_v49  ;;  %v8738_v0 = vcombine.low %v8730_v40, %v8737_v49 }
 0x2a0   : >> { %v5613_v11 = vcombine.high %v5612_v27, %v5612_v27  ;;  %v5620_v37 = vrot.slane %v5612_v27, %v9953_v39  ;;  %8959 = vmatprep.subr.bf16.mxu1 %v8922_v36  ;;  %v7398_v4 = vcombine.low %v7240_v62, %v7241_v5 }
 0x2a1   : >> { %v7187_v16 = vpack.i.b16 %v7095_v57, %v7095_v57  ;;  %v7194_v10 = vpack.i.b16 %v7099_v6, %v7099_v6  ;;  %8756 = vmatprep.subr.bf16.mxu0 %v8739_v55  ;;  %8960 = vmatpush1.bf16.msra.mxu1 %v8921_v48 }
 0x2a2   : >> { %v5627_v29 = vrot.slane %v5613_v11, %v9953_v39  ;;  %v5695_v63 = vunpack.i.h.s16 %v5620_v37  ;;  %v9313_v60 = vpack.i.b16 %v5620_v37, %v5620_v37  ;;  %8757 = vmatpush1.bf16.msra.mxu0 %v8738_v0  ;;  %v7405_v42 = vrot.slane %v7398_v4, %v9953_v39 }
 0x2a3   : >> { %v11345_v61 = vrot.slane %v7187_v16, %v9814_v19  ;;  %v11353_v9 = vrot.slane %v7194_v10, %v9814_v19 }
 0x2a4   : >> { %v5697_v28 = vunpack.i.h.s16 %v5627_v29  ;;  %v5727_v45 = vpack.i.b16 %v5695_v63, %v5695_v63  ;;  %v9314_v50 = vpack.i.b16 %v5627_v29, %v5627_v29  ;;  %v5901_v47 = vrot.slane %v9313_v60, %v9814_v19 }
 0x2a5   : >> { %v5905_v3 = vrot.slane %v9313_v60, %v9821_v21  ;;  %v7406_v56 = vcombine.high %v7405_v42, %v7405_v42  ;;  %v7413_v20 = vrot.slane %v7405_v42, %v9953_v39 }
 0x2a6   : >> { %v5729_v13 = vpack.i.b16 %v5697_v28, %v5697_v28  ;;  %v5909_v40 = vrot.slane %v5727_v45, %v9814_v19  ;;  %v5913_v2 = vrot.slane %v5727_v45, %v9821_v21  ;;  %v5917_v27 = vrot.slane %v9314_v50, %v9814_v19 }
 0x2a7   : >> { %v5921_v57 = vrot.slane %v9314_v50, %v9821_v21  ;;  %v6275_v6 = vpack.i.b16 %v5901_v47, %v5901_v47  ;;  %v6282_v11 = vpack.i.b16 %v5905_v3, %v5905_v3  ;;  %v7420_v36 = vrot.slane %v7406_v56, %v9953_v39 }
 0x2a8   : >> { %v5925_v49 = vrot.slane %v5729_v13, %v9814_v19  ;;  %v5929_v62 = vrot.slane %v5729_v13, %v9821_v21  ;;  %v6289_v37 = vpack.i.b16 %v5909_v40, %v5909_v40  ;;  %v7469_v48 = vunpack.i.h.s16 %v7413_v20 }
 0x2a9   : >> { %v9339_v5 = vpack.i.b16 %v7413_v20, %v7413_v20  ;;  %v11364_v16 = vrot.slane %v6275_v6, %v9814_v19  ;;  %v11367_v55 = vrot.slane %v6282_v11, %v9814_v19  ;;  %v6296_v29 = vpack.i.b16 %v5913_v2, %v5913_v2 }
 0x2aa   : >> { %v11370_v0 = vrot.slane %v6289_v37, %v9814_v19  ;;  %v6303_v63 = vpack.i.b16 %v5917_v27, %v5917_v27  ;;  %v7471_v4 = vunpack.i.h.s16 %v7420_v36  ;;  %v7501_v60 = vpack.i.b16 %v7469_v48, %v7469_v48 }
 0x2ab   : >> { %v9340_v10 = vpack.i.b16 %v7420_v36, %v7420_v36  ;;  %v7703_v28 = vrot.slane %v9339_v5, %v9814_v19  ;;  %v7707_v45 = vrot.slane %v9339_v5, %v9821_v21  ;;  %v6301_v50 = vrot.slane %v6296_v29, %v9814_v19 }
 0x2ac   : >> { %v6308_v42 = vrot.slane %v6303_v63, %v9814_v19  ;;  %v6310_v47 = vpack.i.b16 %v5921_v57, %v5921_v57  ;;  %v7503_v3 = vpack.i.b16 %v7471_v4, %v7471_v4  ;;  %v7711_v13 = vrot.slane %v7501_v60, %v9814_v19 }
 0x2ad   : >> { %v7715_v40 = vrot.slane %v7501_v60, %v9821_v21  ;;  %v7719_v2 = vrot.slane %v9340_v10, %v9814_v19  ;;  %v7723_v27 = vrot.slane %v9340_v10, %v9821_v21  ;;  %v8101_v56 = vpack.i.b16 %v7703_v28, %v7703_v28 }
 0x2ae   : >> { %v8108_v20 = vpack.i.b16 %v7707_v45, %v7707_v45  ;;  %v6315_v6 = vrot.slane %v6310_v47, %v9814_v19  ;;  %v7727_v11 = vrot.slane %v7503_v3, %v9814_v19  ;;  %v7731_v37 = vrot.slane %v7503_v3, %v9821_v21 }
 0x2af   : >> { %v8115_v36 = vpack.i.b16 %v7711_v13, %v7711_v13  ;;  %v8122_v48 = vpack.i.b16 %v7715_v40, %v7715_v40  ;;  %v8106_v57 = vrot.slane %v8101_v56, %v9814_v19  ;;  %v8129_v29 = vpack.i.b16 %v7719_v2, %v7719_v2 }
 0x2b0   : >> { %v8113_v5 = vrot.slane %v8108_v20, %v9814_v19  ;;  %v8136_v63 = vpack.i.b16 %v7723_v27, %v7723_v27  ;;  %v8143_v10 = vpack.i.b16 %v7727_v11, %v7727_v11  ;;  %v8150_v28 = vpack.i.b16 %v7731_v37, %v7731_v37 }
 0x2b1   : >> { %v8120_v4 = vrot.slane %v8115_v36, %v9814_v19  ;;  %v8127_v60 = vrot.slane %v8122_v48, %v9814_v19  ;;  %v8134_v45 = vrot.slane %v8129_v29, %v9814_v19  ;;  %v8260_v3 = vmul.bf16 %v8106_v57, %v11151_v26 }
 0x2b2   : >> { %v8141_v47 = vrot.slane %v8136_v63, %v9814_v19  ;;  %v8261_v13 = vmul.bf16 %v8113_v5, %v11153_v15  ;;  %v8148_v40 = vrot.slane %v8143_v10, %v9814_v19  ;;  %v8155_v56 = vrot.slane %v8150_v28, %v9814_v19 }
 0x2b3   : >> { %v8262_v2 = vmul.bf16 %v8120_v4, %v11151_v26  ;;  %v8263_v27 = vmul.bf16 %v8127_v60, %v11153_v15  ;;  %v8264_v20 = vmul.bf16 %v8134_v45, %v11151_v26  ;;  %v6317_v36 = vpack.i.b16 %v5925_v49, %v5925_v49 }
 0x2b4   : >> { %v8265_v11 = vmul.bf16 %v8141_v47, %v11153_v15  ;;  %v8532_v37 = vcombine.low %v8260_v3, %v8261_v13  ;;  %v8266_v48 = vmul.bf16 %v8148_v40, %v11151_v26  ;;  %v8267_v57 = vmul.bf16 %v8155_v56, %v11153_v15 }
 0x2b5   : >> { %v8540_v29 = vcombine.low %v8262_v2, %v8263_v27  ;;  %v6324_v5 = vpack.i.b16 %v5929_v62, %v5929_v62  ;;  %v6322_v28 = vrot.slane %v6317_v36, %v9814_v19  ;;  %v6482_v4 = vmul.bf16 %v11364_v16, %v11118_v54 }
 0x2b6   : >> { %v8539_v63 = vrot.slane %v8532_v37, %v9999_v8  ;;  %v8548_v10 = vcombine.low %v8264_v20, %v8265_v11  ;;  %v8556_v45 = vcombine.low %v8266_v48, %v8267_v57  ;;  %v6483_v49 = vmul.bf16 %v11367_v55, %v11133_v38 }
 0x2b7   : >> { %v8547_v60 = vrot.slane %v8540_v29, %v9999_v8  ;;  %v6329_v47 = vrot.slane %v6324_v5, %v9814_v19  ;;  %v6484_v62 = vmul.bf16 %v11370_v0, %v11118_v54  ;;  %v6485_v13 = vmul.bf16 %v6301_v50, %v11133_v38 }
 0x2b8   : >> { %v8555_v3 = vrot.slane %v8548_v10, %v9999_v8  ;;  %v6486_v40 = vmul.bf16 %v6308_v42, %v11118_v54  ;;  %v8563_v56 = vrot.slane %v8556_v45, %v9999_v8  ;;  %v6487_v2 = vmul.bf16 %v6315_v6, %v11133_v38 }
 0x2b9   : >> { %v8704_v16 = vcombine.low %v8539_v63, %v8547_v60  ;;  %v6488_v27 = vmul.bf16 %v6322_v28, %v11118_v54  ;;  %v6489_v20 = vmul.bf16 %v6329_v47, %v11133_v38  ;;  %v6730_v11 = vcombine.low %v6482_v4, %v6483_v49 }
 0x2ba   : >> { %v6738_v55 = vcombine.low %v6484_v62, %v6485_v13  ;;  %v7238_v37 = vmul.bf16 %v11345_v61, %v11158_v35  ;;  %v8705_v36 = vcombine.low %v8555_v3, %v8563_v56  ;;  %v6746_v50 = vcombine.low %v6486_v40, %v6487_v2 }
 0x2bb   : >> { %v8712_v0 = vrot.slane %v8704_v16, %v9999_v8  ;;  %v7239_v42 = vmul.bf16 %v11353_v9, %v11160_v22  ;;  %v6737_v48 = vrot.slane %v6730_v11, %v9999_v8  ;;  %v6754_v57 = vcombine.low %v6488_v27, %v6489_v20 }
 0x2bc   : >> { %v6745_v6 = vrot.slane %v6738_v55, %v9999_v8  ;;  %v12223_v29 = vmul.bf16 %v11183_v52, %v11141_v44  ;;  %v8719_v61 = vrot.slane %v8705_v36, %v9999_v8  ;;  %v6753_v63 = vrot.slane %v6746_v50, %v9999_v8 }
 0x2bd   : >> { %v7375_v10 = vcombine.low %v7238_v37, %v7239_v42  ;;  %v9325_v9 = vpack.i.b16 %v11194_v59, %v11194_v59  ;;  %v6761_v28 = vrot.slane %v6754_v57, %v9999_v8 }
 0x2be   : >> { %v5582_v5 = vcombine.low %v12223_v29, %v5467_v58  ;;  %v8887_v4 = vcombine.low %v6737_v48, %v6745_v6  ;;  %v8721_v41 = vcombine.high %v8712_v0, %v8719_v61  ;;  %v8720_v45 = vcombine.low %v8712_v0, %v8719_v61 }
 0x2bf   : >> { %v7382_v44 = vrot.slane %v7375_v10, %v9953_v39  ;;  %v7087_v52 = vrot.slane %v9325_v9, %v9814_v19  ;;  %v8888_v58 = vcombine.low %v6753_v63, %v6761_v28  ;;  %v11443_v13 = vrot.slane %v9325_v9, %v9821_v21 }
 0x2c0   : >> { %v5589_v60 = vrot.slane %v5582_v5, %v9953_v39  ;;  %v8895_v47 = vrot.slane %v8887_v4, %v9999_v8  ;;  %8758 = vmatprep.subr.bf16.mxu0 %v8721_v41 }
 0x2c1   : >> { %v7383_v3 = vcombine.high %v7382_v44, %v7382_v44  ;;  %v7390_v62 = vrot.slane %v7382_v44, %v9953_v39  ;;  %v7173_v40 = vpack.i.b16 %v7087_v52, %v7087_v52  ;;  %8759 = vmatpush1.bf16.msra.mxu0 %v8720_v45  ;;  %v8902_v56 = vrot.slane %v8888_v58, %v9999_v8 }
 0x2c2   : >> { %v5590_v49 = vcombine.high %v5589_v60, %v5589_v60  ;;  %v5597_v59 = vrot.slane %v5589_v60, %v9953_v39 }
 0x2c3   : >> { %v7397_v20 = vrot.slane %v7383_v3, %v9953_v39  ;;  %v7465_v11 = vunpack.i.h.s16 %v7390_v62  ;;  %v9337_v55 = vpack.i.b16 %v7390_v62, %v7390_v62  ;;  %v11449_v37 = vrot.slane %v7173_v40, %v9814_v19 }
 0x2c4   : >> { %v5604_v16 = vrot.slane %v5590_v49, %v9953_v39  ;;  %v5691_v2 = vunpack.i.h.s16 %v5597_v59  ;;  %v9311_v27 = vpack.i.b16 %v5597_v59, %v5597_v59  ;;  %v8904_v36 = vcombine.high %v8895_v47, %v8902_v56 }
 0x2c5   : >> { %v8903_v0 = vcombine.low %v8895_v47, %v8902_v56  ;;  %v7467_v48 = vunpack.i.h.s16 %v7397_v20  ;;  %v7497_v6 = vpack.i.b16 %v7465_v11, %v7465_v11  ;;  %v9338_v57 = vpack.i.b16 %v7397_v20, %v7397_v20 }
 0x2c6   : >> { %v5693_v50 = vunpack.i.h.s16 %v5604_v16  ;;  %v5723_v42 = vpack.i.b16 %v5691_v2, %v5691_v2  ;;  %v7671_v29 = vrot.slane %v9337_v55, %v9814_v19  ;;  %8961 = vmatprep.subr.bf16.mxu1 %v8904_v36  ;;  %v7675_v5 = vrot.slane %v9337_v55, %v9821_v21 }
 0x2c7   : >> { %v9312_v61 = vpack.i.b16 %v5604_v16, %v5604_v16  ;;  %v5869_v10 = vrot.slane %v9311_v27, %v9814_v19  ;;  %8962 = vmatpush1.bf16.msra.mxu1 %v8903_v0  ;;  %v7499_v9 = vpack.i.b16 %v7467_v48, %v7467_v48  ;;  %v7679_v28 = vrot.slane %v7497_v6, %v9814_v19 }
 0x2c8   : >> { %v5725_v63 = vpack.i.b16 %v5693_v50, %v5693_v50  ;;  %v7683_v4 = vrot.slane %v7497_v6, %v9821_v21  ;;  %v7687_v60 = vrot.slane %v9338_v57, %v9814_v19  ;;  %v7691_v41 = vrot.slane %v9338_v57, %v9821_v21 }
 0x2c9   : >> { %v8045_v45 = vpack.i.b16 %v7671_v29, %v7671_v29  ;;  %v8052_v44 = vpack.i.b16 %v7675_v5, %v7675_v5  ;;  %v5873_v52 = vrot.slane %v9311_v27, %v9821_v21  ;;  %v7695_v58 = vrot.slane %v7499_v9, %v9814_v19 }
 0x2ca   : >> { %v7699_v47 = vrot.slane %v7499_v9, %v9821_v21  ;;  %v8059_v49 = vpack.i.b16 %v7679_v28, %v7679_v28  ;;  %v8066_v59 = vpack.i.b16 %v7683_v4, %v7683_v4  ;;  %v8073_v40 = vpack.i.b16 %v7687_v60, %v7687_v60 }
 0x2cb   : >> { %v8050_v3 = vrot.slane %v8045_v45, %v9814_v19  ;;  %v8057_v62 = vrot.slane %v8052_v44, %v9814_v19  ;;  %v8080_v56 = vpack.i.b16 %v7691_v41, %v7691_v41  ;;  %v8087_v20 = vpack.i.b16 %v7695_v58, %v7695_v58 }
 0x2cc   : >> { %v8064_v16 = vrot.slane %v8059_v49, %v9814_v19  ;;  %v8071_v2 = vrot.slane %v8066_v59, %v9814_v19  ;;  %v8094_v11 = vpack.i.b16 %v7699_v47, %v7699_v47  ;;  %v8078_v27 = vrot.slane %v8073_v40, %v9814_v19 }
 0x2cd   : >> { %v8085_v55 = vrot.slane %v8080_v56, %v9814_v19  ;;  %v8252_v36 = vmul.bf16 %v8050_v3, %v11151_v26  ;;  %v8253_v0 = vmul.bf16 %v8057_v62, %v11153_v15  ;;  %v8092_v50 = vrot.slane %v8087_v20, %v9814_v19 }
 0x2ce   : >> { %v8099_v48 = vrot.slane %v8094_v11, %v9814_v19  ;;  %v8254_v6 = vmul.bf16 %v8064_v16, %v11151_v26  ;;  %v8255_v57 = vmul.bf16 %v8071_v2, %v11153_v15  ;;  %v8256_v29 = vmul.bf16 %v8078_v27, %v11151_v26 }
 0x2cf   : >> { %v8257_v5 = vmul.bf16 %v8085_v55, %v11153_v15  ;;  %v8500_v9 = vcombine.low %v8252_v36, %v8253_v0  ;;  %v5877_v28 = vrot.slane %v5723_v42, %v9814_v19  ;;  %v8258_v4 = vmul.bf16 %v8092_v50, %v11151_v26 }
 0x2d0   : >> { %v8259_v60 = vmul.bf16 %v8099_v48, %v11153_v15  ;;  %v8508_v41 = vcombine.low %v8254_v6, %v8255_v57  ;;  %v5881_v45 = vrot.slane %v5723_v42, %v9821_v21  ;;  %v5885_v47 = vrot.slane %v9312_v61, %v9814_v19 }
 0x2d1   : >> { %v8507_v44 = vrot.slane %v8500_v9, %v9999_v8  ;;  %v8516_v58 = vcombine.low %v8256_v29, %v8257_v5  ;;  %v5889_v49 = vrot.slane %v9312_v61, %v9821_v21  ;;  %v5893_v62 = vrot.slane %v5725_v63, %v9814_v19 }
 0x2d2   : >> { %v8515_v59 = vrot.slane %v8508_v41, %v9999_v8  ;;  %v8524_v3 = vcombine.low %v8258_v4, %v8259_v60  ;;  %v5897_v40 = vrot.slane %v5725_v63, %v9821_v21  ;;  %v6219_v16 = vpack.i.b16 %v5869_v10, %v5869_v10 }
 0x2d3   : >> { %v8523_v56 = vrot.slane %v8516_v58, %v9999_v8  ;;  %v6226_v2 = vpack.i.b16 %v5873_v52, %v5873_v52  ;;  %v6233_v20 = vpack.i.b16 %v5877_v28, %v5877_v28  ;;  %v6240_v27 = vpack.i.b16 %v5881_v45, %v5881_v45 }
 0x2d4   : >> { %v8531_v42 = vrot.slane %v8524_v3, %v9999_v8  ;;  %v8686_v11 = vcombine.low %v8507_v44, %v8515_v59  ;;  %v6247_v55 = vpack.i.b16 %v5885_v47, %v5885_v47  ;;  %v6224_v36 = vrot.slane %v6219_v16, %v9814_v19 }
 0x2d5   : >> { %v6231_v61 = vrot.slane %v6226_v2, %v9814_v19  ;;  %v6238_v0 = vrot.slane %v6233_v20, %v9814_v19  ;;  %v6254_v50 = vpack.i.b16 %v5889_v49, %v5889_v49  ;;  %v6245_v6 = vrot.slane %v6240_v27, %v9814_v19 }
 0x2d6   : >> { %v8687_v48 = vcombine.low %v8523_v56, %v8531_v42  ;;  %v8694_v63 = vrot.slane %v8686_v11, %v9999_v8  ;;  %v6252_v10 = vrot.slane %v6247_v55, %v9814_v19  ;;  %v6261_v57 = vpack.i.b16 %v5893_v62, %v5893_v62 }
 0x2d7   : >> { %v6259_v52 = vrot.slane %v6254_v50, %v9814_v19  ;;  %v6268_v29 = vpack.i.b16 %v5897_v40, %v5897_v40  ;;  %v6474_v5 = vmul.bf16 %v6224_v36, %v11118_v54  ;;  %v6475_v28 = vmul.bf16 %v6231_v61, %v11133_v38 }
 0x2d8   : >> { %v8701_v9 = vrot.slane %v8687_v48, %v9999_v8  ;;  %v6476_v4 = vmul.bf16 %v6238_v0, %v11118_v54  ;;  %v6477_v60 = vmul.bf16 %v6245_v6, %v11133_v38  ;;  %v6266_v41 = vrot.slane %v6261_v57, %v9814_v19 }
 0x2d9   : >> { %v6273_v45 = vrot.slane %v6268_v29, %v9814_v19  ;;  %v6478_v44 = vmul.bf16 %v6252_v10, %v11118_v54  ;;  %v6479_v58 = vmul.bf16 %v6259_v52, %v11133_v38  ;;  %v6698_v59 = vcombine.low %v6474_v5, %v6475_v28 }
 0x2da   : >> { %v8703_v47 = vcombine.high %v8694_v63, %v8701_v9  ;;  %v8702_v49 = vcombine.low %v8694_v63, %v8701_v9  ;;  %v6706_v3 = vcombine.low %v6476_v4, %v6477_v60  ;;  %v6480_v62 = vmul.bf16 %v6266_v41, %v11118_v54 }
 0x2db   : >> { %v6481_v40 = vmul.bf16 %v6273_v45, %v11133_v38  ;;  %v6714_v56 = vcombine.low %v6478_v44, %v6479_v58  ;;  %v7180_v16 = vpack.i.b16 %v11443_v13, %v11443_v13  ;;  %v6705_v2 = vrot.slane %v6698_v59, %v9999_v8 }
 0x2dc   : >> { %8760 = vmatprep.subr.bf16.mxu0 %v8703_v47  ;;  %v6713_v20 = vrot.slane %v6706_v3, %v9999_v8  ;;  %v7236_v42 = vmul.bf16 %v11449_v37, %v11158_v35  ;;  %v5061_v11 = vrot.slane %v11187_v43, %v9821_v21  ;;  %v5074_v13 = vsub.f32 %v5057_v46, %v12218_v1 }
 0x2dd   : >> { %8761 = vmatpush1.bf16.msra.mxu0 %v8702_v49  ;;  %v6721_v54 = vrot.slane %v6714_v56, %v9999_v8  ;;  %v6722_v27 = vcombine.low %v6480_v62, %v6481_v40  ;;  %v7185_v38 = vrot.slane %v7180_v16, %v9814_v19  ;;  %v5111_v35 = vrot.slane %v11080_v53, %v9953_v39 }
 0x2de   : >> { %v8869_v55 = vcombine.low %v6705_v2, %v6713_v20  ;;  %v5075_v36 = vsub.f32 %v5061_v11, %v12218_v1  ;;  %v11524_v37 = vrot.slane %v11074_v14, %v9953_v39  ;;  %v12224_v61 = vmax.f32 %v11107_v18, 0.0 }
 0x2df   : >> { %v6729_v50 = vrot.slane %v6722_v27, %v9999_v8  ;;  %v7237_v48 = vmul.bf16 %v7185_v38, %v11160_v22  ;;  %v5078_v46 = vand.u32 2147483647, %v5074_v13  ;;  %v5122_v10 = vrot.slane %v5111_v35, %v9814_v19 }
 0x2e0   : >> { %v11529_v0 = vpack.c.bf16 %v12224_v61, %v12224_v61  ;;  %v8877_v63 = vrot.slane %v8869_v55, %v9999_v8  ;;  %v5079_v6 = vand.u32 2147483647, %v5075_v36  ;;  %v5126_v53 = vrot.slane %v5111_v35, %v9821_v21 }
 0x2e1   : >> { %v8870_v52 = vcombine.low %v6721_v54, %v6729_v50  ;;  %v7352_v14 = vcombine.low %v7236_v42, %v7237_v48  ;;  %v11536_v57 = vsub.f32 1.0, %v5078_v46  ;;  %vm5180_vm7 = vcmp.ne.s32.totalorder %v11524_v37, 0 }
 0x2e2   : >> { %v6861_v18 = vmax.f32 %v11146_v33, 0.0  ;;  %v12225_v29 = vmax.f32 %v11135_v12, 0.0  ;;  %v5139_v5 = vsub.f32 %v5122_v10, %v12218_v1  ;;  %v5140_v9 = vsub.f32 %v5126_v53, %v12218_v1 }
 0x2e3   : >> { %v8884_v28 = vrot.slane %v8870_v52, %v9999_v8  ;;  %v7359_v4 = vrot.slane %v7352_v14, %v9953_v39  ;;  %v9295_v60 = vsel %vm5180_vm7, 1.0, %v12219_v23  ;;  %v11552_v41 = vcombine.high %v11187_v43, %v11187_v43 }
 0x2e4   : >> { %v11543_v22 = vpack.c.bf16 %v12225_v29, %v12225_v29  ;;  %v11554_v45 = vsub.f32 1.0, %v5079_v6  ;;  %v5086_v12 = vmax.f32 %v11536_v57, 0.0  ;;  %v5143_v44 = vand.u32 2147483647, %v5139_v5 }
 0x2e5   : >> { %v5144_v58 = vand.u32 2147483647, %v5140_v9  ;;  %v8886_v47 = vcombine.high %v8877_v63, %v8884_v28  ;;  %v8885_v49 = vcombine.low %v8877_v63, %v8884_v28  ;;  %v7360_v59 = vcombine.high %v7359_v4, %v7359_v4 }
 0x2e6   : >> { %v7367_v3 = vrot.slane %v7359_v4, %v9953_v39  ;;  %v5147_v62 = vsub.f32 1.0, %v5143_v44  ;;  %v5191_v56 = vrot.slane %v9295_v60, %v9814_v19  ;;  %v5195_v16 = vrot.slane %v9295_v60, %v9821_v21 }
 0x2e7   : >> { %v5148_v40 = vsub.f32 1.0, %v5144_v58  ;;  %8963 = vmatprep.subr.bf16.mxu1 %v8886_v47  ;;  %v7374_v43 = vrot.slane %v7360_v59, %v9953_v39  ;;  %v6873_v42 = vrot.slane %v11552_v41, %v9814_v19  ;;  %v6877_v27 = vrot.slane %v11552_v41, %v9821_v21 }
 0x2e8   : >> { %v7461_v2 = vunpack.i.h.s16 %v7367_v3  ;;  %v9335_v20 = vpack.i.b16 %v7367_v3, %v7367_v3  ;;  %8964 = vmatpush1.bf16.msra.mxu1 %v8885_v49  ;;  %v5151_v11 = vmax.f32 %v5147_v62, 0.0  ;;  %v11565_v38 = vcombine.high %v5111_v35, %v5111_v35 }
 0x2e9   : >> { %v5152_v54 = vmax.f32 %v5148_v40, 0.0  ;;  %v7463_v13 = vunpack.i.h.s16 %v7374_v43  ;;  %v9336_v36 = vpack.i.b16 %v7374_v43, %v7374_v43  ;;  %v6890_v63 = vsub.f32 %v6873_v42, %v12218_v1 }
 0x2ea   : >> { %v7493_v55 = vpack.i.b16 %v7461_v2, %v7461_v2  ;;  %v7639_v61 = vrot.slane %v9335_v20, %v9814_v19  ;;  %v7643_v50 = vrot.slane %v9335_v20, %v9821_v21  ;;  %v5208_v48 = vmul.f32 %v5191_v56, %v5151_v11 }
 0x2eb   : >> { %v5209_v46 = vmul.f32 %v5195_v16, %v5152_v54  ;;  %v7495_v6 = vpack.i.b16 %v7463_v13, %v7463_v13  ;;  %v7655_v52 = vrot.slane %v9336_v36, %v9814_v19  ;;  %v7659_v35 = vrot.slane %v9336_v36, %v9821_v21 }
 0x2ec   : >> { %v7647_v10 = vrot.slane %v7493_v55, %v9814_v19  ;;  %v7651_v53 = vrot.slane %v7493_v55, %v9821_v21  ;;  %v7989_v14 = vpack.i.b16 %v7639_v61, %v7639_v61  ;;  %v7996_v29 = vpack.i.b16 %v7643_v50, %v7643_v50 }
 0x2ed   : >> { %v9297_v5 = vpack.c.bf16 %v5209_v46, %v5208_v48  ;;  %v7663_v9 = vrot.slane %v7495_v6, %v9814_v19  ;;  %v7667_v28 = vrot.slane %v7495_v6, %v9821_v21  ;;  %v8017_v58 = vpack.i.b16 %v7655_v52, %v7655_v52 }
 0x2ee   : >> { %v8003_v4 = vpack.i.b16 %v7647_v10, %v7647_v10  ;;  %v8010_v60 = vpack.i.b16 %v7651_v53, %v7651_v53  ;;  %v7994_v41 = vrot.slane %v7989_v14, %v9814_v19  ;;  %v8001_v44 = vrot.slane %v7996_v29, %v9814_v19 }
 0x2ef   : >> { %v8024_v47 = vpack.i.b16 %v7659_v35, %v7659_v35  ;;  %v8031_v3 = vpack.i.b16 %v7663_v9, %v7663_v9  ;;  %v8038_v62 = vpack.i.b16 %v7667_v28, %v7667_v28  ;;  %v8022_v40 = vrot.slane %v8017_v58, %v9814_v19 }
 0x2f0   : >> { %v8008_v49 = vrot.slane %v8003_v4, %v9814_v19  ;;  %v8015_v59 = vrot.slane %v8010_v60, %v9814_v19  ;;  %v8244_v16 = vmul.bf16 %v7994_v41, %v11151_v26  ;;  %v8245_v43 = vmul.bf16 %v8001_v44, %v11153_v15 }
 0x2f1   : >> { %v8029_v56 = vrot.slane %v8024_v47, %v9814_v19  ;;  %v8036_v2 = vrot.slane %v8031_v3, %v9814_v19  ;;  %v8043_v20 = vrot.slane %v8038_v62, %v9814_v19  ;;  %v8248_v54 = vmul.bf16 %v8022_v40, %v11151_v26 }
 0x2f2   : >> { %v8246_v42 = vmul.bf16 %v8008_v49, %v11151_v26  ;;  %v8247_v11 = vmul.bf16 %v8015_v59, %v11153_v15  ;;  %v8468_v55 = vcombine.low %v8244_v16, %v8245_v43  ;;  %v5227_v36 = vrot.slane %v9297_v5, %v9953_v39 }
 0x2f3   : >> { %v8249_v13 = vmul.bf16 %v8029_v56, %v11153_v15  ;;  %v8250_v61 = vmul.bf16 %v8036_v2, %v11151_v26  ;;  %v8251_v50 = vmul.bf16 %v8043_v20, %v11153_v15  ;;  %v6891_v46 = vsub.f32 %v6877_v27, %v12218_v1 }
 0x2f4   : >> { %v8476_v48 = vcombine.low %v8246_v42, %v8247_v11  ;;  %v8475_v6 = vrot.slane %v8468_v55, %v9999_v8  ;;  %v5228_v53 = vcombine.high %v5227_v36, %v5227_v36  ;;  %v6894_v52 = vand.u32 2147483647, %v6890_v63 }
 0x2f5   : >> { %v8484_v10 = vcombine.low %v8248_v54, %v8249_v13  ;;  %v8492_v14 = vcombine.low %v8250_v61, %v8251_v50  ;;  %v5087_v29 = vmax.f32 %v11554_v45, 0.0  ;;  %v6915_v5 = vrot.slane %v11565_v38, %v9814_v19 }
 0x2f6   : >> { %v8483_v35 = vrot.slane %v8476_v48, %v9999_v8  ;;  %v5242_v15 = vrot.slane %v5228_v53, %v9953_v39  ;;  %v6895_v9 = vand.u32 2147483647, %v6891_v46  ;;  %v6919_v27 = vrot.slane %v11565_v38, %v9821_v21 }
 0x2f7   : >> { %v8491_v26 = vrot.slane %v8484_v10, %v9999_v8  ;;  %v8499_v28 = vrot.slane %v8492_v14, %v9999_v8  ;;  %v6898_v63 = vsub.f32 1.0, %v6894_v52  ;;  %v6932_v60 = vsub.f32 %v6915_v5, %v12218_v1 }
 0x2f8   : >> { %v8668_v4 = vcombine.low %v8475_v6, %v8483_v35  ;;  %v11608_v45 = vpack.c.bf16 %v5086_v12, %v5086_v12  ;;  %v5269_v41 = vunpack.i.h.s16 %v5242_v15  ;;  %v6933_v44 = vsub.f32 %v6919_v27, %v12218_v1 }
 0x2f9   : >> { %v6948_v58 = vcombine.high %v11524_v37, %v11524_v37  ;;  %v8669_v47 = vcombine.low %v8491_v26, %v8499_v28  ;;  %v11614_v49 = vpack.c.bf16 %v5087_v29, %v5087_v29  ;;  %v6936_v59 = vand.u32 2147483647, %v6932_v60 }
 0x2fa   : >> { %v8676_v38 = vrot.slane %v8668_v4, %v9999_v8  ;;  %v5277_v3 = vpack.i.b16 %v5269_v41, %v5269_v41  ;;  %v6899_v62 = vsub.f32 1.0, %v6895_v9  ;;  %v6937_v40 = vand.u32 2147483647, %v6933_v44 }
 0x2fb   : >> { %vm6950_vm8 = vcmp.ne.s32.totalorder %v6948_v58, 0  ;;  %v8683_v57 = vrot.slane %v8669_v47, %v9999_v8  ;;  %v6902_v12 = vmax.f32 %v6898_v63, 0.0  ;;  %v6940_v56 = vsub.f32 1.0, %v6936_v59 }
 0x2fc   : >> { %v9319_v16 = vsel %vm6950_vm8, 1.0, %v12219_v23  ;;  %v5309_v1 = vrot.slane %v5277_v3, %v9814_v19  ;;  %v5313_v37 = vrot.slane %v5277_v3, %v9821_v21  ;;  %v6941_v43 = vsub.f32 1.0, %v6937_v40 }
 0x2fd   : >> { %v6961_v2 = vrot.slane %v9319_v16, %v9814_v19  ;;  %v8685_v20 = vcombine.high %v8676_v38, %v8683_v57  ;;  %v8684_v42 = vcombine.low %v8676_v38, %v8683_v57  ;;  %v6944_v11 = vmax.f32 %v6940_v56, 0.0 }
 0x2fe   : >> { %v6965_v54 = vrot.slane %v9319_v16, %v9821_v21  ;;  %v5389_v13 = vpack.i.b16 %v5309_v1, %v5309_v1  ;;  %v5396_v55 = vpack.i.b16 %v5313_v37, %v5313_v37  ;;  %v6945_v61 = vmax.f32 %v6941_v43, 0.0 }
 0x2ff   : >> { %v9300_v50 = vpack.i.b16 %v5242_v15, %v5242_v15  ;;  %v11625_v23 = vpack.c.bf16 %v6861_v18, %v6861_v18  ;;  %8762 = vmatprep.subr.bf16.mxu0 %v8685_v20  ;;  %v6903_v48 = vmax.f32 %v6899_v62, 0.0  ;;  %v6978_v46 = vmul.f32 %v6961_v2, %v6944_v11 }
 0x300   : >> { %v5235_v6 = vrot.slane %v5227_v36, %v9953_v39  ;;  %8763 = vmatpush1.bf16.msra.mxu0 %v8684_v42  ;;  %v5394_v10 = vrot.slane %v5389_v13, %v9814_v19  ;;  %v5401_v53 = vrot.slane %v5396_v55, %v9814_v19  ;;  %v6979_v52 = vmul.f32 %v6965_v54, %v6945_v61 }
 0x301   : >> { %v5301_v35 = vrot.slane %v9300_v50, %v9814_v19  ;;  %v11631_v14 = vpack.c.bf16 %v6902_v12, %v6902_v12  ;;  %v5305_v33 = vrot.slane %v9300_v50, %v9821_v21  ;;  %v11636_v9 = vpack.c.bf16 %v6903_v48, %v6903_v48 }
 0x302   : >> { %v5267_v29 = vunpack.i.h.s16 %v5235_v6  ;;  %v9299_v18 = vpack.i.b16 %v5235_v6, %v5235_v6  ;;  %v5464_v5 = vmul.bf16 %v5394_v10, %v11608_v45  ;;  %v5465_v26 = vmul.bf16 %v5401_v53, %v11614_v49 }
 0x303   : >> { %v9321_v15 = vpack.c.bf16 %v6979_v52, %v6978_v46  ;;  %v5375_v36 = vpack.i.b16 %v5301_v35, %v5301_v35  ;;  %v5382_v27 = vpack.i.b16 %v5305_v33, %v5305_v33 }
 0x304   : >> { %v5275_v28 = vpack.i.b16 %v5267_v29, %v5267_v29  ;;  %v5285_v4 = vrot.slane %v9299_v18, %v9814_v19  ;;  %v5559_v63 = vcombine.low %v5464_v5, %v5465_v26  ;;  %v11642_v44 = vrot.slane %v9299_v18, %v9821_v21 }
 0x305   : >> { %v6997_v60 = vrot.slane %v9321_v15, %v9953_v39  ;;  %v5380_v41 = vrot.slane %v5375_v36, %v9814_v19  ;;  %v5387_v58 = vrot.slane %v5382_v27, %v9814_v19 }
 0x306   : >> { %v5293_v47 = vrot.slane %v5275_v28, %v9814_v19  ;;  %v5297_v38 = vrot.slane %v5275_v28, %v9821_v21  ;;  %v5347_v59 = vpack.i.b16 %v5285_v4, %v5285_v4  ;;  %v5566_v3 = vrot.slane %v5559_v63, %v9953_v39 }
 0x307   : >> { %v6998_v62 = vcombine.high %v6997_v60, %v6997_v60  ;;  %v5462_v40 = vmul.bf16 %v5380_v41, %v11608_v45  ;;  %v11650_v57 = vrot.slane %v6997_v60, %v9953_v39  ;;  %v5463_v12 = vmul.bf16 %v5387_v58, %v11614_v49 }
 0x308   : >> { %v5361_v56 = vpack.i.b16 %v5293_v47, %v5293_v47  ;;  %v5368_v16 = vpack.i.b16 %v5297_v38, %v5297_v38  ;;  %v11654_v1 = vrot.slane %v5347_v59, %v9814_v19  ;;  %v5567_v37 = vcombine.high %v5566_v3, %v5566_v3 }
 0x309   : >> { %v5574_v43 = vrot.slane %v5566_v3, %v9953_v39  ;;  %v7012_v2 = vrot.slane %v6998_v62, %v9953_v39  ;;  %v7037_v20 = vunpack.i.h.s16 %v11650_v57  ;;  %v5536_v42 = vcombine.low %v5462_v40, %v5463_v12 }
 0x30a   : >> { %v11660_v11 = vrot.slane %v5361_v56, %v9814_v19  ;;  %v11663_v54 = vrot.slane %v5368_v16, %v9814_v19  ;;  %v5354_v13 = vpack.i.b16 %v11642_v44, %v11642_v44  ;;  %v5581_v55 = vrot.slane %v5567_v37, %v9953_v39 }
 0x30b   : >> { %v5687_v61 = vunpack.i.h.s16 %v5574_v43  ;;  %v9309_v50 = vpack.i.b16 %v5574_v43, %v5574_v43  ;;  %v7039_v48 = vunpack.i.h.s16 %v7012_v2  ;;  %v5543_v46 = vrot.slane %v5536_v42, %v9953_v39 }
 0x30c   : >> { %v11669_v6 = vpack.i.b16 %v7012_v2, %v7012_v2  ;;  %v5460_v10 = vmul.bf16 %v11660_v11, %v11608_v45  ;;  %v5461_v53 = vmul.bf16 %v11663_v54, %v11614_v49  ;;  %v5689_v52 = vunpack.i.h.s16 %v5581_v55 }
 0x30d   : >> { %v5719_v35 = vpack.i.b16 %v5687_v61, %v5687_v61  ;;  %v9310_v33 = vpack.i.b16 %v5581_v55, %v5581_v55  ;;  %v5837_v29 = vrot.slane %v9309_v50, %v9814_v19  ;;  %v5841_v18 = vrot.slane %v9309_v50, %v9821_v21 }
 0x30e   : >> { %v7047_v5 = vpack.i.b16 %v7039_v48, %v7039_v48  ;;  %v5544_v26 = vcombine.high %v5543_v46, %v5543_v46  ;;  %v5551_v15 = vrot.slane %v5543_v46, %v9953_v39  ;;  %v5721_v36 = vpack.i.b16 %v5689_v52, %v5689_v52 }
 0x30f   : >> { %v5845_v27 = vrot.slane %v5719_v35, %v9814_v19  ;;  %v5849_v28 = vrot.slane %v5719_v35, %v9821_v21  ;;  %v5853_v4 = vrot.slane %v9310_v33, %v9814_v19  ;;  %v5857_v63 = vrot.slane %v9310_v33, %v9821_v21 }
 0x310   : >> { %v6163_v60 = vpack.i.b16 %v5837_v29, %v5837_v29  ;;  %v6170_v41 = vpack.i.b16 %v5841_v18, %v5841_v18  ;;  %v7079_v58 = vrot.slane %v7047_v5, %v9814_v19  ;;  %v5861_v47 = vrot.slane %v5721_v36, %v9814_v19 }
 0x311   : >> { %v5865_v38 = vrot.slane %v5721_v36, %v9821_v21  ;;  %v6177_v59 = vpack.i.b16 %v5845_v27, %v5845_v27  ;;  %v6184_v3 = vpack.i.b16 %v5849_v28, %v5849_v28  ;;  %v6191_v12 = vpack.i.b16 %v5853_v4, %v5853_v4 }
 0x312   : >> { %v6168_v62 = vrot.slane %v6163_v60, %v9814_v19  ;;  %v6175_v40 = vrot.slane %v6170_v41, %v9814_v19  ;;  %v6198_v56 = vpack.i.b16 %v5857_v63, %v5857_v63  ;;  %v6205_v43 = vpack.i.b16 %v5861_v47, %v5861_v47 }
 0x313   : >> { %v6182_v16 = vrot.slane %v6177_v59, %v9814_v19  ;;  %v6189_v37 = vrot.slane %v6184_v3, %v9814_v19  ;;  %v6212_v2 = vpack.i.b16 %v5865_v38, %v5865_v38  ;;  %v6196_v42 = vrot.slane %v6191_v12, %v9814_v19 }
 0x314   : >> { %v6203_v55 = vrot.slane %v6198_v56, %v9814_v19  ;;  %v6466_v61 = vmul.bf16 %v6168_v62, %v11116_v34  ;;  %v6467_v50 = vmul.bf16 %v6175_v40, %v11529_v0  ;;  %v6210_v48 = vrot.slane %v6205_v43, %v9814_v19 }
 0x315   : >> { %v6217_v46 = vrot.slane %v6212_v2, %v9814_v19  ;;  %v6468_v52 = vmul.bf16 %v6182_v16, %v11116_v34  ;;  %v6469_v35 = vmul.bf16 %v6189_v37, %v11529_v0  ;;  %v6470_v33 = vmul.bf16 %v6196_v42, %v11116_v34  ;;  %v11708_v37 = vpop.f32.mrf.mxu1 }
 0x316   : >> { %v6471_v29 = vmul.bf16 %v6203_v55, %v11529_v0  ;;  %v6666_v18 = vcombine.low %v6466_v61, %v6467_v50  ;;  %v7083_v36 = vrot.slane %v7047_v5, %v9821_v21  ;;  %v6472_v27 = vmul.bf16 %v6210_v48, %v11116_v34 }
 0x317   : >> { %v6473_v28 = vmul.bf16 %v6217_v46, %v11529_v0  ;;  %v6674_v4 = vcombine.low %v6468_v52, %v6469_v35  ;;  %v7159_v63 = vpack.i.b16 %v7079_v58, %v7079_v58  ;;  %v5558_v38 = vrot.slane %v5544_v26, %v9953_v39  ;;  %v11710_v58 = vpop.f32.mrf.mxu0  ;;  %v11716_v46 = vpop.f32.mrf.mxu1 }
 0x318   : >> { %v6673_v60 = vrot.slane %v6666_v18, %v9999_v8  ;;  %v6682_v41 = vcombine.low %v6470_v33, %v6471_v29  ;;  %v7166_v47 = vpack.i.b16 %v7083_v36, %v7083_v36  ;;  %v5683_v40 = vunpack.i.h.s16 %v5551_v15 }
 0x319   : >> { %v6681_v59 = vrot.slane %v6674_v4, %v9999_v8  ;;  %v6690_v3 = vcombine.low %v6472_v27, %v6473_v28  ;;  %v7164_v62 = vrot.slane %v7159_v63, %v9814_v19  ;;  %v5685_v56 = vunpack.i.h.s16 %v5558_v38  ;;  %v11718_v52 = vpop.f32.mrf.mxu0  ;;  %v4870_v4 = vpop.f32.mrf.mxu1 }
 0x31a   : >> { %v6689_v5 = vrot.slane %v6682_v41, %v9999_v8  ;;  %v7171_v12 = vrot.slane %v7166_v47, %v9814_v19  ;;  %v9307_v16 = vpack.i.b16 %v5551_v15, %v5551_v15  ;;  %v5715_v42 = vpack.i.b16 %v5683_v40, %v5683_v40 }
 0x31b   : >> { %v6697_v43 = vrot.slane %v6690_v3, %v9999_v8  ;;  %v8851_v2 = vcombine.low %v6673_v60, %v6681_v59  ;;  %v7234_v26 = vmul.bf16 %v7164_v62, %v11631_v14  ;;  %v9308_v61 = vpack.i.b16 %v5558_v38, %v5558_v38  ;;  %v4669_v63 = vpop.f32.mrf.mxu0 }
 0x31c   : >> { %v7235_v55 = vmul.bf16 %v7171_v12, %v11636_v9  ;;  %v5717_v50 = vpack.i.b16 %v5685_v56, %v5685_v56  ;;  %v5805_v48 = vrot.slane %v9307_v16, %v9814_v19  ;;  %v5809_v33 = vrot.slane %v9307_v16, %v9821_v21 }
 0x31d   : >> { %v8852_v15 = vcombine.low %v6689_v5, %v6697_v43  ;;  %v8859_v35 = vrot.slane %v8851_v2, %v9999_v8  ;;  %v5813_v29 = vrot.slane %v5715_v42, %v9814_v19  ;;  %v5817_v36 = vrot.slane %v5715_v42, %v9821_v21  ;;  %v4871_v5 = vpop.f32.mrf.mxu1  ;;  %v4670_v12 = vpop.f32.mrf.mxu0 }
 0x31e   : >> { %v7329_v18 = vcombine.low %v7234_v26, %v7235_v55  ;;  %v5821_v27 = vrot.slane %v9308_v61, %v9814_v19  ;;  %v5825_v28 = vrot.slane %v9308_v61, %v9821_v21  ;;  %v5829_v41 = vrot.slane %v5717_v50, %v9814_v19 }
 0x31f   : >> { %v8866_v60 = vrot.slane %v8852_v15, %v9999_v8  ;;  %v5833_v47 = vrot.slane %v5717_v50, %v9821_v21  ;;  %v6107_v38 = vpack.i.b16 %v5805_v48, %v5805_v48  ;;  %v6114_v3 = vpack.i.b16 %v5809_v33, %v5809_v33 }
 0x320   : >> { %v7336_v59 = vrot.slane %v7329_v18, %v9953_v39  ;;  %v6121_v62 = vpack.i.b16 %v5813_v29, %v5813_v29  ;;  %v6128_v40 = vpack.i.b16 %v5817_v36, %v5817_v36  ;;  %v6135_v2 = vpack.i.b16 %v5821_v27, %v5821_v27 }
 0x321   : >> { %v8868_v56 = vcombine.high %v8859_v35, %v8866_v60  ;;  %v8867_v16 = vcombine.low %v8859_v35, %v8866_v60  ;;  %v11731_v43 = vrot.slane %v6107_v38, %v9814_v19  ;;  %v11735_v55 = vrot.slane %v6114_v3, %v9814_v19 }
 0x322   : >> { %v7337_v26 = vcombine.high %v7336_v59, %v7336_v59  ;;  %v7344_v42 = vrot.slane %v7336_v59, %v9953_v39  ;;  %v11738_v61 = vrot.slane %v6121_v62, %v9814_v19  ;;  %v11741_v50 = vrot.slane %v6128_v40, %v9814_v19 }
 0x323   : >> { %8965 = vmatprep.subr.bf16.mxu1 %v8868_v56  ;;  %v11744_v48 = vrot.slane %v6135_v2, %v9814_v19  ;;  %v6142_v15 = vpack.i.b16 %v5825_v28, %v5825_v28  ;;  %v6149_v35 = vpack.i.b16 %v5829_v41, %v5829_v41  ;;  %v6156_v36 = vpack.i.b16 %v5833_v47, %v5833_v47 }
 0x324   : >> { %8966 = vmatpush1.bf16.msra.mxu1 %v8867_v16  ;;  %v7351_v33 = vrot.slane %v7337_v26, %v9953_v39  ;;  %v7457_v29 = vunpack.i.h.s16 %v7344_v42  ;;  %v9333_v18 = vpack.i.b16 %v7344_v42, %v7344_v42  ;;  %v6458_v63 = vmul.bf16 %v11731_v43, %v11116_v34 }
 0x325   : >> { %v6147_v27 = vrot.slane %v6142_v15, %v9814_v19  ;;  %v6154_v4 = vrot.slane %v6149_v35, %v9814_v19  ;;  %v6459_v60 = vmul.bf16 %v11735_v55, %v11529_v0  ;;  %v6161_v62 = vrot.slane %v6156_v36, %v9814_v19 }
 0x326   : >> { %v7459_v38 = vunpack.i.h.s16 %v7351_v33  ;;  %v7489_v59 = vpack.i.b16 %v7457_v29, %v7457_v29  ;;  %v9334_v28 = vpack.i.b16 %v7351_v33, %v7351_v33  ;;  %v7607_v41 = vrot.slane %v9333_v18, %v9814_v19 }
 0x327   : >> { %v7611_v3 = vrot.slane %v9333_v18, %v9821_v21  ;;  %v6460_v47 = vmul.bf16 %v11738_v61, %v11116_v34  ;;  %v6461_v40 = vmul.bf16 %v11741_v50, %v11529_v0  ;;  %v6462_v42 = vmul.bf16 %v11744_v48, %v11116_v34 }
 0x328   : >> { %v7491_v5 = vpack.i.b16 %v7459_v38, %v7459_v38  ;;  %v7615_v12 = vrot.slane %v7489_v59, %v9814_v19  ;;  %v7619_v56 = vrot.slane %v7489_v59, %v9821_v21  ;;  %v7623_v16 = vrot.slane %v9334_v28, %v9814_v19 }
 0x329   : >> { %v7627_v43 = vrot.slane %v9334_v28, %v9821_v21  ;;  %v7933_v2 = vpack.i.b16 %v7607_v41, %v7607_v41  ;;  %v7940_v26 = vpack.i.b16 %v7611_v3, %v7611_v3 }
 0x32a   : >> { %v7631_v55 = vrot.slane %v7491_v5, %v9814_v19  ;;  %v7635_v61 = vrot.slane %v7491_v5, %v9821_v21  ;;  %v7947_v15 = vpack.i.b16 %v7615_v12, %v7615_v12  ;;  %v7954_v50 = vpack.i.b16 %v7619_v56, %v7619_v56 }
 0x32b   : >> { %v7938_v35 = vrot.slane %v7933_v2, %v9814_v19  ;;  %v7945_v33 = vrot.slane %v7940_v26, %v9814_v19  ;;  %v7961_v29 = vpack.i.b16 %v7623_v16, %v7623_v16  ;;  %v7968_v18 = vpack.i.b16 %v7627_v43, %v7627_v43 }
 0x32c   : >> { %v7952_v36 = vrot.slane %v7947_v15, %v9814_v19  ;;  %v7959_v38 = vrot.slane %v7954_v50, %v9814_v19  ;;  %v7975_v59 = vpack.i.b16 %v7631_v55, %v7631_v55  ;;  %v7982_v28 = vpack.i.b16 %v7635_v61, %v7635_v61 }
 0x32d   : >> { %v7966_v48 = vrot.slane %v7961_v29, %v9814_v19  ;;  %v7973_v41 = vrot.slane %v7968_v18, %v9814_v19  ;;  %v8236_v3 = vmul.bf16 %v7938_v35, %v11543_v22  ;;  %v8237_v5 = vmul.bf16 %v7945_v33, %v11625_v23 }
 0x32e   : >> { %v7980_v12 = vrot.slane %v7975_v59, %v9814_v19  ;;  %v7987_v56 = vrot.slane %v7982_v28, %v9814_v19  ;;  %v8238_v16 = vmul.bf16 %v7952_v36, %v11543_v22  ;;  %v8239_v43 = vmul.bf16 %v7959_v38, %v11625_v23 }
 0x32f   : >> { %v8240_v2 = vmul.bf16 %v7966_v48, %v11543_v22  ;;  %v8241_v26 = vmul.bf16 %v7973_v41, %v11625_v23  ;;  %v8436_v55 = vcombine.low %v8236_v3, %v8237_v5  ;;  %v6463_v61 = vmul.bf16 %v6147_v27, %v11529_v0 }
 0x330   : >> { %v8242_v15 = vmul.bf16 %v7980_v12, %v11543_v22  ;;  %v8243_v50 = vmul.bf16 %v7987_v56, %v11625_v23  ;;  %v8444_v35 = vcombine.low %v8238_v16, %v8239_v43  ;;  %v6464_v33 = vmul.bf16 %v6154_v4, %v11116_v34 }
 0x331   : >> { %v8443_v29 = vrot.slane %v8436_v55, %v9999_v8  ;;  %v8452_v18 = vcombine.low %v8240_v2, %v8241_v26  ;;  %v6465_v36 = vmul.bf16 %v6161_v62, %v11529_v0  ;;  %v6634_v38 = vcombine.low %v6458_v63, %v6459_v60 }
 0x332   : >> { %v8451_v59 = vrot.slane %v8444_v35, %v9999_v8  ;;  %v8460_v28 = vcombine.low %v8242_v15, %v8243_v50  ;;  %v6642_v48 = vcombine.low %v6460_v47, %v6461_v40  ;;  %v6650_v41 = vcombine.low %v6462_v42, %v6463_v61 }
 0x333   : >> { %v8459_v27 = vrot.slane %v8452_v18, %v9999_v8  ;;  %v6641_v3 = vrot.slane %v6634_v38, %v9999_v8  ;;  %v6658_v5 = vcombine.low %v6464_v33, %v6465_v36  ;;  %v7071_v12 = vrot.slane %v11669_v6, %v9814_v19 }
 0x334   : >> { %v8467_v4 = vrot.slane %v8460_v28, %v9999_v8  ;;  %v8650_v56 = vcombine.low %v8443_v29, %v8451_v59  ;;  %v6649_v16 = vrot.slane %v6642_v48, %v9999_v8  ;;  %v6657_v63 = vrot.slane %v6650_v41, %v9999_v8 }
 0x335   : >> { %v6665_v60 = vrot.slane %v6658_v5, %v9999_v8  ;;  %v7075_v62 = vrot.slane %v11669_v6, %v9821_v21  ;;  %v7145_v47 = vpack.i.b16 %v7071_v12, %v7071_v12  ;;  %v5513_v40 = vcombine.low %v5460_v10, %v5461_v53 }
 0x336   : >> { %v8651_v42 = vcombine.low %v8459_v27, %v8467_v4  ;;  %v8658_v43 = vrot.slane %v8650_v56, %v9999_v8  ;;  %v8833_v2 = vcombine.low %v6641_v3, %v6649_v16  ;;  %v7045_v26 = vpack.i.b16 %v7037_v20, %v7037_v20 }
 0x337   : >> { %v8834_v55 = vcombine.low %v6657_v63, %v6665_v60  ;;  %v7150_v61 = vrot.slane %v7145_v47, %v9814_v19  ;;  %v7152_v6 = vpack.i.b16 %v7075_v62, %v7075_v62  ;;  %v5520_v15 = vrot.slane %v5513_v40, %v9953_v39 }
 0x338   : >> { %v8665_v54 = vrot.slane %v8651_v42, %v9999_v8  ;;  %v8841_v50 = vrot.slane %v8833_v2, %v9999_v8  ;;  %v7063_v11 = vrot.slane %v7045_v26, %v9814_v19  ;;  %v7067_v10 = vrot.slane %v7045_v26, %v9821_v21 }
 0x339   : >> { %v8848_v53 = vrot.slane %v8834_v55, %v9999_v8  ;;  %v7157_v35 = vrot.slane %v7152_v6, %v9814_v19  ;;  %v7232_v20 = vmul.bf16 %v7150_v61, %v11631_v14  ;;  %v5521_v33 = vcombine.high %v5520_v15, %v5520_v15 }
 0x33a   : >> { %v8667_v29 = vcombine.high %v8658_v43, %v8665_v54  ;;  %v8666_v18 = vcombine.low %v8658_v43, %v8665_v54  ;;  %v5528_v36 = vrot.slane %v5520_v15, %v9953_v39  ;;  %v7131_v38 = vpack.i.b16 %v7063_v11, %v7063_v11 }
 0x33b   : >> { %v8850_v59 = vcombine.high %v8841_v50, %v8848_v53  ;;  %v8849_v28 = vcombine.low %v8841_v50, %v8848_v53  ;;  %v7233_v48 = vmul.bf16 %v7157_v35, %v11636_v9  ;;  %v5535_v41 = vrot.slane %v5521_v33, %v9953_v39 }
 0x33c   : >> { %8764 = vmatprep.subr.bf16.mxu0 %v8667_v29  ;;  %v5679_v27 = vunpack.i.h.s16 %v5528_v36  ;;  %v9305_v3 = vpack.i.b16 %v5528_v36, %v5528_v36  ;;  %v11822_v5 = vrot.slane %v7131_v38, %v9814_v19  ;;  %v7138_v12 = vpack.i.b16 %v7067_v10, %v7067_v10 }
 0x33d   : >> { %8765 = vmatpush1.bf16.msra.mxu0 %v8666_v18  ;;  %8967 = vmatprep.subr.bf16.mxu1 %v8850_v59  ;;  %v7306_v4 = vcombine.low %v7232_v20, %v7233_v48  ;;  %v5681_v56 = vunpack.i.h.s16 %v5535_v41  ;;  %v9306_v16 = vpack.i.b16 %v5535_v41, %v5535_v41  ;;  %v11828_v63 = vrot.slane %v5354_v13, %v9814_v19 }
 0x33e   : >> { %8968 = vmatpush1.bf16.msra.mxu1 %v8849_v28  ;;  %v5711_v60 = vpack.i.b16 %v5679_v27, %v5679_v27  ;;  %v5773_v62 = vrot.slane %v9305_v3, %v9814_v19  ;;  %v5777_v47 = vrot.slane %v9305_v3, %v9821_v21  ;;  %v11833_v40 = vrot.slane %v7138_v12, %v9814_v19 }
 0x33f   : >> { %v7313_v42 = vrot.slane %v7306_v4, %v9953_v39  ;;  %v5713_v43 = vpack.i.b16 %v5681_v56, %v5681_v56  ;;  %v5789_v2 = vrot.slane %v9306_v16, %v9814_v19  ;;  %v5793_v26 = vrot.slane %v9306_v16, %v9821_v21 }
 0x340   : >> { %v5781_v44 = vrot.slane %v5711_v60, %v9814_v19  ;;  %v5785_v13 = vrot.slane %v5711_v60, %v9821_v21  ;;  %v6051_v55 = vpack.i.b16 %v5773_v62, %v5773_v62  ;;  %v6058_v61 = vpack.i.b16 %v5777_v47, %v5777_v47 }
 0x341   : >> { %v7314_v6 = vcombine.high %v7313_v42, %v7313_v42  ;;  %v7321_v15 = vrot.slane %v7313_v42, %v9953_v39  ;;  %v5797_v54 = vrot.slane %v5713_v43, %v9814_v19  ;;  %v5801_v50 = vrot.slane %v5713_v43, %v9821_v21 }
 0x342   : >> { %v11844_v11 = vrot.slane %v6051_v55, %v9814_v19  ;;  %v11847_v10 = vrot.slane %v6058_v61, %v9814_v19  ;;  %v6065_v53 = vpack.i.b16 %v5781_v44, %v5781_v44  ;;  %v6072_v35 = vpack.i.b16 %v5785_v13, %v5785_v13 }
 0x343   : >> { %v7328_v20 = vrot.slane %v7314_v6, %v9953_v39  ;;  %v7453_v33 = vunpack.i.h.s16 %v7321_v15  ;;  %v9331_v29 = vpack.i.b16 %v7321_v15, %v7321_v15  ;;  %v6079_v18 = vpack.i.b16 %v5789_v2, %v5789_v2 }
 0x344   : >> { %v11851_v36 = vrot.slane %v6065_v53, %v9814_v19  ;;  %v11854_v38 = vrot.slane %v6072_v35, %v9814_v19  ;;  %v6086_v59 = vpack.i.b16 %v5793_v26, %v5793_v26  ;;  %v6093_v28 = vpack.i.b16 %v5797_v54, %v5797_v54 }
 0x345   : >> { %v7455_v48 = vunpack.i.h.s16 %v7328_v20  ;;  %v7485_v41 = vpack.i.b16 %v7453_v33, %v7453_v33  ;;  %v9332_v27 = vpack.i.b16 %v7328_v20, %v7328_v20  ;;  %v7575_v3 = vrot.slane %v9331_v29, %v9814_v19 }
 0x346   : >> { %v7579_v12 = vrot.slane %v9331_v29, %v9821_v21  ;;  %v6084_v4 = vrot.slane %v6079_v18, %v9814_v19  ;;  %v6091_v56 = vrot.slane %v6086_v59, %v9814_v19  ;;  %v6098_v16 = vrot.slane %v6093_v28, %v9814_v19 }
 0x347   : >> { %v7487_v60 = vpack.i.b16 %v7455_v48, %v7455_v48  ;;  %v7583_v62 = vrot.slane %v7485_v41, %v9814_v19  ;;  %v7587_v47 = vrot.slane %v7485_v41, %v9821_v21  ;;  %v7591_v42 = vrot.slane %v9332_v27, %v9814_v19 }
 0x348   : >> { %v7595_v43 = vrot.slane %v9332_v27, %v9821_v21  ;;  %v7877_v2 = vpack.i.b16 %v7575_v3, %v7575_v3  ;;  %v7884_v26 = vpack.i.b16 %v7579_v12, %v7579_v12  ;;  %v6100_v44 = vpack.i.b16 %v5801_v50, %v5801_v50 }
 0x349   : >> { %v7599_v13 = vrot.slane %v7487_v60, %v9814_v19  ;;  %v7603_v55 = vrot.slane %v7487_v60, %v9821_v21  ;;  %v7891_v61 = vpack.i.b16 %v7583_v62, %v7583_v62  ;;  %v7898_v6 = vpack.i.b16 %v7587_v47, %v7587_v47 }
 0x34a   : >> { %v7882_v15 = vrot.slane %v7877_v2, %v9814_v19  ;;  %v7889_v54 = vrot.slane %v7884_v26, %v9814_v19  ;;  %v7905_v53 = vpack.i.b16 %v7591_v42, %v7591_v42  ;;  %v7912_v35 = vpack.i.b16 %v7595_v43, %v7595_v43 }
 0x34b   : >> { %v7896_v20 = vrot.slane %v7891_v61, %v9814_v19  ;;  %v7903_v33 = vrot.slane %v7898_v6, %v9814_v19  ;;  %v7919_v29 = vpack.i.b16 %v7599_v13, %v7599_v13  ;;  %v7926_v18 = vpack.i.b16 %v7603_v55, %v7603_v55 }
 0x34c   : >> { %v7910_v50 = vrot.slane %v7905_v53, %v9814_v19  ;;  %v7917_v59 = vrot.slane %v7912_v35, %v9814_v19  ;;  %v8228_v28 = vmul.bf16 %v7882_v15, %v11543_v22  ;;  %v8229_v48 = vmul.bf16 %v7889_v54, %v11625_v23 }
 0x34d   : >> { %v7924_v41 = vrot.slane %v7919_v29, %v9814_v19  ;;  %v7931_v27 = vrot.slane %v7926_v18, %v9814_v19  ;;  %v8230_v3 = vmul.bf16 %v7896_v20, %v11543_v22  ;;  %v8231_v12 = vmul.bf16 %v7903_v33, %v11625_v23 }
 0x34e   : >> { %v8232_v60 = vmul.bf16 %v7910_v50, %v11543_v22  ;;  %v8233_v62 = vmul.bf16 %v7917_v59, %v11625_v23  ;;  %v8404_v47 = vcombine.low %v8228_v28, %v8229_v48  ;;  %v6105_v42 = vrot.slane %v6100_v44, %v9814_v19 }
 0x34f   : >> { %v8234_v43 = vmul.bf16 %v7924_v41, %v11543_v22  ;;  %v8235_v2 = vmul.bf16 %v7931_v27, %v11625_v23  ;;  %v8412_v26 = vcombine.low %v8230_v3, %v8231_v12  ;;  %v6450_v13 = vmul.bf16 %v11844_v11, %v11116_v34 }
 0x350   : >> { %v8411_v55 = vrot.slane %v8404_v47, %v9999_v8  ;;  %v8420_v61 = vcombine.low %v8232_v60, %v8233_v62  ;;  %v6451_v6 = vmul.bf16 %v11847_v10, %v11529_v0  ;;  %v6452_v15 = vmul.bf16 %v11851_v36, %v11116_v34 }
 0x351   : >> { %v8419_v54 = vrot.slane %v8412_v26, %v9999_v8  ;;  %v8428_v44 = vcombine.low %v8234_v43, %v8235_v2  ;;  %v6453_v53 = vmul.bf16 %v11854_v38, %v11529_v0  ;;  %v6454_v35 = vmul.bf16 %v6084_v4, %v11116_v34 }
 0x352   : >> { %v8427_v20 = vrot.slane %v8420_v61, %v9999_v8  ;;  %v6455_v11 = vmul.bf16 %v6091_v56, %v11529_v0  ;;  %v6456_v33 = vmul.bf16 %v6098_v16, %v11116_v34  ;;  %v6457_v29 = vmul.bf16 %v6105_v42, %v11529_v0 }
 0x353   : >> { %v8435_v10 = vrot.slane %v8428_v44, %v9999_v8  ;;  %v8632_v18 = vcombine.low %v8411_v55, %v8419_v54  ;;  %v6602_v36 = vcombine.low %v6450_v13, %v6451_v6  ;;  %v6610_v50 = vcombine.low %v6452_v15, %v6453_v53 }
 0x354   : >> { %v6618_v59 = vcombine.low %v6454_v35, %v6455_v11  ;;  %v6626_v28 = vcombine.low %v6456_v33, %v6457_v29  ;;  %v7230_v38 = vmul.bf16 %v11822_v5, %v11631_v14  ;;  %v7231_v4 = vmul.bf16 %v11833_v40, %v11636_v9 }
 0x355   : >> { %v8633_v48 = vcombine.low %v8427_v20, %v8435_v10  ;;  %v8640_v56 = vrot.slane %v8632_v18, %v9999_v8  ;;  %v6609_v16 = vrot.slane %v6602_v36, %v9999_v8  ;;  %v6617_v41 = vrot.slane %v6610_v50, %v9999_v8 }
 0x356   : >> { %v6625_v27 = vrot.slane %v6618_v59, %v9999_v8  ;;  %v6633_v3 = vrot.slane %v6626_v28, %v9999_v8  ;;  %v7283_v12 = vcombine.low %v7230_v38, %v7231_v4  ;;  %v5458_v60 = vmul.bf16 %v11654_v1, %v11608_v45 }
 0x357   : >> { %v8647_v5 = vrot.slane %v8633_v48, %v9999_v8  ;;  %v8815_v62 = vcombine.low %v6609_v16, %v6617_v41  ;;  %v5459_v40 = vmul.bf16 %v11828_v63, %v11614_v49  ;;  %v9323_v47 = vpack.i.b16 %v11650_v57, %v11650_v57 }
 0x358   : >> { %v8816_v42 = vcombine.low %v6625_v27, %v6633_v3  ;;  %v7290_v43 = vrot.slane %v7283_v12, %v9953_v39  ;;  %v11919_v2 = vadd.f32 %v11708_v37, %v11710_v58 }
 0x359   : >> { %v8649_v26 = vcombine.high %v8640_v56, %v8647_v5  ;;  %v8648_v13 = vcombine.low %v8640_v56, %v8647_v5  ;;  %v8823_v45 = vrot.slane %v8815_v62, %v9999_v8  ;;  %v5490_v1 = vcombine.low %v5458_v60, %v5459_v40 }
 0x35a   : >> { %v8830_v55 = vrot.slane %v8816_v42, %v9999_v8  ;;  %v7291_v61 = vcombine.high %v7290_v43, %v7290_v43  ;;  %v7298_v49 = vrot.slane %v7290_v43, %v9953_v39  ;;  %v11925_v63 = vrot.slane %v9323_v47, %v9814_v19 }
 0x35b   : >> { %8766 = vmatprep.subr.bf16.mxu0 %v8649_v26  ;;  %v5497_v57 = vrot.slane %v5490_v1, %v9953_v39  ;;  %v11929_v6 = vrot.slane %v9323_v47, %v9821_v21 }
 0x35c   : >> { %8767 = vmatpush1.bf16.msra.mxu0 %v8648_v13  ;;  %v8832_v37 = vcombine.high %v8823_v45, %v8830_v55  ;;  %v8831_v58 = vcombine.low %v8823_v45, %v8830_v55  ;;  %v7305_v15 = vrot.slane %v7291_v61, %v9953_v39  ;;  %v7449_v54 = vunpack.i.h.s16 %v7298_v49 }
 0x35d   : >> { %v9329_v44 = vpack.i.b16 %v7298_v49, %v7298_v49  ;;  %v5498_v53 = vcombine.high %v5497_v57, %v5497_v57  ;;  %v5505_v35 = vrot.slane %v5497_v57, %v9953_v39  ;;  %v7117_v20 = vpack.i.b16 %v11925_v63, %v11925_v63 }
 0x35e   : >> { %8969 = vmatprep.subr.bf16.mxu1 %v8832_v37  ;;  %v7451_v11 = vunpack.i.h.s16 %v7305_v15  ;;  %v7481_v33 = vpack.i.b16 %v7449_v54, %v7449_v54  ;;  %v9330_v29 = vpack.i.b16 %v7305_v15, %v7305_v15  ;;  %v7124_v10 = vpack.i.b16 %v11929_v6, %v11929_v6 }
 0x35f   : >> { %8970 = vmatpush1.bf16.msra.mxu1 %v8831_v58  ;;  %v7543_v18 = vrot.slane %v9329_v44, %v9814_v19  ;;  %v7547_v36 = vrot.slane %v9329_v44, %v9821_v21  ;;  %v5512_v50 = vrot.slane %v5498_v53, %v9953_v39  ;;  %v5675_v59 = vunpack.i.h.s16 %v5505_v35 }
 0x360   : >> { %v7483_v28 = vpack.i.b16 %v7451_v11, %v7451_v11  ;;  %v7551_v38 = vrot.slane %v7481_v33, %v9814_v19  ;;  %v7555_v4 = vrot.slane %v7481_v33, %v9821_v21  ;;  %v7559_v48 = vrot.slane %v9330_v29, %v9814_v19 }
 0x361   : >> { %v7563_v56 = vrot.slane %v9330_v29, %v9821_v21  ;;  %v7821_v16 = vpack.i.b16 %v7543_v18, %v7543_v18  ;;  %v7828_v41 = vpack.i.b16 %v7547_v36, %v7547_v36  ;;  %v5677_v27 = vunpack.i.h.s16 %v5512_v50 }
 0x362   : >> { %v7567_v3 = vrot.slane %v7483_v28, %v9814_v19  ;;  %v7571_v12 = vrot.slane %v7483_v28, %v9821_v21  ;;  %v7835_v60 = vpack.i.b16 %v7551_v38, %v7551_v38  ;;  %v7842_v5 = vpack.i.b16 %v7555_v4, %v7555_v4 }
 0x363   : >> { %v7826_v62 = vrot.slane %v7821_v16, %v9814_v19  ;;  %v7833_v40 = vrot.slane %v7828_v41, %v9814_v19  ;;  %v7849_v47 = vpack.i.b16 %v7559_v48, %v7559_v48  ;;  %v7856_v42 = vpack.i.b16 %v7563_v56, %v7563_v56 }
 0x364   : >> { %v7840_v43 = vrot.slane %v7835_v60, %v9814_v19  ;;  %v7847_v26 = vrot.slane %v7842_v5, %v9814_v19  ;;  %v7863_v13 = vpack.i.b16 %v7567_v3, %v7567_v3  ;;  %v7870_v45 = vpack.i.b16 %v7571_v12, %v7571_v12 }
 0x365   : >> { %v7854_v1 = vrot.slane %v7849_v47, %v9814_v19  ;;  %v7861_v55 = vrot.slane %v7856_v42, %v9814_v19  ;;  %v8220_v61 = vmul.bf16 %v7826_v62, %v11543_v22  ;;  %v8221_v49 = vmul.bf16 %v7833_v40, %v11625_v23 }
 0x366   : >> { %v7868_v57 = vrot.slane %v7863_v13, %v9814_v19  ;;  %v7875_v37 = vrot.slane %v7870_v45, %v9814_v19  ;;  %v8222_v58 = vmul.bf16 %v7840_v43, %v11543_v22  ;;  %v8223_v15 = vmul.bf16 %v7847_v26, %v11625_v23 }
 0x367   : >> { %v8224_v54 = vmul.bf16 %v7854_v1, %v11543_v22  ;;  %v8225_v44 = vmul.bf16 %v7861_v55, %v11625_v23  ;;  %v8372_v53 = vcombine.low %v8220_v61, %v8221_v49  ;;  %v9303_v11 = vpack.i.b16 %v5505_v35, %v5505_v35 }
 0x368   : >> { %v8226_v33 = vmul.bf16 %v7868_v57, %v11543_v22  ;;  %v8227_v29 = vmul.bf16 %v7875_v37, %v11625_v23  ;;  %v8380_v18 = vcombine.low %v8222_v58, %v8223_v15  ;;  %v5707_v36 = vpack.i.b16 %v5675_v59, %v5675_v59 }
 0x369   : >> { %v8379_v28 = vrot.slane %v8372_v53, %v9999_v8  ;;  %v8388_v38 = vcombine.low %v8224_v54, %v8225_v44  ;;  %v9304_v4 = vpack.i.b16 %v5512_v50, %v5512_v50  ;;  %v5709_v48 = vpack.i.b16 %v5677_v27, %v5677_v27 }
 0x36a   : >> { %v8387_v56 = vrot.slane %v8380_v18, %v9999_v8  ;;  %v8396_v16 = vcombine.low %v8226_v33, %v8227_v29  ;;  %v5741_v41 = vrot.slane %v9303_v11, %v9814_v19  ;;  %v5745_v3 = vrot.slane %v9303_v11, %v9821_v21 }
 0x36b   : >> { %v8395_v35 = vrot.slane %v8388_v38, %v9999_v8  ;;  %v5749_v12 = vrot.slane %v5707_v36, %v9814_v19  ;;  %v5753_v60 = vrot.slane %v5707_v36, %v9821_v21  ;;  %v5757_v59 = vrot.slane %v9304_v4, %v9814_v19 }
 0x36c   : >> { %v8403_v5 = vrot.slane %v8396_v16, %v9999_v8  ;;  %v8614_v62 = vcombine.low %v8379_v28, %v8387_v56  ;;  %v5761_v50 = vrot.slane %v9304_v4, %v9821_v21  ;;  %v5765_v27 = vrot.slane %v5709_v48, %v9814_v19 }
 0x36d   : >> { %v5769_v40 = vrot.slane %v5709_v48, %v9821_v21  ;;  %v5995_v47 = vpack.i.b16 %v5741_v41, %v5741_v41  ;;  %v6002_v42 = vpack.i.b16 %v5745_v3, %v5745_v3  ;;  %v6009_v43 = vpack.i.b16 %v5749_v12, %v5749_v12 }
 0x36e   : >> { %v8615_v26 = vcombine.low %v8395_v35, %v8403_v5  ;;  %v8622_v13 = vrot.slane %v8614_v62, %v9999_v8  ;;  %v6016_v45 = vpack.i.b16 %v5753_v60, %v5753_v60  ;;  %v6023_v1 = vpack.i.b16 %v5757_v59, %v5757_v59 }
 0x36f   : >> { %v6000_v55 = vrot.slane %v5995_v47, %v9814_v19  ;;  %v6007_v61 = vrot.slane %v6002_v42, %v9814_v19  ;;  %v6014_v49 = vrot.slane %v6009_v43, %v9814_v19  ;;  %v6030_v57 = vpack.i.b16 %v5761_v50, %v5761_v50 }
 0x370   : >> { %v8629_v37 = vrot.slane %v8615_v26, %v9999_v8  ;;  %v6021_v58 = vrot.slane %v6016_v45, %v9814_v19  ;;  %v6028_v15 = vrot.slane %v6023_v1, %v9814_v19  ;;  %v6037_v54 = vpack.i.b16 %v5765_v27, %v5765_v27 }
 0x371   : >> { %v6035_v44 = vrot.slane %v6030_v57, %v9814_v19  ;;  %v6044_v53 = vpack.i.b16 %v5769_v40, %v5769_v40  ;;  %v6442_v11 = vmul.bf16 %v6000_v55, %v11116_v34  ;;  %v6443_v33 = vmul.bf16 %v6007_v61, %v11529_v0 }
 0x372   : >> { %v8631_v29 = vcombine.high %v8622_v13, %v8629_v37  ;;  %v8630_v18 = vcombine.low %v8622_v13, %v8629_v37  ;;  %v6042_v36 = vrot.slane %v6037_v54, %v9814_v19  ;;  %v6444_v28 = vmul.bf16 %v6014_v49, %v11116_v34 }
 0x373   : >> { %v6049_v38 = vrot.slane %v6044_v53, %v9814_v19  ;;  %v6445_v4 = vmul.bf16 %v6021_v58, %v11529_v0  ;;  %v6446_v48 = vmul.bf16 %v6028_v15, %v11116_v34  ;;  %v6447_v56 = vmul.bf16 %v6035_v44, %v11529_v0 }
 0x374   : >> { %8768 = vmatprep.subr.bf16.mxu0 %v8631_v29  ;;  %v6448_v16 = vmul.bf16 %v6042_v36, %v11116_v34  ;;  %v6570_v41 = vcombine.low %v6442_v11, %v6443_v33  ;;  %v7122_v3 = vrot.slane %v7117_v20, %v9814_v19  ;;  %v7129_v35 = vrot.slane %v7124_v10, %v9814_v19 }
 0x375   : >> { %8769 = vmatpush1.bf16.msra.mxu0 %v8630_v18  ;;  %v6449_v12 = vmul.bf16 %v6049_v38, %v11529_v0  ;;  %v6578_v60 = vcombine.low %v6444_v28, %v6445_v4  ;;  %v6586_v59 = vcombine.low %v6446_v48, %v6447_v56  ;;  %v9487_v56 = vld [vmem:[%s9790_s13] sm:$0x3] }
 0x376   : >> { %v6577_v5 = vrot.slane %v6570_v41, %v9999_v8  ;;  %v7228_v34 = vmul.bf16 %v7122_v3, %v11631_v14  ;;  %v7229_v62 = vmul.bf16 %v7129_v35, %v11636_v9 }
 0x377   : >> { %v6585_v50 = vrot.slane %v6578_v60, %v9999_v8  ;;  %v6593_v63 = vrot.slane %v6586_v59, %v9999_v8  ;;  %v6594_v20 = vcombine.low %v6448_v16, %v6449_v12 }
 0x378   : >> { %v7260_v27 = vcombine.low %v7228_v34, %v7229_v62 }
 0x379   : >> { %v6601_v6 = vrot.slane %v6594_v20, %v9999_v8  ;;  %v8797_v10 = vcombine.low %v6577_v5, %v6585_v50 }
 0x37a   : >> { %v7267_v40 = vrot.slane %v7260_v27, %v9953_v39 }
 0x37b   : >> { %v8798_v0 = vcombine.low %v6593_v63, %v6601_v6  ;;  %v8805_v47 = vrot.slane %v8797_v10, %v9999_v8 }
 0x37c   : >> { %v7268_v42 = vcombine.high %v7267_v40, %v7267_v40  ;;  %v7275_v43 = vrot.slane %v7267_v40, %v9953_v39 }
 0x37d   : >> { %v8812_v14 = vrot.slane %v8798_v0, %v9999_v8 }
 0x37e   : >> { %v7282_v9 = vrot.slane %v7268_v42, %v9953_v39  ;;  %v7445_v26 = vunpack.i.h.s16 %v7275_v43  ;;  %v9327_v13 = vpack.i.b16 %v7275_v43, %v7275_v43 }
 0x37f   : >> { %v8814_v45 = vcombine.high %v8805_v47, %v8812_v14  ;;  %v8813_v1 = vcombine.low %v8805_v47, %v8812_v14 }
 0x380   : >> { %v7447_v55 = vunpack.i.h.s16 %v7282_v9  ;;  %v7477_v61 = vpack.i.b16 %v7445_v26, %v7445_v26  ;;  %v9328_v49 = vpack.i.b16 %v7282_v9, %v7282_v9  ;;  %v7511_v57 = vrot.slane %v9327_v13, %v9814_v19 }
 0x381   : >> { %8971 = vmatprep.subr.bf16.mxu1 %v8814_v45  ;;  %v7515_v37 = vrot.slane %v9327_v13, %v9821_v21 }
 0x382   : >> { %8972 = vmatpush1.bf16.msra.mxu1 %v8813_v1  ;;  %v7479_v58 = vpack.i.b16 %v7447_v55, %v7447_v55  ;;  %v7519_v15 = vrot.slane %v7477_v61, %v9814_v19  ;;  %v7523_v54 = vrot.slane %v7477_v61, %v9821_v21  ;;  %v7527_v39 = vrot.slane %v9328_v49, %v9814_v19  ;;  %v9488_v61 = vld [vmem:[%s9790_s13 + $0x2] sm:$0x3] }
 0x383   : >> { %v7531_v44 = vrot.slane %v9328_v49, %v9821_v21  ;;  %v7765_v53 = vpack.i.b16 %v7511_v57, %v7511_v57  ;;  %v7772_v11 = vpack.i.b16 %v7515_v37, %v7515_v37  ;;  %v4869_v49 = vadd.f32 %v11716_v46, %v11718_v52 }
 0x384   : >> { %v7535_v33 = vrot.slane %v7479_v58, %v9814_v19  ;;  %v7539_v29 = vrot.slane %v7479_v58, %v9821_v21  ;;  %v7779_v18 = vpack.i.b16 %v7519_v15, %v7519_v15  ;;  %v7786_v36 = vpack.i.b16 %v7523_v54, %v7523_v54  ;;  %v12226_v54 = vld [vmem:[#allocation18_spill] sm:$0xff] }
 0x385   : >> { %v7770_v28 = vrot.slane %v7765_v53, %v9814_v19  ;;  %v7777_v38 = vrot.slane %v7772_v11, %v9814_v19  ;;  %v7793_v4 = vpack.i.b16 %v7527_v39, %v7527_v39  ;;  %v7800_v48 = vpack.i.b16 %v7531_v44, %v7531_v44  ;;  %8990 = vmatmul.mubr.bf16.vlgmr.msra.gmra.mxu1 %v9487_v56  ;;  %v12227_v53 = vld [vmem:[#allocation17_spill] sm:$0xff] }
 0x386   : >> { %v7784_v16 = vrot.slane %v7779_v18, %v9814_v19  ;;  %v7791_v41 = vrot.slane %v7786_v36, %v9814_v19  ;;  %v7807_v3 = vpack.i.b16 %v7535_v33, %v7535_v33  ;;  %v7814_v35 = vpack.i.b16 %v7539_v29, %v7539_v29  ;;  %v12228_v36 = vld [vmem:[#allocation9_spill] sm:$0xff] }
 0x387   : >> { %v7798_v12 = vrot.slane %v7793_v4, %v9814_v19  ;;  %v7805_v60 = vrot.slane %v7800_v48, %v9814_v19  ;;  %v8212_v59 = vmul.bf16 %v7770_v28, %v11543_v22  ;;  %v8213_v5 = vmul.bf16 %v7777_v38, %v11625_v23 }
 0x388   : >> { %v7812_v34 = vrot.slane %v7807_v3, %v9814_v19  ;;  %v7819_v62 = vrot.slane %v7814_v35, %v9814_v19  ;;  %v8214_v50 = vmul.bf16 %v7784_v16, %v11543_v22  ;;  %v8215_v63 = vmul.bf16 %v7791_v41, %v11625_v23 }
 0x389   : >> { %v8216_v20 = vmul.bf16 %v7798_v12, %v11543_v22  ;;  %v8217_v27 = vmul.bf16 %v7805_v60, %v11625_v23  ;;  %v8340_v6 = vcombine.low %v8212_v59, %v8213_v5  ;;  %v4873_v57 = vmul.f32 0.05, %v11919_v2 }
 0x38a   : >> { %v8218_v10 = vmul.bf16 %v7812_v34, %v11543_v22  ;;  %v8219_v40 = vmul.bf16 %v7819_v62, %v11625_v23  ;;  %v8348_v0 = vcombine.low %v8214_v50, %v8215_v63  ;;  %v4874_v58 = vmul.f32 0.05, %v4869_v49 }
 0x38b   : >> { %v8347_v47 = vrot.slane %v8340_v6, %v9999_v8  ;;  %v8356_v42 = vcombine.low %v8216_v20, %v8217_v27  ;;  %v4875_v39 = vadd.f32 %v12226_v54, %v4873_v57  ;;  %v4885_v28 = vsub.s32 3, %v12228_v36 }
 0x38c   : >> { %v8355_v43 = vrot.slane %v8348_v0, %v9999_v8  ;;  %v8364_v14 = vcombine.low %v8218_v10, %v8219_v40  ;;  %v4876_v11 = vadd.f32 %v12227_v53, %v4874_v58  ;;  %v4881_v4 = vsel %vm755_vm0, 1.0, %v11919_v2 }
 0x38d   : >> { %v8363_v9 = vrot.slane %v8356_v42, %v9999_v8  ;;  %v4877_v33 = vmin.f32 %v4875_v39, 1.0  ;;  %v4882_v56 = vsel %vm755_vm0, 1.0, %v4869_v49 }
 0x38e   : >> { %v8371_v26 = vrot.slane %v8364_v14, %v9999_v8  ;;  %v8596_v13 = vcombine.low %v8347_v47, %v8355_v43  ;;  %v4878_v29 = vmin.f32 %v4876_v11, 1.0 }
 0x38f   : >> { %v4879_v18 = vsub.f32 %v4877_v33, %v12226_v54 }
 0x390   : >> { %v8597_v45 = vcombine.low %v8363_v9, %v8371_v26  ;;  %v8604_v1 = vrot.slane %v8596_v13, %v9999_v8  ;;  %v4880_v38 = vsub.f32 %v4878_v29, %v12227_v53 }
 0x391   : >> { %v4886_v46 = vrot.slane %v4879_v18, %v4885_v28 }
 0x392   : >> { %v8611_v22 = vrot.slane %v8597_v45, %v9999_v8  ;;  %v4890_v52 = vrot.slane %v4880_v38, %v4885_v28 }
 0x393   : >> { %v4891_v48 = vmul.f32 %v4886_v46, %v4881_v4 }
 0x394   : >> { %v8613_v55 = vcombine.high %v8604_v1, %v8611_v22  ;;  %v8612_v23 = vcombine.low %v8604_v1, %v8611_v22  ;;  %v4892_v41 = vmul.f32 %v4890_v52, %v4882_v56 }
 0x395   : >> { %v4893_v12 = vadd.f32 %v12226_v54, %v4891_v48 }
 0x396   : >> { %8770 = vmatprep.subr.bf16.mxu0 %v8613_v55  ;;  %v4894_v34 = vadd.f32 %v12227_v53, %v4892_v41 }
 0x397   : >> { %8771 = vmatpush1.bf16.msra.mxu0 %v8612_v23 }
 0x39a   : >> { %8789 = vmatmul.mubr.bf16.vlgmr.msra.gmra.mxu0 %v9488_v61 }
 0x445   : >> { %v8991_v37 = vpop.f32.mrf.mxu1 }
 0x447   : >> { %v8993_v15 = vpop.f32.mrf.mxu1 }
 0x449   : >> { %v8995_v44 = vpop.f32.mrf.mxu1 }
 0x44b   : >> { %v8996_v8 = vpop.f32.mrf.mxu1 }
 0x45a   : >> { %v8790_v16 = vpop.f32.mrf.mxu0 }
 0x45b   : >> { %v8992_v3 = vadd.f32 %v8991_v37, %v8790_v16 }
 0x45c   : >> { %v8792_v35 = vpop.f32.mrf.mxu0 }
 0x45d   : >> { %v8998_v60 = vmul.f32 0.05, %v8992_v3  ;;  %v8994_v59 = vadd.f32 %v8993_v15, %v8792_v35  ;;  %v9006_v0 = vsel %vm755_vm0, 1.0, %v8992_v3 }
 0x45e   : >> { %v8794_v5 = vpop.f32.mrf.mxu0 }
 0x45f   : >> { %v9000_v62 = vadd.f32 %v8998_v60, %v4893_v12  ;;  %v8999_v50 = vmul.f32 0.05, %v8994_v59  ;;  %v9007_v43 = vsel %vm755_vm0, 1.0, %v8994_v59 }
 0x460   : >> { %v8795_v63 = vpop.f32.mrf.mxu0 }
 0x461   : >> { %v9002_v20 = vmin.f32 %v9000_v62, 1.0  ;;  %v9001_v2 = vadd.f32 %v8999_v50, %v4894_v34 }
 0x463   : >> { %v9004_v27 = vsub.f32 %v9002_v20, %v4893_v12  ;;  %v9003_v6 = vmin.f32 %v9001_v2, 1.0 }
 0x465   : >> { %v9011_v10 = vrot.slane %v9004_v27, %v4885_v28  ;;  %v9005_v40 = vsub.f32 %v9003_v6, %v4894_v34 }
 0x467   : >> { %v9016_v47 = vmul.f32 %v9011_v10, %v9006_v0  ;;  %v9015_v42 = vrot.slane %v9005_v40, %v4885_v28 }
 0x469   : >> { %v9018_v14 = vadd.f32 %v9016_v47, %v4893_v12   ;;  %v9017_v9 = vmul.f32 %v9015_v42, %v9007_v43  ;;  %763 = sbr.rel (!%p760_p11) target bundleno = 218 (0xda), region = 118 }
 0x46b   : >> { %v9019_v26 = vadd.f32 %v9017_v9, %v4894_v34   ;;  %v12230_v34 = vmov %v9018_v14  ;;  %v12232_v28 = vmov (%p760_p11), %v9018_v14 }
 0x46d   : >> { %v12229_v33 = vmov %v9019_v26  ;;  %v12231_v27 = vmov (%p760_p11), %v9019_v26 }
 0x46e PF: > { %v9022_v13 = vcombine.low %v9624_v28, %v9620_v27  ;;  %s9352_s24 = sshll.u32 %s9596_s30, 7  ;;  %s9042_s19 = sshll.u32 %s443_s26, 4  ;;  %v9624_v28 = vphi %v9882_v28, %v12232_v28   ;;  %v9620_v27 = vphi %v9880_v27, %v12231_v27   ;;  %s9043_s19 = int_to_ptr.vmem [resolvable:$true] %s9042_s19 }
 0x46f   : > { %s12080_s13 = scalar_lea.hbm %s12134_s8, %s9352_s24  ;;  %s9026_s12 = scalar_lea.sflag [#allocation3], %s441_s11 }
 0x470   : > { %9024 = vst [vmem:[%s443_s26] sm:$0xff] %v9022_v13  ;;  %s9504_s14 = scalar_lea.vmem %s9043_s19, 128  ;;  %s9640_s20 = smov [#allocation5]  }
 0x471   : > { %p9505_p13 = scmp.ne.s32.totalorder %s9043_s19, %s9504_s14  ;;  %s9508_s21 = sshll.u32 %s9640_s20, 4  ;;  %s9509_s21 = int_to_ptr.vmem [resolvable:$false] %s9508_s21 }
 0x472   : > { %s9510_s30 = scalar_lea.vmem %s9509_s21, 256  ;;  %p9511_p2 = scmp.lt.s32.totalorder %s9043_s19, %s9509_s21 }
 0x473   : > { %p9506_p0 = pnand %p9505_p13, %p9726_p4  ;;  %p9512_p3 = scmp.lt.s32.totalorder %s9510_s30, %s9504_s14 }
 0x475   : > { %p9507_p1 = pneg %p9506_p0  ;;  %p9513_p5 = por %p9512_p3, %p9511_p2 }
 0x477   : > { %p9514_p6 = pnand %p9513_p5, %p9507_p1 }
 0x479   : > { %9517 = shalt.err (!%p9514_p6)
}
 0x47a   : > { %s9518_s16 = scalar_lea.hbm %s12080_s13, 128  ;;  %s9522_s22 = scalar_lea.hbm %s12134_s8, 256 }
 0x47b   : > { %p9519_p7 = scmp.ne.s32.totalorder %s12080_s13, %s9518_s16  ;;  %p9523_p10 = scmp.lt.s32.totalorder %s12080_s13, %s12134_s8 }
 0x47c   : > { %p9524_p11 = scmp.lt.s32.totalorder %s9522_s22, %s9518_s16 }
 0x47d   : > { %p9520_p9 = pnand %p9519_p7, %p9726_p4 }
 0x47e   : > { %p9525_p13 = por %p9524_p11, %p9523_p10 }
 0x47f   : > { %p9521_p12 = pneg %p9520_p9 }
 0x481   : > { %p9526_p0 = pnand %p9525_p13, %p9521_p12 }
 0x483   : > { %9529 = shalt.err (!%p9526_p0)
}
 0x484   : > { %9357 = dma.vmem_to_hbm [thread:$0]  (%p9726_p4), %s9043_s19, 128, %s12080_s13, %s9026_s12  }
 0x485 PF: > { %p9369_p1 = scmp.ge.s32.totalorder %s9604_s10, 2  ;;  %s9054_s25 = sand.u32 1, %s9584_s27  }
 0x486   : > { %s9055_s0 = scalar_lea.sflag [#allocation3], %s9054_s25 }
 0x487   : > { %p9364_p2 = pnand %p9369_p1, %p9733_p8 }
 0x489   : > { %p9365_p3 = pneg %p9364_p2 }
 0x48b   : > { %9579 = dma.done.wait (%p9365_p3), %s9055_s0, 128  }
 0x48c   : > { %9581 = vsyncadd (%p9365_p3), %s9055_s0, 4294967168  ;;  %s22_s10 = sadd.s32 1, %s9604_s10   ;;  %s12233_s15 = sld [smem:[#allocation8_spill]] }
 0x48d   : > { %p19_p5 = scmp.ge.s32.totalorder %s22_s10, 4   ;;  %s12234_s27 = smov %s9588_s28 }
 0x48e   : > { %s12235_s28 = smov %s9592_s29  ;;  %s12236_s29 = smov %s9739_s18 }
 0x48f   : > { %s12237_s30 = smov %s9600_s9  ;;  %21 = sbr.rel (!%p19_p5) target bundleno = 7 (0x7), region = 129 }
 0x492   : > { %s12238_s9 = smov %s12233_s15 }
 0x494   :  { %9060 = vsyncpa [#allocation3], 1 }
 0x495   :  { %9062 = vsyncpa [#allocation3 + $0x1], 1 }
 0x496   :  { %9063 = vsyncpa [#allocation4], 1 }
 0x497   :  { %9065 = vsyncpa [#allocation4 + $0x1], 1 }

</bundles_post_ra>
